<compile_context>
chip_gen: v5e
topology: v5e:2x2
jax: 0.10.0
libtpu: 0.0.40
codegen_flags: <defaults>
</compile_context>

<pallas_src>
import math

import jax
import jax.numpy as jnp
from jax import lax
from jax.experimental import pallas as pl
from jax.experimental.pallas import tpu as pltpu


# ----------------------------------------------------------------------------
# One-off parameter preparation (cache the result; do NOT redo per forward)
# ----------------------------------------------------------------------------
def _pack(arrays, dtype, row_align):
    """Row-wise pack 2-D arrays into one buffer; returns (buf, ((off,r,c),...)).

    Each segment starts on a `row_align` sublane boundary so in-kernel static
    slices need no relayout.  Columns are padded to a common width.
    """
    col = max(a.shape[1] for a in arrays)
    parts, layout, off = [], [], 0
    for a in arrays:
        a = jnp.asarray(a, dtype)
        r, c = a.shape
        pad_r = (-r) % row_align
        parts.append(jnp.pad(a, ((0, pad_r), (0, col - c))))
        layout.append((off, r, c))
        off += r + pad_r
    return jnp.concatenate(parts, axis=0), tuple(layout)


def prepare_params(params):
    """Pack/transposes/casts done once (weights are static across calls)."""
    (w1ax, w1at, b1a, w2a, b2a, w3a, b3a,
     w1ex, w1ey, b1e, w2e, b2e, w3e) = [jnp.asarray(p, jnp.float32) for p in params]

    # Prologue (one-shot) params, f32.  w3e stored pre-transposed so the
    # in-kernel backward seed is a plain `onehot @ w3eT` contraction.
    pro, pro_layout = _pack(
        [w1ax, w1at, b1a, w2a, b2a, w3a, b3a, w1ex, b1e, b2e, w3e.T],
        jnp.float32, row_align=8)

    # Per-step loop matmul operands, pre-transposed copies included, cast to
    # bf16 here (single-pass MXU; accumulation stays f32 in the kernel).
    loop, loop_layout = _pack(
        [w1ey, w2e, w2e.T, w1ey.T], jnp.bfloat16, row_align=16)

    dims = dict(d_x=w1ax.shape[0], k=w1at.shape[0],
                hidden=w2a.shape[0], d_y=w3a.shape[1])
    return dict(pro=pro, loop=loop,
                pro_layout=pro_layout, loop_layout=loop_layout, dims=dims)


# ----------------------------------------------------------------------------
# Pallas kernel
# ----------------------------------------------------------------------------
def make_joint_ebm_kernel(dims, pro_layout, loop_layout, steps, lr, beta_reg):
    d_y, k = dims["d_y"], dims["k"]
    # d/dy of  beta_reg*sum_i mean_j y_ij^2  +  1e-4 * B * grad_pen
    #   = (2*beta_reg/d_y + 8e-4/d_y^3) * y     (see JointEBM.energy / forward)
    c_reg = 2.0 * beta_reg / float(d_y) + 8.0e-4 / (float(d_y) ** 3)

    (W1AX, W1AT, B1A, W2A, B2A, W3A, B3A, W1EX, B1E, B2E, W3ET) = pro_layout
    (W1EY, W2E, W2ET, W1EYT) = loop_layout

    def view(ref, ent):
        off, r, c = ent                       # static python ints
        return ref[off:off + r, :c]

    def kernel(x_ref, t_ref, pro_ref, loop_ref, y_ref):
        f32, bf16 = jnp.float32, jnp.bfloat16
        dot = lambda a, b: jnp.dot(a, b, preferred_element_type=f32)

        x = x_ref[...]                                        # (B, d_x) f32
        B = x.shape[0]

        # ----------------- prologue (all one-shot, f32) ----------------------
        # one_hot(clamp_min(t, 0), k) built in-kernel (iota + compare).
        t = jnp.maximum(t_ref[...], 0)                        # (B, 1) int32
        toh = (lax.broadcasted_iota(jnp.int32, (B, k), 1) == t).astype(f32)

        # init_y : aux_mu([x, one_hot(t)])
        aux_b = dot(toh, view(pro_ref, W1AT)) + view(pro_ref, B1A)      # (B,H)
        h1 = jnp.maximum(dot(x, view(pro_ref, W1AX)) + aux_b, 0.0)
        h2 = jnp.maximum(dot(h1, view(pro_ref, W2A)) + view(pro_ref, B2A), 0.0)
        y0 = dot(h2, view(pro_ref, W3A)) + view(pro_ref, B3A)           # (B,d_y)

        # Loop-invariant pieces of the energy net and its backward seed.
        z1_x = dot(x, view(pro_ref, W1EX)) + view(pro_ref, B1E)         # (B,H)
        g2_base = dot(toh, view(pro_ref, W3ET))                         # (B,H)
        # Hoisted (1,H)->(B,H) broadcast (JAX does not CSE broadcast_in_dim).
        b2e = jnp.broadcast_to(view(pro_ref, B2E), z1_x.shape)          # (B,H)

        # bf16 loop weights (pre-cast + pre-transposed at param-prep time).
        w1ey = view(loop_ref, W1EY)      # (d_y, H)  bf16
        w2e = view(loop_ref, W2E)        # (H, H)    bf16
        w2eT = view(loop_ref, W2ET)      # (H, H)    bf16  = W2e.T
        w1eyT = view(loop_ref, W1EYT)    # (H, d_y)  bf16  = W1e_y.T

        # ------------------- energy-descent loop -----------------------------
        def step(_, carry):
            y, lr_eff = carry                                 # f32 (B,d_y),(1,1)
            # forward through energy_net (pre-activations only; MXU in bf16,
            # f32 accumulate; all elementwise math stays f32 for v5e's VPU).
            z1 = z1_x + dot(y.astype(bf16), w1ey)             # (B,H) f32
            a1 = jnp.maximum(z1, 0.0)
            z2 = dot(a1.astype(bf16), w2e) + b2e              # (B,H) f32
            # backward of sum_i E[i, t_i] w.r.t. y (upstream grad = one-hot)
            g2 = jnp.where(z2 > 0.0, g2_base, 0.0)            # (B,H) f32
            g1 = jnp.where(z1 > 0.0, dot(g2.astype(bf16), w2eT), 0.0)
            g_y = dot(g1.astype(bf16), w1eyT) + c_reg * y     # (B,d_y) f32

            # squared global Frobenius norm (no sqrt / scalar extraction)
            gsq = jnp.sum(g_y * g_y, keepdims=True)           # (1,1)
            # masked step size instead of a full-tensor select of y
            y = jnp.clip(y - lr_eff * g_y, -10.0, 10.0)
            # early stop: update-then-check, zero the step size for good once
            # ||g|| < 1e-3  (gsq < 1e-6); clip is idempotent afterwards.
            lr_eff = jnp.where(gsq < 1e-6, 0.0, lr_eff)
            return y, lr_eff

        y_final, _ = lax.fori_loop(
            0, steps, step, (y0, jnp.full((1, 1), lr, f32)), unroll=True)
        y_ref[...] = y_final

    return kernel


# ----------------------------------------------------------------------------
# Wrapper — no XLA precompute on the critical path (only a trivial t reshape)
# ----------------------------------------------------------------------------
def joint_ebm_forward(x, t, prepped, *, steps=20, lr=0.1, beta_reg=1e-4):
    dims = prepped["dims"]
    B = x.shape[0]
    d_y = dims["d_y"]

    x = x.astype(jnp.float32)
    t2d = t.reshape(B, 1).astype(jnp.int32)     # (B,1) int32 VMEM input

    kernel = make_joint_ebm_kernel(dims, prepped["pro_layout"],
                                   prepped["loop_layout"], steps, lr, beta_reg)

    in_arrays = (x, t2d, prepped["pro"], prepped["loop"])

    def full_spec(a):
        return pl.BlockSpec(a.shape, lambda i: (0,) * a.ndim)

    # Whole batch in one grid step: the early-stop criterion (grad norm) is a
    # global reduction over the full batch, so the batch must not be split.
    return pl.pallas_call(
        kernel,
        out_shape=jax.ShapeDtypeStruct((B, d_y), jnp.float32),
        grid_spec=pltpu.PrefetchScalarGridSpec(
            num_scalar_prefetch=0,
            grid=(1,),
            in_specs=[full_spec(a) for a in in_arrays],
            out_specs=pl.BlockSpec((B, d_y), lambda i: (0, 0)),
        ),
        compiler_params=pltpu.CompilerParams(
            dimension_semantics=("arbitrary",)),
    )(*in_arrays)


# ----------------------------------------------------------------------------
# Deterministic parameter init (PyTorch-Linear-style uniform bounds)
# ----------------------------------------------------------------------------
def init_params(key, d_x, d_y, k, hidden):
    def linear(kk, fan_in, fan_out):
        k1, k2 = jax.random.split(kk)
        bound = 1.0 / math.sqrt(fan_in)
        W = jax.random.uniform(k1, (fan_in, fan_out), jnp.float32, -bound, bound)
        b = jax.random.uniform(k2, (1, fan_out), jnp.float32, -bound, bound)
        return W, b

    ks = jax.random.split(key, 6)
    # aux_mu : [d_x + k, hidden, hidden, d_y]
    W1a, b1a = linear(ks[0], d_x + k, hidden)
    W2a, b2a = linear(ks[1], hidden, hidden)
    W3a, b3a = linear(ks[2], hidden, d_y)
    # energy_net : [d_x + d_y, hidden, hidden, k]
    W1e, b1e = linear(ks[3], d_x + d_y, hidden)
    W2e, b2e = linear(ks[4], hidden, hidden)
    W3e, _b3e = linear(ks[5], hidden, k)   # b3e is constant w.r.t. y -> unused

    return (W1a[:d_x], W1a[d_x:], b1a, W2a, b2a, W3a, b3a,
            W1e[:d_x], W1e[d_x:], b1e, W2e, b2e, W3e)


# ----------------------------------------------------------------------------
# Pure-JAX reference (uses jax.grad, independent of the hand-derived backprop).
# loop_matmul_dtype=None  -> exact f32 module semantics (precision=HIGHEST).
# loop_matmul_dtype=bf16  -> same bf16 quantisation of the in-loop matmul
#                            operands as the kernel (tight structural check).
# ----------------------------------------------------------------------------
def ref_forward(x, toh, params, *, steps=20, lr=0.1, beta_reg=1e-4,
                loop_matmul_dtype=None):
    (w1ax, w1at, b1a, w2a, b2a, w3a, b3a,
     w1ex, w1ey, b1e, w2e, b2e, w3e) = params
    hi = lax.Precision.HIGHEST
    dot = lambda a, b: jnp.dot(a, b, precision=hi,
                               preferred_element_type=jnp.float32)

    h1 = jax.nn.relu(dot(x, w1ax) + dot(toh, w1at) + b1a)
    h2 = jax.nn.relu(dot(h1, w2a) + b2a)
    y = dot(h2, w3a) + b3a

    cast = (lambda a: a) if loop_matmul_dtype is None else \
           (lambda a: a.astype(loop_matmul_dtype))
    loop_prec = hi if loop_matmul_dtype is None else None
    ldot = lambda a, b: jnp.dot(a, b, precision=loop_prec,
                                preferred_element_type=jnp.float32)
    w1ey_c, w2e_c = cast(w1ey), cast(w2e)
    z1_x = dot(x, w1ex) + b1e                       # same grouping as kernel

    def selected_energy_sum(yy):
        z1 = z1_x + ldot(cast(yy), w1ey_c)
        a1 = jax.nn.relu(z1)
        a2 = jax.nn.relu(ldot(cast(a1), w2e_c) + b2e)
        base_E = dot(a2, w3e)                       # last-layer bias drops out
        l2 = jnp.mean(yy ** 2, axis=-1, keepdims=True)
        grad_y = jax.grad(
            lambda q: jnp.sum(jnp.mean(q ** 2, axis=-1, keepdims=True)))(yy)
        grad_pen = jnp.mean(grad_y ** 2)
        E = base_E + beta_reg * l2 + 1e-4 * grad_pen
        return jnp.sum(E * toh)                     # gather(t) + sum

    for _ in range(steps):
        g = jax.grad(selected_energy_sum)(y)
        y = jnp.clip(y - lr * g, -10.0, 10.0)
        if float(jnp.linalg.norm(g)) < 1e-3:
            break
    return y


# ----------------------------------------------------------------------------
if __name__ == "__main__":
    B, d_x, d_y, k, hidden = 8, 16, 8, 2, 32

    key = jax.random.PRNGKey(0)
    kx, kt, kp = jax.random.split(key, 3)
    x = jax.random.normal(kx, (B, d_x), jnp.float32)
    t = jax.random.randint(kt, (B,), 0, k, jnp.int32)
    params = init_params(kp, d_x, d_y, k, hidden)

    prepped = prepare_params(params)        # one-off: pack / transpose / cast
    y = joint_ebm_forward(x, t, prepped, steps=20, lr=0.1, beta_reg=1e-4)
    jax.block_until_ready(y)

    toh = jax.nn.one_hot(jnp.maximum(t, 0), k, dtype=jnp.float32)
    y_ref_bf16 = ref_forward(x, toh, params, steps=20, lr=0.1, beta_reg=1e-4,
                             loop_matmul_dtype=jnp.bfloat16)
    y_ref_f32 = ref_forward(x, toh, params, steps=20, lr=0.1, beta_reg=1e-4)

    assert y.shape == (B, d_y) and y.dtype == jnp.float32
    assert bool(jnp.all(jnp.isfinite(y)))
    # Tight check vs a jax.grad reference that applies the SAME bf16
    # quantisation to the in-loop matmul operands: validates the hand-derived
    # backprop and kernel wiring (relu masks match; only backward-rounding
    # differences remain).
    assert bool(jnp.allclose(y, y_ref_bf16, atol=2e-2, rtol=2e-2)), (y, y_ref_bf16)
    # Looser check vs pure-f32 module semantics: bounds the drift caused by
    # bf16 matmuls over 20 descent steps of a piecewise-linear energy (relu
    # mask flips near zero make a tight f32 comparison impossible by design).
    assert bool(jnp.allclose(y, y_ref_f32, atol=1e-1, rtol=1e-1)), (y, y_ref_f32)
    print("KERNEL_OK")
</pallas_src>

<mosaic_0001>
module attributes {stable_mosaic.version = 11 : i64} {
  func.func @kernel(%arg0: i32, %arg1: memref<8x16xf32, #tpu.memory_space<vmem>>, %arg2: memref<8x1xi32, #tpu.memory_space<vmem>>, %arg3: memref<152x32xf32, #tpu.memory_space<vmem>>, %arg4: memref<112x32xbf16, #tpu.memory_space<vmem>>, %arg5: memref<8x8xf32, #tpu.memory_space<vmem>>) attributes {dimension_semantics = [#tpu.dimension_semantics<arbitrary>], iteration_bounds = array<i64: 1>, scalar_prefetch = 0 : i64, scratch_operands = 0 : i64, tpu.core_type = #tpu.core_type<tc>, window_params = [{pipeline_mode = #tpu.pipeline_mode<synchronous>, transform_indices = @transform_0, window_bounds = array<i64: 8, 16>}, {pipeline_mode = #tpu.pipeline_mode<synchronous>, transform_indices = @transform_1, window_bounds = array<i64: 8, 1>}, {pipeline_mode = #tpu.pipeline_mode<synchronous>, transform_indices = @transform_2, window_bounds = array<i64: 152, 32>}, {pipeline_mode = #tpu.pipeline_mode<synchronous>, transform_indices = @transform_3, window_bounds = array<i64: 112, 32>}, {pipeline_mode = #tpu.pipeline_mode<synchronous>, transform_indices = @transform_4, window_bounds = array<i64: 8, 8>}]} {
    %c0 = arith.constant 0 : index
    %c0_0 = arith.constant 0 : index
    %0 = vector.load %arg1[%c0, %c0_0] : memref<8x16xf32, #tpu.memory_space<vmem>>, vector<8x16xf32>
    %c0_1 = arith.constant 0 : index
    %c0_2 = arith.constant 0 : index
    %1 = vector.load %arg2[%c0_1, %c0_2] : memref<8x1xi32, #tpu.memory_space<vmem>>, vector<8x1xi32>
    %c0_i32 = arith.constant 0 : i32
    %2 = vector.broadcast %c0_i32 : i32 to vector<8x1xi32>
    %3 = arith.maxsi %1, %2 : vector<8x1xi32>
    %4 = tpu.iota {dimensions = array<i32: 1>} : vector<8x2xi32>
    %5 = vector.broadcast %3 : vector<8x1xi32> to vector<8x2xi32>
    %6 = arith.cmpi eq, %4, %5 : vector<8x2xi32>
    %7 = arith.extui %6 : vector<8x2xi1> to vector<8x2xi32>
    %8 = arith.sitofp %7 : vector<8x2xi32> to vector<8x2xf32>
    %c16 = arith.constant 16 : index
    %c0_3 = arith.constant 0 : index
    %9 = vector.load %arg3[%c16, %c0_3] : memref<152x32xf32, #tpu.memory_space<vmem>>, vector<2x32xf32>
    %cst = arith.constant dense<0.000000e+00> : vector<8x32xf32>
    %10 = tpu.matmul %8, %9, %cst {dimension_numbers = #tpu.dot_dimension_numbers<[1], [0], [0], [1], [0, 0, 1, 1], [], []>} : vector<8x2xf32>, vector<2x32xf32>, vector<8x32xf32> -> vector<8x32xf32>
    %c24 = arith.constant 24 : index
    %c0_4 = arith.constant 0 : index
    %11 = vector.load %arg3[%c24, %c0_4] : memref<152x32xf32, #tpu.memory_space<vmem>>, vector<1x32xf32>
    %12 = vector.broadcast %11 : vector<1x32xf32> to vector<8x32xf32>
    %13 = arith.addf %10, %12 : vector<8x32xf32>
    %c0_5 = arith.constant 0 : index
    %c0_6 = arith.constant 0 : index
    %14 = vector.load %arg3[%c0_5, %c0_6] : memref<152x32xf32, #tpu.memory_space<vmem>>, vector<16x32xf32>
    %cst_7 = arith.constant dense<0.000000e+00> : vector<8x32xf32>
    %15 = tpu.matmul %0, %14, %cst_7 {dimension_numbers = #tpu.dot_dimension_numbers<[1], [0], [0], [1], [0, 0, 1, 1], [], []>} : vector<8x16xf32>, vector<16x32xf32>, vector<8x32xf32> -> vector<8x32xf32>
    %16 = arith.addf %15, %13 : vector<8x32xf32>
    %cst_8 = arith.constant 0.000000e+00 : f32
    %17 = vector.broadcast %cst_8 : f32 to vector<8x32xf32>
    %18 = arith.maximumf %16, %17 : vector<8x32xf32>
    %c32 = arith.constant 32 : index
    %c0_9 = arith.constant 0 : index
    %19 = vector.load %arg3[%c32, %c0_9] : memref<152x32xf32, #tpu.memory_space<vmem>>, vector<32x32xf32>
    %cst_10 = arith.constant dense<0.000000e+00> : vector<8x32xf32>
    %20 = tpu.matmul %18, %19, %cst_10 {dimension_numbers = #tpu.dot_dimension_numbers<[1], [0], [0], [1], [0, 0, 1, 1], [], []>} : vector<8x32xf32>, vector<32x32xf32>, vector<8x32xf32> -> vector<8x32xf32>
    %c64 = arith.constant 64 : index
    %c0_11 = arith.constant 0 : index
    %21 = vector.load %arg3[%c64, %c0_11] : memref<152x32xf32, #tpu.memory_space<vmem>>, vector<1x32xf32>
    %22 = vector.broadcast %21 : vector<1x32xf32> to vector<8x32xf32>
    %23 = arith.addf %20, %22 : vector<8x32xf32>
    %cst_12 = arith.constant 0.000000e+00 : f32
    %24 = vector.broadcast %cst_12 : f32 to vector<8x32xf32>
    %25 = arith.maximumf %23, %24 : vector<8x32xf32>
    %c72 = arith.constant 72 : index
    %c0_13 = arith.constant 0 : index
    %26 = vector.load %arg3[%c72, %c0_13] : memref<152x32xf32, #tpu.memory_space<vmem>>, vector<32x8xf32>
    %cst_14 = arith.constant dense<0.000000e+00> : vector<8x8xf32>
    %27 = tpu.matmul %25, %26, %cst_14 {dimension_numbers = #tpu.dot_dimension_numbers<[1], [0], [0], [1], [0, 0, 1, 1], [], []>} : vector<8x32xf32>, vector<32x8xf32>, vector<8x8xf32> -> vector<8x8xf32>
    %c104 = arith.constant 104 : index
    %c0_15 = arith.constant 0 : index
    %28 = vector.load %arg3[%c104, %c0_15] : memref<152x32xf32, #tpu.memory_space<vmem>>, vector<1x8xf32>
    %29 = vector.broadcast %28 : vector<1x8xf32> to vector<8x8xf32>
    %30 = arith.addf %27, %29 : vector<8x8xf32>
    %c112 = arith.constant 112 : index
    %c0_16 = arith.constant 0 : index
    %31 = vector.load %arg3[%c112, %c0_16] : memref<152x32xf32, #tpu.memory_space<vmem>>, vector<16x32xf32>
    %cst_17 = arith.constant dense<0.000000e+00> : vector<8x32xf32>
    %32 = tpu.matmul %0, %31, %cst_17 {dimension_numbers = #tpu.dot_dimension_numbers<[1], [0], [0], [1], [0, 0, 1, 1], [], []>} : vector<8x16xf32>, vector<16x32xf32>, vector<8x32xf32> -> vector<8x32xf32>
    %c128 = arith.constant 128 : index
    %c0_18 = arith.constant 0 : index
    %33 = vector.load %arg3[%c128, %c0_18] : memref<152x32xf32, #tpu.memory_space<vmem>>, vector<1x32xf32>
    %34 = vector.broadcast %33 : vector<1x32xf32> to vector<8x32xf32>
    %35 = arith.addf %32, %34 : vector<8x32xf32>
    %c144 = arith.constant 144 : index
    %c0_19 = arith.constant 0 : index
    %36 = vector.load %arg3[%c144, %c0_19] : memref<152x32xf32, #tpu.memory_space<vmem>>, vector<2x32xf32>
    %cst_20 = arith.constant dense<0.000000e+00> : vector<8x32xf32>
    %37 = tpu.matmul %8, %36, %cst_20 {dimension_numbers = #tpu.dot_dimension_numbers<[1], [0], [0], [1], [0, 0, 1, 1], [], []>} : vector<8x2xf32>, vector<2x32xf32>, vector<8x32xf32> -> vector<8x32xf32>
    %c136 = arith.constant 136 : index
    %c0_21 = arith.constant 0 : index
    %38 = vector.load %arg3[%c136, %c0_21] : memref<152x32xf32, #tpu.memory_space<vmem>>, vector<1x32xf32>
    %39 = vector.shape_cast %38 : vector<1x32xf32> to vector<1x32xf32>
    %40 = vector.broadcast %39 : vector<1x32xf32> to vector<8x32xf32>
    %c0_22 = arith.constant 0 : index
    %c0_23 = arith.constant 0 : index
    %41 = vector.load %arg4[%c0_22, %c0_23] : memref<112x32xbf16, #tpu.memory_space<vmem>>, vector<8x32xbf16>
    %c16_24 = arith.constant 16 : index
    %c0_25 = arith.constant 0 : index
    %42 = vector.load %arg4[%c16_24, %c0_25] : memref<112x32xbf16, #tpu.memory_space<vmem>>, vector<32x32xbf16>
    %c48 = arith.constant 48 : index
    %c0_26 = arith.constant 0 : index
    %43 = vector.load %arg4[%c48, %c0_26] : memref<112x32xbf16, #tpu.memory_space<vmem>>, vector<32x32xbf16>
    %c80 = arith.constant 80 : index
    %c0_27 = arith.constant 0 : index
    %44 = vector.load %arg4[%c80, %c0_27] : memref<112x32xbf16, #tpu.memory_space<vmem>>, vector<32x8xbf16>
    %cst_28 = arith.constant 1.000000e-01 : f32
    %45 = vector.broadcast %cst_28 : f32 to vector<1x1xf32>
    %c0_i32_29 = arith.constant 0 : i32
    %46 = arith.truncf %30 : vector<8x8xf32> to vector<8x8xbf16>
    %cst_30 = arith.constant dense<0.000000e+00> : vector<8x32xf32>
    %47 = tpu.matmul %46, %41, %cst_30 {dimension_numbers = #tpu.dot_dimension_numbers<[1], [0], [0], [1], [0, 0, 1, 1], [], []>} : vector<8x8xbf16>, vector<8x32xbf16>, vector<8x32xf32> -> vector<8x32xf32>
    %48 = arith.addf %35, %47 : vector<8x32xf32>
    %cst_31 = arith.constant 0.000000e+00 : f32
    %49 = vector.broadcast %cst_31 : f32 to vector<8x32xf32>
    %50 = arith.maximumf %48, %49 : vector<8x32xf32>
    %51 = arith.truncf %50 : vector<8x32xf32> to vector<8x32xbf16>
    %cst_32 = arith.constant dense<0.000000e+00> : vector<8x32xf32>
    %52 = tpu.matmul %51, %42, %cst_32 {dimension_numbers = #tpu.dot_dimension_numbers<[1], [0], [0], [1], [0, 0, 1, 1], [], []>} : vector<8x32xbf16>, vector<32x32xbf16>, vector<8x32xf32> -> vector<8x32xf32>
    %53 = arith.addf %52, %40 : vector<8x32xf32>
    %cst_33 = arith.constant 0.000000e+00 : f32
    %54 = vector.broadcast %cst_33 : f32 to vector<8x32xf32>
    %55 = arith.cmpf ogt, %53, %54 : vector<8x32xf32>
    %cst_34 = arith.constant 0.000000e+00 : f32
    %56 = vector.broadcast %cst_34 : f32 to vector<8x32xf32>
    %57 = arith.select %55, %37, %56 : vector<8x32xi1>, vector<8x32xf32>
    %cst_35 = arith.constant 0.000000e+00 : f32
    %58 = vector.broadcast %cst_35 : f32 to vector<8x32xf32>
    %59 = arith.cmpf ogt, %48, %58 : vector<8x32xf32>
    %60 = arith.truncf %57 : vector<8x32xf32> to vector<8x32xbf16>
    %cst_36 = arith.constant dense<0.000000e+00> : vector<8x32xf32>
    %61 = tpu.matmul %60, %43, %cst_36 {dimension_numbers = #tpu.dot_dimension_numbers<[1], [0], [0], [1], [0, 0, 1, 1], [], []>} : vector<8x32xbf16>, vector<32x32xbf16>, vector<8x32xf32> -> vector<8x32xf32>
    %cst_37 = arith.constant 0.000000e+00 : f32
    %62 = vector.broadcast %cst_37 : f32 to vector<8x32xf32>
    %63 = arith.select %59, %61, %62 : vector<8x32xi1>, vector<8x32xf32>
    %64 = arith.truncf %63 : vector<8x32xf32> to vector<8x32xbf16>
    %cst_38 = arith.constant dense<0.000000e+00> : vector<8x8xf32>
    %65 = tpu.matmul %64, %44, %cst_38 {dimension_numbers = #tpu.dot_dimension_numbers<[1], [0], [0], [1], [0, 0, 1, 1], [], []>} : vector<8x32xbf16>, vector<32x8xbf16>, vector<8x8xf32> -> vector<8x8xf32>
    %cst_39 = arith.constant 2.656250e-05 : f32
    %66 = vector.broadcast %cst_39 : f32 to vector<8x8xf32>
    %67 = arith.mulf %66, %30 : vector<8x8xf32>
    %68 = arith.addf %65, %67 : vector<8x8xf32>
    %69 = arith.mulf %68, %68 : vector<8x8xf32>
    %70 = vector.shape_cast %69 : vector<8x8xf32> to vector<1x8x8xf32>
    %cst_40 = arith.constant dense<0.000000e+00> : vector<1xf32>
    %71 = vector.multi_reduction <add>, %70, %cst_40 [1, 2] : vector<1x8x8xf32> to vector<1xf32>
    %72 = vector.shape_cast %71 : vector<1xf32> to vector<1x1x1xf32>
    %73 = vector.extract %72[0, 0, 0] : f32 from vector<1x1x1xf32>
    %74 = vector.broadcast %73 : f32 to vector<1x1xf32>
    %75 = vector.broadcast %45 : vector<1x1xf32> to vector<8x8xf32>
    %76 = arith.mulf %75, %68 : vector<8x8xf32>
    %77 = arith.subf %30, %76 : vector<8x8xf32>
    %cst_41 = arith.constant -1.000000e+01 : f32
    %cst_42 = arith.constant 1.000000e+01 : f32
    %78 = vector.broadcast %cst_41 : f32 to vector<8x8xf32>
    %79 = arith.maximumf %78, %77 : vector<8x8xf32>
    %80 = vector.broadcast %cst_42 : f32 to vector<8x8xf32>
    %81 = arith.minimumf %80, %79 : vector<8x8xf32>
    %cst_43 = arith.constant 9.99999997E-7 : f32
    %82 = vector.broadcast %cst_43 : f32 to vector<1x1xf32>
    %83 = arith.cmpf olt, %74, %82 : vector<1x1xf32>
    %cst_44 = arith.constant 0.000000e+00 : f32
    %84 = vector.broadcast %cst_44 : f32 to vector<1x1xf32>
    %85 = arith.select %83, %84, %45 : vector<1x1xi1>, vector<1x1xf32>
    %c1_i32 = arith.constant 1 : i32
    %86 = arith.truncf %81 : vector<8x8xf32> to vector<8x8xbf16>
    %cst_45 = arith.constant dense<0.000000e+00> : vector<8x32xf32>
    %87 = tpu.matmul %86, %41, %cst_45 {dimension_numbers = #tpu.dot_dimension_numbers<[1], [0], [0], [1], [0, 0, 1, 1], [], []>} : vector<8x8xbf16>, vector<8x32xbf16>, vector<8x32xf32> -> vector<8x32xf32>
    %88 = arith.addf %35, %87 : vector<8x32xf32>
    %cst_46 = arith.constant 0.000000e+00 : f32
    %89 = vector.broadcast %cst_46 : f32 to vector<8x32xf32>
    %90 = arith.maximumf %88, %89 : vector<8x32xf32>
    %91 = arith.truncf %90 : vector<8x32xf32> to vector<8x32xbf16>
    %cst_47 = arith.constant dense<0.000000e+00> : vector<8x32xf32>
    %92 = tpu.matmul %91, %42, %cst_47 {dimension_numbers = #tpu.dot_dimension_numbers<[1], [0], [0], [1], [0, 0, 1, 1], [], []>} : vector<8x32xbf16>, vector<32x32xbf16>, vector<8x32xf32> -> vector<8x32xf32>
    %93 = arith.addf %92, %40 : vector<8x32xf32>
    %cst_48 = arith.constant 0.000000e+00 : f32
    %94 = vector.broadcast %cst_48 : f32 to vector<8x32xf32>
    %95 = arith.cmpf ogt, %93, %94 : vector<8x32xf32>
    %cst_49 = arith.constant 0.000000e+00 : f32
    %96 = vector.broadcast %cst_49 : f32 to vector<8x32xf32>
    %97 = arith.select %95, %37, %96 : vector<8x32xi1>, vector<8x32xf32>
    %cst_50 = arith.constant 0.000000e+00 : f32
    %98 = vector.broadcast %cst_50 : f32 to vector<8x32xf32>
    %99 = arith.cmpf ogt, %88, %98 : vector<8x32xf32>
    %100 = arith.truncf %97 : vector<8x32xf32> to vector<8x32xbf16>
    %cst_51 = arith.constant dense<0.000000e+00> : vector<8x32xf32>
    %101 = tpu.matmul %100, %43, %cst_51 {dimension_numbers = #tpu.dot_dimension_numbers<[1], [0], [0], [1], [0, 0, 1, 1], [], []>} : vector<8x32xbf16>, vector<32x32xbf16>, vector<8x32xf32> -> vector<8x32xf32>
    %cst_52 = arith.constant 0.000000e+00 : f32
    %102 = vector.broadcast %cst_52 : f32 to vector<8x32xf32>
    %103 = arith.select %99, %101, %102 : vector<8x32xi1>, vector<8x32xf32>
    %104 = arith.truncf %103 : vector<8x32xf32> to vector<8x32xbf16>
    %cst_53 = arith.constant dense<0.000000e+00> : vector<8x8xf32>
    %105 = tpu.matmul %104, %44, %cst_53 {dimension_numbers = #tpu.dot_dimension_numbers<[1], [0], [0], [1], [0, 0, 1, 1], [], []>} : vector<8x32xbf16>, vector<32x8xbf16>, vector<8x8xf32> -> vector<8x8xf32>
    %cst_54 = arith.constant 2.656250e-05 : f32
    %106 = vector.broadcast %cst_54 : f32 to vector<8x8xf32>
    %107 = arith.mulf %106, %81 : vector<8x8xf32>
    %108 = arith.addf %105, %107 : vector<8x8xf32>
    %109 = arith.mulf %108, %108 : vector<8x8xf32>
    %110 = vector.shape_cast %109 : vector<8x8xf32> to vector<1x8x8xf32>
    %cst_55 = arith.constant dense<0.000000e+00> : vector<1xf32>
    %111 = vector.multi_reduction <add>, %110, %cst_55 [1, 2] : vector<1x8x8xf32> to vector<1xf32>
    %112 = vector.shape_cast %111 : vector<1xf32> to vector<1x1x1xf32>
    %113 = vector.extract %112[0, 0, 0] : f32 from vector<1x1x1xf32>
    %114 = vector.broadcast %113 : f32 to vector<1x1xf32>
    %115 = vector.broadcast %85 : vector<1x1xf32> to vector<8x8xf32>
    %116 = arith.mulf %115, %108 : vector<8x8xf32>
    %117 = arith.subf %81, %116 : vector<8x8xf32>
    %cst_56 = arith.constant -1.000000e+01 : f32
    %cst_57 = arith.constant 1.000000e+01 : f32
    %118 = vector.broadcast %cst_56 : f32 to vector<8x8xf32>
    %119 = arith.maximumf %118, %117 : vector<8x8xf32>
    %120 = vector.broadcast %cst_57 : f32 to vector<8x8xf32>
    %121 = arith.minimumf %120, %119 : vector<8x8xf32>
    %cst_58 = arith.constant 9.99999997E-7 : f32
    %122 = vector.broadcast %cst_58 : f32 to vector<1x1xf32>
    %123 = arith.cmpf olt, %114, %122 : vector<1x1xf32>
    %cst_59 = arith.constant 0.000000e+00 : f32
    %124 = vector.broadcast %cst_59 : f32 to vector<1x1xf32>
    %125 = arith.select %123, %124, %85 : vector<1x1xi1>, vector<1x1xf32>
    %c2_i32 = arith.constant 2 : i32
    %126 = arith.truncf %121 : vector<8x8xf32> to vector<8x8xbf16>
    %cst_60 = arith.constant dense<0.000000e+00> : vector<8x32xf32>
    %127 = tpu.matmul %126, %41, %cst_60 {dimension_numbers = #tpu.dot_dimension_numbers<[1], [0], [0], [1], [0, 0, 1, 1], [], []>} : vector<8x8xbf16>, vector<8x32xbf16>, vector<8x32xf32> -> vector<8x32xf32>
    %128 = arith.addf %35, %127 : vector<8x32xf32>
    %cst_61 = arith.constant 0.000000e+00 : f32
    %129 = vector.broadcast %cst_61 : f32 to vector<8x32xf32>
    %130 = arith.maximumf %128, %129 : vector<8x32xf32>
    %131 = arith.truncf %130 : vector<8x32xf32> to vector<8x32xbf16>
    %cst_62 = arith.constant dense<0.000000e+00> : vector<8x32xf32>
    %132 = tpu.matmul %131, %42, %cst_62 {dimension_numbers = #tpu.dot_dimension_numbers<[1], [0], [0], [1], [0, 0, 1, 1], [], []>} : vector<8x32xbf16>, vector<32x32xbf16>, vector<8x32xf32> -> vector<8x32xf32>
    %133 = arith.addf %132, %40 : vector<8x32xf32>
    %cst_63 = arith.constant 0.000000e+00 : f32
    %134 = vector.broadcast %cst_63 : f32 to vector<8x32xf32>
    %135 = arith.cmpf ogt, %133, %134 : vector<8x32xf32>
    %cst_64 = arith.constant 0.000000e+00 : f32
    %136 = vector.broadcast %cst_64 : f32 to vector<8x32xf32>
    %137 = arith.select %135, %37, %136 : vector<8x32xi1>, vector<8x32xf32>
    %cst_65 = arith.constant 0.000000e+00 : f32
    %138 = vector.broadcast %cst_65 : f32 to vector<8x32xf32>
    %139 = arith.cmpf ogt, %128, %138 : vector<8x32xf32>
    %140 = arith.truncf %137 : vector<8x32xf32> to vector<8x32xbf16>
    %cst_66 = arith.constant dense<0.000000e+00> : vector<8x32xf32>
    %141 = tpu.matmul %140, %43, %cst_66 {dimension_numbers = #tpu.dot_dimension_numbers<[1], [0], [0], [1], [0, 0, 1, 1], [], []>} : vector<8x32xbf16>, vector<32x32xbf16>, vector<8x32xf32> -> vector<8x32xf32>
    %cst_67 = arith.constant 0.000000e+00 : f32
    %142 = vector.broadcast %cst_67 : f32 to vector<8x32xf32>
    %143 = arith.select %139, %141, %142 : vector<8x32xi1>, vector<8x32xf32>
    %144 = arith.truncf %143 : vector<8x32xf32> to vector<8x32xbf16>
    %cst_68 = arith.constant dense<0.000000e+00> : vector<8x8xf32>
    %145 = tpu.matmul %144, %44, %cst_68 {dimension_numbers = #tpu.dot_dimension_numbers<[1], [0], [0], [1], [0, 0, 1, 1], [], []>} : vector<8x32xbf16>, vector<32x8xbf16>, vector<8x8xf32> -> vector<8x8xf32>
    %cst_69 = arith.constant 2.656250e-05 : f32
    %146 = vector.broadcast %cst_69 : f32 to vector<8x8xf32>
    %147 = arith.mulf %146, %121 : vector<8x8xf32>
    %148 = arith.addf %145, %147 : vector<8x8xf32>
    %149 = arith.mulf %148, %148 : vector<8x8xf32>
    %150 = vector.shape_cast %149 : vector<8x8xf32> to vector<1x8x8xf32>
    %cst_70 = arith.constant dense<0.000000e+00> : vector<1xf32>
    %151 = vector.multi_reduction <add>, %150, %cst_70 [1, 2] : vector<1x8x8xf32> to vector<1xf32>
    %152 = vector.shape_cast %151 : vector<1xf32> to vector<1x1x1xf32>
    %153 = vector.extract %152[0, 0, 0] : f32 from vector<1x1x1xf32>
    %154 = vector.broadcast %153 : f32 to vector<1x1xf32>
    %155 = vector.broadcast %125 : vector<1x1xf32> to vector<8x8xf32>
    %156 = arith.mulf %155, %148 : vector<8x8xf32>
    %157 = arith.subf %121, %156 : vector<8x8xf32>
    %cst_71 = arith.constant -1.000000e+01 : f32
    %cst_72 = arith.constant 1.000000e+01 : f32
    %158 = vector.broadcast %cst_71 : f32 to vector<8x8xf32>
    %159 = arith.maximumf %158, %157 : vector<8x8xf32>
    %160 = vector.broadcast %cst_72 : f32 to vector<8x8xf32>
    %161 = arith.minimumf %160, %159 : vector<8x8xf32>
    %cst_73 = arith.constant 9.99999997E-7 : f32
    %162 = vector.broadcast %cst_73 : f32 to vector<1x1xf32>
    %163 = arith.cmpf olt, %154, %162 : vector<1x1xf32>
    %cst_74 = arith.constant 0.000000e+00 : f32
    %164 = vector.broadcast %cst_74 : f32 to vector<1x1xf32>
    %165 = arith.select %163, %164, %125 : vector<1x1xi1>, vector<1x1xf32>
    %c3_i32 = arith.constant 3 : i32
    %166 = arith.truncf %161 : vector<8x8xf32> to vector<8x8xbf16>
    %cst_75 = arith.constant dense<0.000000e+00> : vector<8x32xf32>
    %167 = tpu.matmul %166, %41, %cst_75 {dimension_numbers = #tpu.dot_dimension_numbers<[1], [0], [0], [1], [0, 0, 1, 1], [], []>} : vector<8x8xbf16>, vector<8x32xbf16>, vector<8x32xf32> -> vector<8x32xf32>
    %168 = arith.addf %35, %167 : vector<8x32xf32>
    %cst_76 = arith.constant 0.000000e+00 : f32
    %169 = vector.broadcast %cst_76 : f32 to vector<8x32xf32>
    %170 = arith.maximumf %168, %169 : vector<8x32xf32>
    %171 = arith.truncf %170 : vector<8x32xf32> to vector<8x32xbf16>
    %cst_77 = arith.constant dense<0.000000e+00> : vector<8x32xf32>
    %172 = tpu.matmul %171, %42, %cst_77 {dimension_numbers = #tpu.dot_dimension_numbers<[1], [0], [0], [1], [0, 0, 1, 1], [], []>} : vector<8x32xbf16>, vector<32x32xbf16>, vector<8x32xf32> -> vector<8x32xf32>
    %173 = arith.addf %172, %40 : vector<8x32xf32>
    %cst_78 = arith.constant 0.000000e+00 : f32
    %174 = vector.broadcast %cst_78 : f32 to vector<8x32xf32>
    %175 = arith.cmpf ogt, %173, %174 : vector<8x32xf32>
    %cst_79 = arith.constant 0.000000e+00 : f32
    %176 = vector.broadcast %cst_79 : f32 to vector<8x32xf32>
    %177 = arith.select %175, %37, %176 : vector<8x32xi1>, vector<8x32xf32>
    %cst_80 = arith.constant 0.000000e+00 : f32
    %178 = vector.broadcast %cst_80 : f32 to vector<8x32xf32>
    %179 = arith.cmpf ogt, %168, %178 : vector<8x32xf32>
    %180 = arith.truncf %177 : vector<8x32xf32> to vector<8x32xbf16>
    %cst_81 = arith.constant dense<0.000000e+00> : vector<8x32xf32>
    %181 = tpu.matmul %180, %43, %cst_81 {dimension_numbers = #tpu.dot_dimension_numbers<[1], [0], [0], [1], [0, 0, 1, 1], [], []>} : vector<8x32xbf16>, vector<32x32xbf16>, vector<8x32xf32> -> vector<8x32xf32>
    %cst_82 = arith.constant 0.000000e+00 : f32
    %182 = vector.broadcast %cst_82 : f32 to vector<8x32xf32>
    %183 = arith.select %179, %181, %182 : vector<8x32xi1>, vector<8x32xf32>
    %184 = arith.truncf %183 : vector<8x32xf32> to vector<8x32xbf16>
    %cst_83 = arith.constant dense<0.000000e+00> : vector<8x8xf32>
    %185 = tpu.matmul %184, %44, %cst_83 {dimension_numbers = #tpu.dot_dimension_numbers<[1], [0], [0], [1], [0, 0, 1, 1], [], []>} : vector<8x32xbf16>, vector<32x8xbf16>, vector<8x8xf32> -> vector<8x8xf32>
    %cst_84 = arith.constant 2.656250e-05 : f32
    %186 = vector.broadcast %cst_84 : f32 to vector<8x8xf32>
    %187 = arith.mulf %186, %161 : vector<8x8xf32>
    %188 = arith.addf %185, %187 : vector<8x8xf32>
    %189 = arith.mulf %188, %188 : vector<8x8xf32>
    %190 = vector.shape_cast %189 : vector<8x8xf32> to vector<1x8x8xf32>
    %cst_85 = arith.constant dense<0.000000e+00> : vector<1xf32>
    %191 = vector.multi_reduction <add>, %190, %cst_85 [1, 2] : vector<1x8x8xf32> to vector<1xf32>
    %192 = vector.shape_cast %191 : vector<1xf32> to vector<1x1x1xf32>
    %193 = vector.extract %192[0, 0, 0] : f32 from vector<1x1x1xf32>
    %194 = vector.broadcast %193 : f32 to vector<1x1xf32>
    %195 = vector.broadcast %165 : vector<1x1xf32> to vector<8x8xf32>
    %196 = arith.mulf %195, %188 : vector<8x8xf32>
    %197 = arith.subf %161, %196 : vector<8x8xf32>
    %cst_86 = arith.constant -1.000000e+01 : f32
    %cst_87 = arith.constant 1.000000e+01 : f32
    %198 = vector.broadcast %cst_86 : f32 to vector<8x8xf32>
    %199 = arith.maximumf %198, %197 : vector<8x8xf32>
    %200 = vector.broadcast %cst_87 : f32 to vector<8x8xf32>
    %201 = arith.minimumf %200, %199 : vector<8x8xf32>
    %cst_88 = arith.constant 9.99999997E-7 : f32
    %202 = vector.broadcast %cst_88 : f32 to vector<1x1xf32>
    %203 = arith.cmpf olt, %194, %202 : vector<1x1xf32>
    %cst_89 = arith.constant 0.000000e+00 : f32
    %204 = vector.broadcast %cst_89 : f32 to vector<1x1xf32>
    %205 = arith.select %203, %204, %165 : vector<1x1xi1>, vector<1x1xf32>
    %c4_i32 = arith.constant 4 : i32
    %206 = arith.truncf %201 : vector<8x8xf32> to vector<8x8xbf16>
    %cst_90 = arith.constant dense<0.000000e+00> : vector<8x32xf32>
    %207 = tpu.matmul %206, %41, %cst_90 {dimension_numbers = #tpu.dot_dimension_numbers<[1], [0], [0], [1], [0, 0, 1, 1], [], []>} : vector<8x8xbf16>, vector<8x32xbf16>, vector<8x32xf32> -> vector<8x32xf32>
    %208 = arith.addf %35, %207 : vector<8x32xf32>
    %cst_91 = arith.constant 0.000000e+00 : f32
    %209 = vector.broadcast %cst_91 : f32 to vector<8x32xf32>
    %210 = arith.maximumf %208, %209 : vector<8x32xf32>
    %211 = arith.truncf %210 : vector<8x32xf32> to vector<8x32xbf16>
    %cst_92 = arith.constant dense<0.000000e+00> : vector<8x32xf32>
    %212 = tpu.matmul %211, %42, %cst_92 {dimension_numbers = #tpu.dot_dimension_numbers<[1], [0], [0], [1], [0, 0, 1, 1], [], []>} : vector<8x32xbf16>, vector<32x32xbf16>, vector<8x32xf32> -> vector<8x32xf32>
    %213 = arith.addf %212, %40 : vector<8x32xf32>
    %cst_93 = arith.constant 0.000000e+00 : f32
    %214 = vector.broadcast %cst_93 : f32 to vector<8x32xf32>
    %215 = arith.cmpf ogt, %213, %214 : vector<8x32xf32>
    %cst_94 = arith.constant 0.000000e+00 : f32
    %216 = vector.broadcast %cst_94 : f32 to vector<8x32xf32>
    %217 = arith.select %215, %37, %216 : vector<8x32xi1>, vector<8x32xf32>
    %cst_95 = arith.constant 0.000000e+00 : f32
    %218 = vector.broadcast %cst_95 : f32 to vector<8x32xf32>
    %219 = arith.cmpf ogt, %208, %218 : vector<8x32xf32>
    %220 = arith.truncf %217 : vector<8x32xf32> to vector<8x32xbf16>
    %cst_96 = arith.constant dense<0.000000e+00> : vector<8x32xf32>
    %221 = tpu.matmul %220, %43, %cst_96 {dimension_numbers = #tpu.dot_dimension_numbers<[1], [0], [0], [1], [0, 0, 1, 1], [], []>} : vector<8x32xbf16>, vector<32x32xbf16>, vector<8x32xf32> -> vector<8x32xf32>
    %cst_97 = arith.constant 0.000000e+00 : f32
    %222 = vector.broadcast %cst_97 : f32 to vector<8x32xf32>
    %223 = arith.select %219, %221, %222 : vector<8x32xi1>, vector<8x32xf32>
    %224 = arith.truncf %223 : vector<8x32xf32> to vector<8x32xbf16>
    %cst_98 = arith.constant dense<0.000000e+00> : vector<8x8xf32>
    %225 = tpu.matmul %224, %44, %cst_98 {dimension_numbers = #tpu.dot_dimension_numbers<[1], [0], [0], [1], [0, 0, 1, 1], [], []>} : vector<8x32xbf16>, vector<32x8xbf16>, vector<8x8xf32> -> vector<8x8xf32>
    %cst_99 = arith.constant 2.656250e-05 : f32
    %226 = vector.broadcast %cst_99 : f32 to vector<8x8xf32>
    %227 = arith.mulf %226, %201 : vector<8x8xf32>
    %228 = arith.addf %225, %227 : vector<8x8xf32>
    %229 = arith.mulf %228, %228 : vector<8x8xf32>
    %230 = vector.shape_cast %229 : vector<8x8xf32> to vector<1x8x8xf32>
    %cst_100 = arith.constant dense<0.000000e+00> : vector<1xf32>
    %231 = vector.multi_reduction <add>, %230, %cst_100 [1, 2] : vector<1x8x8xf32> to vector<1xf32>
    %232 = vector.shape_cast %231 : vector<1xf32> to vector<1x1x1xf32>
    %233 = vector.extract %232[0, 0, 0] : f32 from vector<1x1x1xf32>
    %234 = vector.broadcast %233 : f32 to vector<1x1xf32>
    %235 = vector.broadcast %205 : vector<1x1xf32> to vector<8x8xf32>
    %236 = arith.mulf %235, %228 : vector<8x8xf32>
    %237 = arith.subf %201, %236 : vector<8x8xf32>
    %cst_101 = arith.constant -1.000000e+01 : f32
    %cst_102 = arith.constant 1.000000e+01 : f32
    %238 = vector.broadcast %cst_101 : f32 to vector<8x8xf32>
    %239 = arith.maximumf %238, %237 : vector<8x8xf32>
    %240 = vector.broadcast %cst_102 : f32 to vector<8x8xf32>
    %241 = arith.minimumf %240, %239 : vector<8x8xf32>
    %cst_103 = arith.constant 9.99999997E-7 : f32
    %242 = vector.broadcast %cst_103 : f32 to vector<1x1xf32>
    %243 = arith.cmpf olt, %234, %242 : vector<1x1xf32>
    %cst_104 = arith.constant 0.000000e+00 : f32
    %244 = vector.broadcast %cst_104 : f32 to vector<1x1xf32>
    %245 = arith.select %243, %244, %205 : vector<1x1xi1>, vector<1x1xf32>
    %c5_i32 = arith.constant 5 : i32
    %246 = arith.truncf %241 : vector<8x8xf32> to vector<8x8xbf16>
    %cst_105 = arith.constant dense<0.000000e+00> : vector<8x32xf32>
    %247 = tpu.matmul %246, %41, %cst_105 {dimension_numbers = #tpu.dot_dimension_numbers<[1], [0], [0], [1], [0, 0, 1, 1], [], []>} : vector<8x8xbf16>, vector<8x32xbf16>, vector<8x32xf32> -> vector<8x32xf32>
    %248 = arith.addf %35, %247 : vector<8x32xf32>
    %cst_106 = arith.constant 0.000000e+00 : f32
    %249 = vector.broadcast %cst_106 : f32 to vector<8x32xf32>
    %250 = arith.maximumf %248, %249 : vector<8x32xf32>
    %251 = arith.truncf %250 : vector<8x32xf32> to vector<8x32xbf16>
    %cst_107 = arith.constant dense<0.000000e+00> : vector<8x32xf32>
    %252 = tpu.matmul %251, %42, %cst_107 {dimension_numbers = #tpu.dot_dimension_numbers<[1], [0], [0], [1], [0, 0, 1, 1], [], []>} : vector<8x32xbf16>, vector<32x32xbf16>, vector<8x32xf32> -> vector<8x32xf32>
    %253 = arith.addf %252, %40 : vector<8x32xf32>
    %cst_108 = arith.constant 0.000000e+00 : f32
    %254 = vector.broadcast %cst_108 : f32 to vector<8x32xf32>
    %255 = arith.cmpf ogt, %253, %254 : vector<8x32xf32>
    %cst_109 = arith.constant 0.000000e+00 : f32
    %256 = vector.broadcast %cst_109 : f32 to vector<8x32xf32>
    %257 = arith.select %255, %37, %256 : vector<8x32xi1>, vector<8x32xf32>
    %cst_110 = arith.constant 0.000000e+00 : f32
    %258 = vector.broadcast %cst_110 : f32 to vector<8x32xf32>
    %259 = arith.cmpf ogt, %248, %258 : vector<8x32xf32>
    %260 = arith.truncf %257 : vector<8x32xf32> to vector<8x32xbf16>
    %cst_111 = arith.constant dense<0.000000e+00> : vector<8x32xf32>
    %261 = tpu.matmul %260, %43, %cst_111 {dimension_numbers = #tpu.dot_dimension_numbers<[1], [0], [0], [1], [0, 0, 1, 1], [], []>} : vector<8x32xbf16>, vector<32x32xbf16>, vector<8x32xf32> -> vector<8x32xf32>
    %cst_112 = arith.constant 0.000000e+00 : f32
    %262 = vector.broadcast %cst_112 : f32 to vector<8x32xf32>
    %263 = arith.select %259, %261, %262 : vector<8x32xi1>, vector<8x32xf32>
    %264 = arith.truncf %263 : vector<8x32xf32> to vector<8x32xbf16>
    %cst_113 = arith.constant dense<0.000000e+00> : vector<8x8xf32>
    %265 = tpu.matmul %264, %44, %cst_113 {dimension_numbers = #tpu.dot_dimension_numbers<[1], [0], [0], [1], [0, 0, 1, 1], [], []>} : vector<8x32xbf16>, vector<32x8xbf16>, vector<8x8xf32> -> vector<8x8xf32>
    %cst_114 = arith.constant 2.656250e-05 : f32
    %266 = vector.broadcast %cst_114 : f32 to vector<8x8xf32>
    %267 = arith.mulf %266, %241 : vector<8x8xf32>
    %268 = arith.addf %265, %267 : vector<8x8xf32>
    %269 = arith.mulf %268, %268 : vector<8x8xf32>
    %270 = vector.shape_cast %269 : vector<8x8xf32> to vector<1x8x8xf32>
    %cst_115 = arith.constant dense<0.000000e+00> : vector<1xf32>
    %271 = vector.multi_reduction <add>, %270, %cst_115 [1, 2] : vector<1x8x8xf32> to vector<1xf32>
    %272 = vector.shape_cast %271 : vector<1xf32> to vector<1x1x1xf32>
    %273 = vector.extract %272[0, 0, 0] : f32 from vector<1x1x1xf32>
    %274 = vector.broadcast %273 : f32 to vector<1x1xf32>
    %275 = vector.broadcast %245 : vector<1x1xf32> to vector<8x8xf32>
    %276 = arith.mulf %275, %268 : vector<8x8xf32>
    %277 = arith.subf %241, %276 : vector<8x8xf32>
    %cst_116 = arith.constant -1.000000e+01 : f32
    %cst_117 = arith.constant 1.000000e+01 : f32
    %278 = vector.broadcast %cst_116 : f32 to vector<8x8xf32>
    %279 = arith.maximumf %278, %277 : vector<8x8xf32>
    %280 = vector.broadcast %cst_117 : f32 to vector<8x8xf32>
    %281 = arith.minimumf %280, %279 : vector<8x8xf32>
    %cst_118 = arith.constant 9.99999997E-7 : f32
    %282 = vector.broadcast %cst_118 : f32 to vector<1x1xf32>
    %283 = arith.cmpf olt, %274, %282 : vector<1x1xf32>
    %cst_119 = arith.constant 0.000000e+00 : f32
    %284 = vector.broadcast %cst_119 : f32 to vector<1x1xf32>
    %285 = arith.select %283, %284, %245 : vector<1x1xi1>, vector<1x1xf32>
    %c6_i32 = arith.constant 6 : i32
    %286 = arith.truncf %281 : vector<8x8xf32> to vector<8x8xbf16>
    %cst_120 = arith.constant dense<0.000000e+00> : vector<8x32xf32>
    %287 = tpu.matmul %286, %41, %cst_120 {dimension_numbers = #tpu.dot_dimension_numbers<[1], [0], [0], [1], [0, 0, 1, 1], [], []>} : vector<8x8xbf16>, vector<8x32xbf16>, vector<8x32xf32> -> vector<8x32xf32>
    %288 = arith.addf %35, %287 : vector<8x32xf32>
    %cst_121 = arith.constant 0.000000e+00 : f32
    %289 = vector.broadcast %cst_121 : f32 to vector<8x32xf32>
    %290 = arith.maximumf %288, %289 : vector<8x32xf32>
    %291 = arith.truncf %290 : vector<8x32xf32> to vector<8x32xbf16>
    %cst_122 = arith.constant dense<0.000000e+00> : vector<8x32xf32>
    %292 = tpu.matmul %291, %42, %cst_122 {dimension_numbers = #tpu.dot_dimension_numbers<[1], [0], [0], [1], [0, 0, 1, 1], [], []>} : vector<8x32xbf16>, vector<32x32xbf16>, vector<8x32xf32> -> vector<8x32xf32>
    %293 = arith.addf %292, %40 : vector<8x32xf32>
    %cst_123 = arith.constant 0.000000e+00 : f32
    %294 = vector.broadcast %cst_123 : f32 to vector<8x32xf32>
    %295 = arith.cmpf ogt, %293, %294 : vector<8x32xf32>
    %cst_124 = arith.constant 0.000000e+00 : f32
    %296 = vector.broadcast %cst_124 : f32 to vector<8x32xf32>
    %297 = arith.select %295, %37, %296 : vector<8x32xi1>, vector<8x32xf32>
    %cst_125 = arith.constant 0.000000e+00 : f32
    %298 = vector.broadcast %cst_125 : f32 to vector<8x32xf32>
    %299 = arith.cmpf ogt, %288, %298 : vector<8x32xf32>
    %300 = arith.truncf %297 : vector<8x32xf32> to vector<8x32xbf16>
    %cst_126 = arith.constant dense<0.000000e+00> : vector<8x32xf32>
    %301 = tpu.matmul %300, %43, %cst_126 {dimension_numbers = #tpu.dot_dimension_numbers<[1], [0], [0], [1], [0, 0, 1, 1], [], []>} : vector<8x32xbf16>, vector<32x32xbf16>, vector<8x32xf32> -> vector<8x32xf32>
    %cst_127 = arith.constant 0.000000e+00 : f32
    %302 = vector.broadcast %cst_127 : f32 to vector<8x32xf32>
    %303 = arith.select %299, %301, %302 : vector<8x32xi1>, vector<8x32xf32>
    %304 = arith.truncf %303 : vector<8x32xf32> to vector<8x32xbf16>
    %cst_128 = arith.constant dense<0.000000e+00> : vector<8x8xf32>
    %305 = tpu.matmul %304, %44, %cst_128 {dimension_numbers = #tpu.dot_dimension_numbers<[1], [0], [0], [1], [0, 0, 1, 1], [], []>} : vector<8x32xbf16>, vector<32x8xbf16>, vector<8x8xf32> -> vector<8x8xf32>
    %cst_129 = arith.constant 2.656250e-05 : f32
    %306 = vector.broadcast %cst_129 : f32 to vector<8x8xf32>
    %307 = arith.mulf %306, %281 : vector<8x8xf32>
    %308 = arith.addf %305, %307 : vector<8x8xf32>
    %309 = arith.mulf %308, %308 : vector<8x8xf32>
    %310 = vector.shape_cast %309 : vector<8x8xf32> to vector<1x8x8xf32>
    %cst_130 = arith.constant dense<0.000000e+00> : vector<1xf32>
    %311 = vector.multi_reduction <add>, %310, %cst_130 [1, 2] : vector<1x8x8xf32> to vector<1xf32>
    %312 = vector.shape_cast %311 : vector<1xf32> to vector<1x1x1xf32>
    %313 = vector.extract %312[0, 0, 0] : f32 from vector<1x1x1xf32>
    %314 = vector.broadcast %313 : f32 to vector<1x1xf32>
    %315 = vector.broadcast %285 : vector<1x1xf32> to vector<8x8xf32>
    %316 = arith.mulf %315, %308 : vector<8x8xf32>
    %317 = arith.subf %281, %316 : vector<8x8xf32>
    %cst_131 = arith.constant -1.000000e+01 : f32
    %cst_132 = arith.constant 1.000000e+01 : f32
    %318 = vector.broadcast %cst_131 : f32 to vector<8x8xf32>
    %319 = arith.maximumf %318, %317 : vector<8x8xf32>
    %320 = vector.broadcast %cst_132 : f32 to vector<8x8xf32>
    %321 = arith.minimumf %320, %319 : vector<8x8xf32>
    %cst_133 = arith.constant 9.99999997E-7 : f32
    %322 = vector.broadcast %cst_133 : f32 to vector<1x1xf32>
    %323 = arith.cmpf olt, %314, %322 : vector<1x1xf32>
    %cst_134 = arith.constant 0.000000e+00 : f32
    %324 = vector.broadcast %cst_134 : f32 to vector<1x1xf32>
    %325 = arith.select %323, %324, %285 : vector<1x1xi1>, vector<1x1xf32>
    %c7_i32 = arith.constant 7 : i32
    %326 = arith.truncf %321 : vector<8x8xf32> to vector<8x8xbf16>
    %cst_135 = arith.constant dense<0.000000e+00> : vector<8x32xf32>
    %327 = tpu.matmul %326, %41, %cst_135 {dimension_numbers = #tpu.dot_dimension_numbers<[1], [0], [0], [1], [0, 0, 1, 1], [], []>} : vector<8x8xbf16>, vector<8x32xbf16>, vector<8x32xf32> -> vector<8x32xf32>
    %328 = arith.addf %35, %327 : vector<8x32xf32>
    %cst_136 = arith.constant 0.000000e+00 : f32
    %329 = vector.broadcast %cst_136 : f32 to vector<8x32xf32>
    %330 = arith.maximumf %328, %329 : vector<8x32xf32>
    %331 = arith.truncf %330 : vector<8x32xf32> to vector<8x32xbf16>
    %cst_137 = arith.constant dense<0.000000e+00> : vector<8x32xf32>
    %332 = tpu.matmul %331, %42, %cst_137 {dimension_numbers = #tpu.dot_dimension_numbers<[1], [0], [0], [1], [0, 0, 1, 1], [], []>} : vector<8x32xbf16>, vector<32x32xbf16>, vector<8x32xf32> -> vector<8x32xf32>
    %333 = arith.addf %332, %40 : vector<8x32xf32>
    %cst_138 = arith.constant 0.000000e+00 : f32
    %334 = vector.broadcast %cst_138 : f32 to vector<8x32xf32>
    %335 = arith.cmpf ogt, %333, %334 : vector<8x32xf32>
    %cst_139 = arith.constant 0.000000e+00 : f32
    %336 = vector.broadcast %cst_139 : f32 to vector<8x32xf32>
    %337 = arith.select %335, %37, %336 : vector<8x32xi1>, vector<8x32xf32>
    %cst_140 = arith.constant 0.000000e+00 : f32
    %338 = vector.broadcast %cst_140 : f32 to vector<8x32xf32>
    %339 = arith.cmpf ogt, %328, %338 : vector<8x32xf32>
    %340 = arith.truncf %337 : vector<8x32xf32> to vector<8x32xbf16>
    %cst_141 = arith.constant dense<0.000000e+00> : vector<8x32xf32>
    %341 = tpu.matmul %340, %43, %cst_141 {dimension_numbers = #tpu.dot_dimension_numbers<[1], [0], [0], [1], [0, 0, 1, 1], [], []>} : vector<8x32xbf16>, vector<32x32xbf16>, vector<8x32xf32> -> vector<8x32xf32>
    %cst_142 = arith.constant 0.000000e+00 : f32
    %342 = vector.broadcast %cst_142 : f32 to vector<8x32xf32>
    %343 = arith.select %339, %341, %342 : vector<8x32xi1>, vector<8x32xf32>
    %344 = arith.truncf %343 : vector<8x32xf32> to vector<8x32xbf16>
    %cst_143 = arith.constant dense<0.000000e+00> : vector<8x8xf32>
    %345 = tpu.matmul %344, %44, %cst_143 {dimension_numbers = #tpu.dot_dimension_numbers<[1], [0], [0], [1], [0, 0, 1, 1], [], []>} : vector<8x32xbf16>, vector<32x8xbf16>, vector<8x8xf32> -> vector<8x8xf32>
    %cst_144 = arith.constant 2.656250e-05 : f32
    %346 = vector.broadcast %cst_144 : f32 to vector<8x8xf32>
    %347 = arith.mulf %346, %321 : vector<8x8xf32>
    %348 = arith.addf %345, %347 : vector<8x8xf32>
    %349 = arith.mulf %348, %348 : vector<8x8xf32>
    %350 = vector.shape_cast %349 : vector<8x8xf32> to vector<1x8x8xf32>
    %cst_145 = arith.constant dense<0.000000e+00> : vector<1xf32>
    %351 = vector.multi_reduction <add>, %350, %cst_145 [1, 2] : vector<1x8x8xf32> to vector<1xf32>
    %352 = vector.shape_cast %351 : vector<1xf32> to vector<1x1x1xf32>
    %353 = vector.extract %352[0, 0, 0] : f32 from vector<1x1x1xf32>
    %354 = vector.broadcast %353 : f32 to vector<1x1xf32>
    %355 = vector.broadcast %325 : vector<1x1xf32> to vector<8x8xf32>
    %356 = arith.mulf %355, %348 : vector<8x8xf32>
    %357 = arith.subf %321, %356 : vector<8x8xf32>
    %cst_146 = arith.constant -1.000000e+01 : f32
    %cst_147 = arith.constant 1.000000e+01 : f32
    %358 = vector.broadcast %cst_146 : f32 to vector<8x8xf32>
    %359 = arith.maximumf %358, %357 : vector<8x8xf32>
    %360 = vector.broadcast %cst_147 : f32 to vector<8x8xf32>
    %361 = arith.minimumf %360, %359 : vector<8x8xf32>
    %cst_148 = arith.constant 9.99999997E-7 : f32
    %362 = vector.broadcast %cst_148 : f32 to vector<1x1xf32>
    %363 = arith.cmpf olt, %354, %362 : vector<1x1xf32>
    %cst_149 = arith.constant 0.000000e+00 : f32
    %364 = vector.broadcast %cst_149 : f32 to vector<1x1xf32>
    %365 = arith.select %363, %364, %325 : vector<1x1xi1>, vector<1x1xf32>
    %c8_i32 = arith.constant 8 : i32
    %366 = arith.truncf %361 : vector<8x8xf32> to vector<8x8xbf16>
    %cst_150 = arith.constant dense<0.000000e+00> : vector<8x32xf32>
    %367 = tpu.matmul %366, %41, %cst_150 {dimension_numbers = #tpu.dot_dimension_numbers<[1], [0], [0], [1], [0, 0, 1, 1], [], []>} : vector<8x8xbf16>, vector<8x32xbf16>, vector<8x32xf32> -> vector<8x32xf32>
    %368 = arith.addf %35, %367 : vector<8x32xf32>
    %cst_151 = arith.constant 0.000000e+00 : f32
    %369 = vector.broadcast %cst_151 : f32 to vector<8x32xf32>
    %370 = arith.maximumf %368, %369 : vector<8x32xf32>
    %371 = arith.truncf %370 : vector<8x32xf32> to vector<8x32xbf16>
    %cst_152 = arith.constant dense<0.000000e+00> : vector<8x32xf32>
    %372 = tpu.matmul %371, %42, %cst_152 {dimension_numbers = #tpu.dot_dimension_numbers<[1], [0], [0], [1], [0, 0, 1, 1], [], []>} : vector<8x32xbf16>, vector<32x32xbf16>, vector<8x32xf32> -> vector<8x32xf32>
    %373 = arith.addf %372, %40 : vector<8x32xf32>
    %cst_153 = arith.constant 0.000000e+00 : f32
    %374 = vector.broadcast %cst_153 : f32 to vector<8x32xf32>
    %375 = arith.cmpf ogt, %373, %374 : vector<8x32xf32>
    %cst_154 = arith.constant 0.000000e+00 : f32
    %376 = vector.broadcast %cst_154 : f32 to vector<8x32xf32>
    %377 = arith.select %375, %37, %376 : vector<8x32xi1>, vector<8x32xf32>
    %cst_155 = arith.constant 0.000000e+00 : f32
    %378 = vector.broadcast %cst_155 : f32 to vector<8x32xf32>
    %379 = arith.cmpf ogt, %368, %378 : vector<8x32xf32>
    %380 = arith.truncf %377 : vector<8x32xf32> to vector<8x32xbf16>
    %cst_156 = arith.constant dense<0.000000e+00> : vector<8x32xf32>
    %381 = tpu.matmul %380, %43, %cst_156 {dimension_numbers = #tpu.dot_dimension_numbers<[1], [0], [0], [1], [0, 0, 1, 1], [], []>} : vector<8x32xbf16>, vector<32x32xbf16>, vector<8x32xf32> -> vector<8x32xf32>
    %cst_157 = arith.constant 0.000000e+00 : f32
    %382 = vector.broadcast %cst_157 : f32 to vector<8x32xf32>
    %383 = arith.select %379, %381, %382 : vector<8x32xi1>, vector<8x32xf32>
    %384 = arith.truncf %383 : vector<8x32xf32> to vector<8x32xbf16>
    %cst_158 = arith.constant dense<0.000000e+00> : vector<8x8xf32>
    %385 = tpu.matmul %384, %44, %cst_158 {dimension_numbers = #tpu.dot_dimension_numbers<[1], [0], [0], [1], [0, 0, 1, 1], [], []>} : vector<8x32xbf16>, vector<32x8xbf16>, vector<8x8xf32> -> vector<8x8xf32>
    %cst_159 = arith.constant 2.656250e-05 : f32
    %386 = vector.broadcast %cst_159 : f32 to vector<8x8xf32>
    %387 = arith.mulf %386, %361 : vector<8x8xf32>
    %388 = arith.addf %385, %387 : vector<8x8xf32>
    %389 = arith.mulf %388, %388 : vector<8x8xf32>
    %390 = vector.shape_cast %389 : vector<8x8xf32> to vector<1x8x8xf32>
    %cst_160 = arith.constant dense<0.000000e+00> : vector<1xf32>
    %391 = vector.multi_reduction <add>, %390, %cst_160 [1, 2] : vector<1x8x8xf32> to vector<1xf32>
    %392 = vector.shape_cast %391 : vector<1xf32> to vector<1x1x1xf32>
    %393 = vector.extract %392[0, 0, 0] : f32 from vector<1x1x1xf32>
    %394 = vector.broadcast %393 : f32 to vector<1x1xf32>
    %395 = vector.broadcast %365 : vector<1x1xf32> to vector<8x8xf32>
    %396 = arith.mulf %395, %388 : vector<8x8xf32>
    %397 = arith.subf %361, %396 : vector<8x8xf32>
    %cst_161 = arith.constant -1.000000e+01 : f32
    %cst_162 = arith.constant 1.000000e+01 : f32
    %398 = vector.broadcast %cst_161 : f32 to vector<8x8xf32>
    %399 = arith.maximumf %398, %397 : vector<8x8xf32>
    %400 = vector.broadcast %cst_162 : f32 to vector<8x8xf32>
    %401 = arith.minimumf %400, %399 : vector<8x8xf32>
    %cst_163 = arith.constant 9.99999997E-7 : f32
    %402 = vector.broadcast %cst_163 : f32 to vector<1x1xf32>
    %403 = arith.cmpf olt, %394, %402 : vector<1x1xf32>
    %cst_164 = arith.constant 0.000000e+00 : f32
    %404 = vector.broadcast %cst_164 : f32 to vector<1x1xf32>
    %405 = arith.select %403, %404, %365 : vector<1x1xi1>, vector<1x1xf32>
    %c9_i32 = arith.constant 9 : i32
    %406 = arith.truncf %401 : vector<8x8xf32> to vector<8x8xbf16>
    %cst_165 = arith.constant dense<0.000000e+00> : vector<8x32xf32>
    %407 = tpu.matmul %406, %41, %cst_165 {dimension_numbers = #tpu.dot_dimension_numbers<[1], [0], [0], [1], [0, 0, 1, 1], [], []>} : vector<8x8xbf16>, vector<8x32xbf16>, vector<8x32xf32> -> vector<8x32xf32>
    %408 = arith.addf %35, %407 : vector<8x32xf32>
    %cst_166 = arith.constant 0.000000e+00 : f32
    %409 = vector.broadcast %cst_166 : f32 to vector<8x32xf32>
    %410 = arith.maximumf %408, %409 : vector<8x32xf32>
    %411 = arith.truncf %410 : vector<8x32xf32> to vector<8x32xbf16>
    %cst_167 = arith.constant dense<0.000000e+00> : vector<8x32xf32>
    %412 = tpu.matmul %411, %42, %cst_167 {dimension_numbers = #tpu.dot_dimension_numbers<[1], [0], [0], [1], [0, 0, 1, 1], [], []>} : vector<8x32xbf16>, vector<32x32xbf16>, vector<8x32xf32> -> vector<8x32xf32>
    %413 = arith.addf %412, %40 : vector<8x32xf32>
    %cst_168 = arith.constant 0.000000e+00 : f32
    %414 = vector.broadcast %cst_168 : f32 to vector<8x32xf32>
    %415 = arith.cmpf ogt, %413, %414 : vector<8x32xf32>
    %cst_169 = arith.constant 0.000000e+00 : f32
    %416 = vector.broadcast %cst_169 : f32 to vector<8x32xf32>
    %417 = arith.select %415, %37, %416 : vector<8x32xi1>, vector<8x32xf32>
    %cst_170 = arith.constant 0.000000e+00 : f32
    %418 = vector.broadcast %cst_170 : f32 to vector<8x32xf32>
    %419 = arith.cmpf ogt, %408, %418 : vector<8x32xf32>
    %420 = arith.truncf %417 : vector<8x32xf32> to vector<8x32xbf16>
    %cst_171 = arith.constant dense<0.000000e+00> : vector<8x32xf32>
    %421 = tpu.matmul %420, %43, %cst_171 {dimension_numbers = #tpu.dot_dimension_numbers<[1], [0], [0], [1], [0, 0, 1, 1], [], []>} : vector<8x32xbf16>, vector<32x32xbf16>, vector<8x32xf32> -> vector<8x32xf32>
    %cst_172 = arith.constant 0.000000e+00 : f32
    %422 = vector.broadcast %cst_172 : f32 to vector<8x32xf32>
    %423 = arith.select %419, %421, %422 : vector<8x32xi1>, vector<8x32xf32>
    %424 = arith.truncf %423 : vector<8x32xf32> to vector<8x32xbf16>
    %cst_173 = arith.constant dense<0.000000e+00> : vector<8x8xf32>
    %425 = tpu.matmul %424, %44, %cst_173 {dimension_numbers = #tpu.dot_dimension_numbers<[1], [0], [0], [1], [0, 0, 1, 1], [], []>} : vector<8x32xbf16>, vector<32x8xbf16>, vector<8x8xf32> -> vector<8x8xf32>
    %cst_174 = arith.constant 2.656250e-05 : f32
    %426 = vector.broadcast %cst_174 : f32 to vector<8x8xf32>
    %427 = arith.mulf %426, %401 : vector<8x8xf32>
    %428 = arith.addf %425, %427 : vector<8x8xf32>
    %429 = arith.mulf %428, %428 : vector<8x8xf32>
    %430 = vector.shape_cast %429 : vector<8x8xf32> to vector<1x8x8xf32>
    %cst_175 = arith.constant dense<0.000000e+00> : vector<1xf32>
    %431 = vector.multi_reduction <add>, %430, %cst_175 [1, 2] : vector<1x8x8xf32> to vector<1xf32>
    %432 = vector.shape_cast %431 : vector<1xf32> to vector<1x1x1xf32>
    %433 = vector.extract %432[0, 0, 0] : f32 from vector<1x1x1xf32>
    %434 = vector.broadcast %433 : f32 to vector<1x1xf32>
    %435 = vector.broadcast %405 : vector<1x1xf32> to vector<8x8xf32>
    %436 = arith.mulf %435, %428 : vector<8x8xf32>
    %437 = arith.subf %401, %436 : vector<8x8xf32>
    %cst_176 = arith.constant -1.000000e+01 : f32
    %cst_177 = arith.constant 1.000000e+01 : f32
    %438 = vector.broadcast %cst_176 : f32 to vector<8x8xf32>
    %439 = arith.maximumf %438, %437 : vector<8x8xf32>
    %440 = vector.broadcast %cst_177 : f32 to vector<8x8xf32>
    %441 = arith.minimumf %440, %439 : vector<8x8xf32>
    %cst_178 = arith.constant 9.99999997E-7 : f32
    %442 = vector.broadcast %cst_178 : f32 to vector<1x1xf32>
    %443 = arith.cmpf olt, %434, %442 : vector<1x1xf32>
    %cst_179 = arith.constant 0.000000e+00 : f32
    %444 = vector.broadcast %cst_179 : f32 to vector<1x1xf32>
    %445 = arith.select %443, %444, %405 : vector<1x1xi1>, vector<1x1xf32>
    %c10_i32 = arith.constant 10 : i32
    %446 = arith.truncf %441 : vector<8x8xf32> to vector<8x8xbf16>
    %cst_180 = arith.constant dense<0.000000e+00> : vector<8x32xf32>
    %447 = tpu.matmul %446, %41, %cst_180 {dimension_numbers = #tpu.dot_dimension_numbers<[1], [0], [0], [1], [0, 0, 1, 1], [], []>} : vector<8x8xbf16>, vector<8x32xbf16>, vector<8x32xf32> -> vector<8x32xf32>
    %448 = arith.addf %35, %447 : vector<8x32xf32>
    %cst_181 = arith.constant 0.000000e+00 : f32
    %449 = vector.broadcast %cst_181 : f32 to vector<8x32xf32>
    %450 = arith.maximumf %448, %449 : vector<8x32xf32>
    %451 = arith.truncf %450 : vector<8x32xf32> to vector<8x32xbf16>
    %cst_182 = arith.constant dense<0.000000e+00> : vector<8x32xf32>
    %452 = tpu.matmul %451, %42, %cst_182 {dimension_numbers = #tpu.dot_dimension_numbers<[1], [0], [0], [1], [0, 0, 1, 1], [], []>} : vector<8x32xbf16>, vector<32x32xbf16>, vector<8x32xf32> -> vector<8x32xf32>
    %453 = arith.addf %452, %40 : vector<8x32xf32>
    %cst_183 = arith.constant 0.000000e+00 : f32
    %454 = vector.broadcast %cst_183 : f32 to vector<8x32xf32>
    %455 = arith.cmpf ogt, %453, %454 : vector<8x32xf32>
    %cst_184 = arith.constant 0.000000e+00 : f32
    %456 = vector.broadcast %cst_184 : f32 to vector<8x32xf32>
    %457 = arith.select %455, %37, %456 : vector<8x32xi1>, vector<8x32xf32>
    %cst_185 = arith.constant 0.000000e+00 : f32
    %458 = vector.broadcast %cst_185 : f32 to vector<8x32xf32>
    %459 = arith.cmpf ogt, %448, %458 : vector<8x32xf32>
    %460 = arith.truncf %457 : vector<8x32xf32> to vector<8x32xbf16>
    %cst_186 = arith.constant dense<0.000000e+00> : vector<8x32xf32>
    %461 = tpu.matmul %460, %43, %cst_186 {dimension_numbers = #tpu.dot_dimension_numbers<[1], [0], [0], [1], [0, 0, 1, 1], [], []>} : vector<8x32xbf16>, vector<32x32xbf16>, vector<8x32xf32> -> vector<8x32xf32>
    %cst_187 = arith.constant 0.000000e+00 : f32
    %462 = vector.broadcast %cst_187 : f32 to vector<8x32xf32>
    %463 = arith.select %459, %461, %462 : vector<8x32xi1>, vector<8x32xf32>
    %464 = arith.truncf %463 : vector<8x32xf32> to vector<8x32xbf16>
    %cst_188 = arith.constant dense<0.000000e+00> : vector<8x8xf32>
    %465 = tpu.matmul %464, %44, %cst_188 {dimension_numbers = #tpu.dot_dimension_numbers<[1], [0], [0], [1], [0, 0, 1, 1], [], []>} : vector<8x32xbf16>, vector<32x8xbf16>, vector<8x8xf32> -> vector<8x8xf32>
    %cst_189 = arith.constant 2.656250e-05 : f32
    %466 = vector.broadcast %cst_189 : f32 to vector<8x8xf32>
    %467 = arith.mulf %466, %441 : vector<8x8xf32>
    %468 = arith.addf %465, %467 : vector<8x8xf32>
    %469 = arith.mulf %468, %468 : vector<8x8xf32>
    %470 = vector.shape_cast %469 : vector<8x8xf32> to vector<1x8x8xf32>
    %cst_190 = arith.constant dense<0.000000e+00> : vector<1xf32>
    %471 = vector.multi_reduction <add>, %470, %cst_190 [1, 2] : vector<1x8x8xf32> to vector<1xf32>
    %472 = vector.shape_cast %471 : vector<1xf32> to vector<1x1x1xf32>
    %473 = vector.extract %472[0, 0, 0] : f32 from vector<1x1x1xf32>
    %474 = vector.broadcast %473 : f32 to vector<1x1xf32>
    %475 = vector.broadcast %445 : vector<1x1xf32> to vector<8x8xf32>
    %476 = arith.mulf %475, %468 : vector<8x8xf32>
    %477 = arith.subf %441, %476 : vector<8x8xf32>
    %cst_191 = arith.constant -1.000000e+01 : f32
    %cst_192 = arith.constant 1.000000e+01 : f32
    %478 = vector.broadcast %cst_191 : f32 to vector<8x8xf32>
    %479 = arith.maximumf %478, %477 : vector<8x8xf32>
    %480 = vector.broadcast %cst_192 : f32 to vector<8x8xf32>
    %481 = arith.minimumf %480, %479 : vector<8x8xf32>
    %cst_193 = arith.constant 9.99999997E-7 : f32
    %482 = vector.broadcast %cst_193 : f32 to vector<1x1xf32>
    %483 = arith.cmpf olt, %474, %482 : vector<1x1xf32>
    %cst_194 = arith.constant 0.000000e+00 : f32
    %484 = vector.broadcast %cst_194 : f32 to vector<1x1xf32>
    %485 = arith.select %483, %484, %445 : vector<1x1xi1>, vector<1x1xf32>
    %c11_i32 = arith.constant 11 : i32
    %486 = arith.truncf %481 : vector<8x8xf32> to vector<8x8xbf16>
    %cst_195 = arith.constant dense<0.000000e+00> : vector<8x32xf32>
    %487 = tpu.matmul %486, %41, %cst_195 {dimension_numbers = #tpu.dot_dimension_numbers<[1], [0], [0], [1], [0, 0, 1, 1], [], []>} : vector<8x8xbf16>, vector<8x32xbf16>, vector<8x32xf32> -> vector<8x32xf32>
    %488 = arith.addf %35, %487 : vector<8x32xf32>
    %cst_196 = arith.constant 0.000000e+00 : f32
    %489 = vector.broadcast %cst_196 : f32 to vector<8x32xf32>
    %490 = arith.maximumf %488, %489 : vector<8x32xf32>
    %491 = arith.truncf %490 : vector<8x32xf32> to vector<8x32xbf16>
    %cst_197 = arith.constant dense<0.000000e+00> : vector<8x32xf32>
    %492 = tpu.matmul %491, %42, %cst_197 {dimension_numbers = #tpu.dot_dimension_numbers<[1], [0], [0], [1], [0, 0, 1, 1], [], []>} : vector<8x32xbf16>, vector<32x32xbf16>, vector<8x32xf32> -> vector<8x32xf32>
    %493 = arith.addf %492, %40 : vector<8x32xf32>
    %cst_198 = arith.constant 0.000000e+00 : f32
    %494 = vector.broadcast %cst_198 : f32 to vector<8x32xf32>
    %495 = arith.cmpf ogt, %493, %494 : vector<8x32xf32>
    %cst_199 = arith.constant 0.000000e+00 : f32
    %496 = vector.broadcast %cst_199 : f32 to vector<8x32xf32>
    %497 = arith.select %495, %37, %496 : vector<8x32xi1>, vector<8x32xf32>
    %cst_200 = arith.constant 0.000000e+00 : f32
    %498 = vector.broadcast %cst_200 : f32 to vector<8x32xf32>
    %499 = arith.cmpf ogt, %488, %498 : vector<8x32xf32>
    %500 = arith.truncf %497 : vector<8x32xf32> to vector<8x32xbf16>
    %cst_201 = arith.constant dense<0.000000e+00> : vector<8x32xf32>
    %501 = tpu.matmul %500, %43, %cst_201 {dimension_numbers = #tpu.dot_dimension_numbers<[1], [0], [0], [1], [0, 0, 1, 1], [], []>} : vector<8x32xbf16>, vector<32x32xbf16>, vector<8x32xf32> -> vector<8x32xf32>
    %cst_202 = arith.constant 0.000000e+00 : f32
    %502 = vector.broadcast %cst_202 : f32 to vector<8x32xf32>
    %503 = arith.select %499, %501, %502 : vector<8x32xi1>, vector<8x32xf32>
    %504 = arith.truncf %503 : vector<8x32xf32> to vector<8x32xbf16>
    %cst_203 = arith.constant dense<0.000000e+00> : vector<8x8xf32>
    %505 = tpu.matmul %504, %44, %cst_203 {dimension_numbers = #tpu.dot_dimension_numbers<[1], [0], [0], [1], [0, 0, 1, 1], [], []>} : vector<8x32xbf16>, vector<32x8xbf16>, vector<8x8xf32> -> vector<8x8xf32>
    %cst_204 = arith.constant 2.656250e-05 : f32
    %506 = vector.broadcast %cst_204 : f32 to vector<8x8xf32>
    %507 = arith.mulf %506, %481 : vector<8x8xf32>
    %508 = arith.addf %505, %507 : vector<8x8xf32>
    %509 = arith.mulf %508, %508 : vector<8x8xf32>
    %510 = vector.shape_cast %509 : vector<8x8xf32> to vector<1x8x8xf32>
    %cst_205 = arith.constant dense<0.000000e+00> : vector<1xf32>
    %511 = vector.multi_reduction <add>, %510, %cst_205 [1, 2] : vector<1x8x8xf32> to vector<1xf32>
    %512 = vector.shape_cast %511 : vector<1xf32> to vector<1x1x1xf32>
    %513 = vector.extract %512[0, 0, 0] : f32 from vector<1x1x1xf32>
    %514 = vector.broadcast %513 : f32 to vector<1x1xf32>
    %515 = vector.broadcast %485 : vector<1x1xf32> to vector<8x8xf32>
    %516 = arith.mulf %515, %508 : vector<8x8xf32>
    %517 = arith.subf %481, %516 : vector<8x8xf32>
    %cst_206 = arith.constant -1.000000e+01 : f32
    %cst_207 = arith.constant 1.000000e+01 : f32
    %518 = vector.broadcast %cst_206 : f32 to vector<8x8xf32>
    %519 = arith.maximumf %518, %517 : vector<8x8xf32>
    %520 = vector.broadcast %cst_207 : f32 to vector<8x8xf32>
    %521 = arith.minimumf %520, %519 : vector<8x8xf32>
    %cst_208 = arith.constant 9.99999997E-7 : f32
    %522 = vector.broadcast %cst_208 : f32 to vector<1x1xf32>
    %523 = arith.cmpf olt, %514, %522 : vector<1x1xf32>
    %cst_209 = arith.constant 0.000000e+00 : f32
    %524 = vector.broadcast %cst_209 : f32 to vector<1x1xf32>
    %525 = arith.select %523, %524, %485 : vector<1x1xi1>, vector<1x1xf32>
    %c12_i32 = arith.constant 12 : i32
    %526 = arith.truncf %521 : vector<8x8xf32> to vector<8x8xbf16>
    %cst_210 = arith.constant dense<0.000000e+00> : vector<8x32xf32>
    %527 = tpu.matmul %526, %41, %cst_210 {dimension_numbers = #tpu.dot_dimension_numbers<[1], [0], [0], [1], [0, 0, 1, 1], [], []>} : vector<8x8xbf16>, vector<8x32xbf16>, vector<8x32xf32> -> vector<8x32xf32>
    %528 = arith.addf %35, %527 : vector<8x32xf32>
    %cst_211 = arith.constant 0.000000e+00 : f32
    %529 = vector.broadcast %cst_211 : f32 to vector<8x32xf32>
    %530 = arith.maximumf %528, %529 : vector<8x32xf32>
    %531 = arith.truncf %530 : vector<8x32xf32> to vector<8x32xbf16>
    %cst_212 = arith.constant dense<0.000000e+00> : vector<8x32xf32>
    %532 = tpu.matmul %531, %42, %cst_212 {dimension_numbers = #tpu.dot_dimension_numbers<[1], [0], [0], [1], [0, 0, 1, 1], [], []>} : vector<8x32xbf16>, vector<32x32xbf16>, vector<8x32xf32> -> vector<8x32xf32>
    %533 = arith.addf %532, %40 : vector<8x32xf32>
    %cst_213 = arith.constant 0.000000e+00 : f32
    %534 = vector.broadcast %cst_213 : f32 to vector<8x32xf32>
    %535 = arith.cmpf ogt, %533, %534 : vector<8x32xf32>
    %cst_214 = arith.constant 0.000000e+00 : f32
    %536 = vector.broadcast %cst_214 : f32 to vector<8x32xf32>
    %537 = arith.select %535, %37, %536 : vector<8x32xi1>, vector<8x32xf32>
    %cst_215 = arith.constant 0.000000e+00 : f32
    %538 = vector.broadcast %cst_215 : f32 to vector<8x32xf32>
    %539 = arith.cmpf ogt, %528, %538 : vector<8x32xf32>
    %540 = arith.truncf %537 : vector<8x32xf32> to vector<8x32xbf16>
    %cst_216 = arith.constant dense<0.000000e+00> : vector<8x32xf32>
    %541 = tpu.matmul %540, %43, %cst_216 {dimension_numbers = #tpu.dot_dimension_numbers<[1], [0], [0], [1], [0, 0, 1, 1], [], []>} : vector<8x32xbf16>, vector<32x32xbf16>, vector<8x32xf32> -> vector<8x32xf32>
    %cst_217 = arith.constant 0.000000e+00 : f32
    %542 = vector.broadcast %cst_217 : f32 to vector<8x32xf32>
    %543 = arith.select %539, %541, %542 : vector<8x32xi1>, vector<8x32xf32>
    %544 = arith.truncf %543 : vector<8x32xf32> to vector<8x32xbf16>
    %cst_218 = arith.constant dense<0.000000e+00> : vector<8x8xf32>
    %545 = tpu.matmul %544, %44, %cst_218 {dimension_numbers = #tpu.dot_dimension_numbers<[1], [0], [0], [1], [0, 0, 1, 1], [], []>} : vector<8x32xbf16>, vector<32x8xbf16>, vector<8x8xf32> -> vector<8x8xf32>
    %cst_219 = arith.constant 2.656250e-05 : f32
    %546 = vector.broadcast %cst_219 : f32 to vector<8x8xf32>
    %547 = arith.mulf %546, %521 : vector<8x8xf32>
    %548 = arith.addf %545, %547 : vector<8x8xf32>
    %549 = arith.mulf %548, %548 : vector<8x8xf32>
    %550 = vector.shape_cast %549 : vector<8x8xf32> to vector<1x8x8xf32>
    %cst_220 = arith.constant dense<0.000000e+00> : vector<1xf32>
    %551 = vector.multi_reduction <add>, %550, %cst_220 [1, 2] : vector<1x8x8xf32> to vector<1xf32>
    %552 = vector.shape_cast %551 : vector<1xf32> to vector<1x1x1xf32>
    %553 = vector.extract %552[0, 0, 0] : f32 from vector<1x1x1xf32>
    %554 = vector.broadcast %553 : f32 to vector<1x1xf32>
    %555 = vector.broadcast %525 : vector<1x1xf32> to vector<8x8xf32>
    %556 = arith.mulf %555, %548 : vector<8x8xf32>
    %557 = arith.subf %521, %556 : vector<8x8xf32>
    %cst_221 = arith.constant -1.000000e+01 : f32
    %cst_222 = arith.constant 1.000000e+01 : f32
    %558 = vector.broadcast %cst_221 : f32 to vector<8x8xf32>
    %559 = arith.maximumf %558, %557 : vector<8x8xf32>
    %560 = vector.broadcast %cst_222 : f32 to vector<8x8xf32>
    %561 = arith.minimumf %560, %559 : vector<8x8xf32>
    %cst_223 = arith.constant 9.99999997E-7 : f32
    %562 = vector.broadcast %cst_223 : f32 to vector<1x1xf32>
    %563 = arith.cmpf olt, %554, %562 : vector<1x1xf32>
    %cst_224 = arith.constant 0.000000e+00 : f32
    %564 = vector.broadcast %cst_224 : f32 to vector<1x1xf32>
    %565 = arith.select %563, %564, %525 : vector<1x1xi1>, vector<1x1xf32>
    %c13_i32 = arith.constant 13 : i32
    %566 = arith.truncf %561 : vector<8x8xf32> to vector<8x8xbf16>
    %cst_225 = arith.constant dense<0.000000e+00> : vector<8x32xf32>
    %567 = tpu.matmul %566, %41, %cst_225 {dimension_numbers = #tpu.dot_dimension_numbers<[1], [0], [0], [1], [0, 0, 1, 1], [], []>} : vector<8x8xbf16>, vector<8x32xbf16>, vector<8x32xf32> -> vector<8x32xf32>
    %568 = arith.addf %35, %567 : vector<8x32xf32>
    %cst_226 = arith.constant 0.000000e+00 : f32
    %569 = vector.broadcast %cst_226 : f32 to vector<8x32xf32>
    %570 = arith.maximumf %568, %569 : vector<8x32xf32>
    %571 = arith.truncf %570 : vector<8x32xf32> to vector<8x32xbf16>
    %cst_227 = arith.constant dense<0.000000e+00> : vector<8x32xf32>
    %572 = tpu.matmul %571, %42, %cst_227 {dimension_numbers = #tpu.dot_dimension_numbers<[1], [0], [0], [1], [0, 0, 1, 1], [], []>} : vector<8x32xbf16>, vector<32x32xbf16>, vector<8x32xf32> -> vector<8x32xf32>
    %573 = arith.addf %572, %40 : vector<8x32xf32>
    %cst_228 = arith.constant 0.000000e+00 : f32
    %574 = vector.broadcast %cst_228 : f32 to vector<8x32xf32>
    %575 = arith.cmpf ogt, %573, %574 : vector<8x32xf32>
    %cst_229 = arith.constant 0.000000e+00 : f32
    %576 = vector.broadcast %cst_229 : f32 to vector<8x32xf32>
    %577 = arith.select %575, %37, %576 : vector<8x32xi1>, vector<8x32xf32>
    %cst_230 = arith.constant 0.000000e+00 : f32
    %578 = vector.broadcast %cst_230 : f32 to vector<8x32xf32>
    %579 = arith.cmpf ogt, %568, %578 : vector<8x32xf32>
    %580 = arith.truncf %577 : vector<8x32xf32> to vector<8x32xbf16>
    %cst_231 = arith.constant dense<0.000000e+00> : vector<8x32xf32>
    %581 = tpu.matmul %580, %43, %cst_231 {dimension_numbers = #tpu.dot_dimension_numbers<[1], [0], [0], [1], [0, 0, 1, 1], [], []>} : vector<8x32xbf16>, vector<32x32xbf16>, vector<8x32xf32> -> vector<8x32xf32>
    %cst_232 = arith.constant 0.000000e+00 : f32
    %582 = vector.broadcast %cst_232 : f32 to vector<8x32xf32>
    %583 = arith.select %579, %581, %582 : vector<8x32xi1>, vector<8x32xf32>
    %584 = arith.truncf %583 : vector<8x32xf32> to vector<8x32xbf16>
    %cst_233 = arith.constant dense<0.000000e+00> : vector<8x8xf32>
    %585 = tpu.matmul %584, %44, %cst_233 {dimension_numbers = #tpu.dot_dimension_numbers<[1], [0], [0], [1], [0, 0, 1, 1], [], []>} : vector<8x32xbf16>, vector<32x8xbf16>, vector<8x8xf32> -> vector<8x8xf32>
    %cst_234 = arith.constant 2.656250e-05 : f32
    %586 = vector.broadcast %cst_234 : f32 to vector<8x8xf32>
    %587 = arith.mulf %586, %561 : vector<8x8xf32>
    %588 = arith.addf %585, %587 : vector<8x8xf32>
    %589 = arith.mulf %588, %588 : vector<8x8xf32>
    %590 = vector.shape_cast %589 : vector<8x8xf32> to vector<1x8x8xf32>
    %cst_235 = arith.constant dense<0.000000e+00> : vector<1xf32>
    %591 = vector.multi_reduction <add>, %590, %cst_235 [1, 2] : vector<1x8x8xf32> to vector<1xf32>
    %592 = vector.shape_cast %591 : vector<1xf32> to vector<1x1x1xf32>
    %593 = vector.extract %592[0, 0, 0] : f32 from vector<1x1x1xf32>
    %594 = vector.broadcast %593 : f32 to vector<1x1xf32>
    %595 = vector.broadcast %565 : vector<1x1xf32> to vector<8x8xf32>
    %596 = arith.mulf %595, %588 : vector<8x8xf32>
    %597 = arith.subf %561, %596 : vector<8x8xf32>
    %cst_236 = arith.constant -1.000000e+01 : f32
    %cst_237 = arith.constant 1.000000e+01 : f32
    %598 = vector.broadcast %cst_236 : f32 to vector<8x8xf32>
    %599 = arith.maximumf %598, %597 : vector<8x8xf32>
    %600 = vector.broadcast %cst_237 : f32 to vector<8x8xf32>
    %601 = arith.minimumf %600, %599 : vector<8x8xf32>
    %cst_238 = arith.constant 9.99999997E-7 : f32
    %602 = vector.broadcast %cst_238 : f32 to vector<1x1xf32>
    %603 = arith.cmpf olt, %594, %602 : vector<1x1xf32>
    %cst_239 = arith.constant 0.000000e+00 : f32
    %604 = vector.broadcast %cst_239 : f32 to vector<1x1xf32>
    %605 = arith.select %603, %604, %565 : vector<1x1xi1>, vector<1x1xf32>
    %c14_i32 = arith.constant 14 : i32
    %606 = arith.truncf %601 : vector<8x8xf32> to vector<8x8xbf16>
    %cst_240 = arith.constant dense<0.000000e+00> : vector<8x32xf32>
    %607 = tpu.matmul %606, %41, %cst_240 {dimension_numbers = #tpu.dot_dimension_numbers<[1], [0], [0], [1], [0, 0, 1, 1], [], []>} : vector<8x8xbf16>, vector<8x32xbf16>, vector<8x32xf32> -> vector<8x32xf32>
    %608 = arith.addf %35, %607 : vector<8x32xf32>
    %cst_241 = arith.constant 0.000000e+00 : f32
    %609 = vector.broadcast %cst_241 : f32 to vector<8x32xf32>
    %610 = arith.maximumf %608, %609 : vector<8x32xf32>
    %611 = arith.truncf %610 : vector<8x32xf32> to vector<8x32xbf16>
    %cst_242 = arith.constant dense<0.000000e+00> : vector<8x32xf32>
    %612 = tpu.matmul %611, %42, %cst_242 {dimension_numbers = #tpu.dot_dimension_numbers<[1], [0], [0], [1], [0, 0, 1, 1], [], []>} : vector<8x32xbf16>, vector<32x32xbf16>, vector<8x32xf32> -> vector<8x32xf32>
    %613 = arith.addf %612, %40 : vector<8x32xf32>
    %cst_243 = arith.constant 0.000000e+00 : f32
    %614 = vector.broadcast %cst_243 : f32 to vector<8x32xf32>
    %615 = arith.cmpf ogt, %613, %614 : vector<8x32xf32>
    %cst_244 = arith.constant 0.000000e+00 : f32
    %616 = vector.broadcast %cst_244 : f32 to vector<8x32xf32>
    %617 = arith.select %615, %37, %616 : vector<8x32xi1>, vector<8x32xf32>
    %cst_245 = arith.constant 0.000000e+00 : f32
    %618 = vector.broadcast %cst_245 : f32 to vector<8x32xf32>
    %619 = arith.cmpf ogt, %608, %618 : vector<8x32xf32>
    %620 = arith.truncf %617 : vector<8x32xf32> to vector<8x32xbf16>
    %cst_246 = arith.constant dense<0.000000e+00> : vector<8x32xf32>
    %621 = tpu.matmul %620, %43, %cst_246 {dimension_numbers = #tpu.dot_dimension_numbers<[1], [0], [0], [1], [0, 0, 1, 1], [], []>} : vector<8x32xbf16>, vector<32x32xbf16>, vector<8x32xf32> -> vector<8x32xf32>
    %cst_247 = arith.constant 0.000000e+00 : f32
    %622 = vector.broadcast %cst_247 : f32 to vector<8x32xf32>
    %623 = arith.select %619, %621, %622 : vector<8x32xi1>, vector<8x32xf32>
    %624 = arith.truncf %623 : vector<8x32xf32> to vector<8x32xbf16>
    %cst_248 = arith.constant dense<0.000000e+00> : vector<8x8xf32>
    %625 = tpu.matmul %624, %44, %cst_248 {dimension_numbers = #tpu.dot_dimension_numbers<[1], [0], [0], [1], [0, 0, 1, 1], [], []>} : vector<8x32xbf16>, vector<32x8xbf16>, vector<8x8xf32> -> vector<8x8xf32>
    %cst_249 = arith.constant 2.656250e-05 : f32
    %626 = vector.broadcast %cst_249 : f32 to vector<8x8xf32>
    %627 = arith.mulf %626, %601 : vector<8x8xf32>
    %628 = arith.addf %625, %627 : vector<8x8xf32>
    %629 = arith.mulf %628, %628 : vector<8x8xf32>
    %630 = vector.shape_cast %629 : vector<8x8xf32> to vector<1x8x8xf32>
    %cst_250 = arith.constant dense<0.000000e+00> : vector<1xf32>
    %631 = vector.multi_reduction <add>, %630, %cst_250 [1, 2] : vector<1x8x8xf32> to vector<1xf32>
    %632 = vector.shape_cast %631 : vector<1xf32> to vector<1x1x1xf32>
    %633 = vector.extract %632[0, 0, 0] : f32 from vector<1x1x1xf32>
    %634 = vector.broadcast %633 : f32 to vector<1x1xf32>
    %635 = vector.broadcast %605 : vector<1x1xf32> to vector<8x8xf32>
    %636 = arith.mulf %635, %628 : vector<8x8xf32>
    %637 = arith.subf %601, %636 : vector<8x8xf32>
    %cst_251 = arith.constant -1.000000e+01 : f32
    %cst_252 = arith.constant 1.000000e+01 : f32
    %638 = vector.broadcast %cst_251 : f32 to vector<8x8xf32>
    %639 = arith.maximumf %638, %637 : vector<8x8xf32>
    %640 = vector.broadcast %cst_252 : f32 to vector<8x8xf32>
    %641 = arith.minimumf %640, %639 : vector<8x8xf32>
    %cst_253 = arith.constant 9.99999997E-7 : f32
    %642 = vector.broadcast %cst_253 : f32 to vector<1x1xf32>
    %643 = arith.cmpf olt, %634, %642 : vector<1x1xf32>
    %cst_254 = arith.constant 0.000000e+00 : f32
    %644 = vector.broadcast %cst_254 : f32 to vector<1x1xf32>
    %645 = arith.select %643, %644, %605 : vector<1x1xi1>, vector<1x1xf32>
    %c15_i32 = arith.constant 15 : i32
    %646 = arith.truncf %641 : vector<8x8xf32> to vector<8x8xbf16>
    %cst_255 = arith.constant dense<0.000000e+00> : vector<8x32xf32>
    %647 = tpu.matmul %646, %41, %cst_255 {dimension_numbers = #tpu.dot_dimension_numbers<[1], [0], [0], [1], [0, 0, 1, 1], [], []>} : vector<8x8xbf16>, vector<8x32xbf16>, vector<8x32xf32> -> vector<8x32xf32>
    %648 = arith.addf %35, %647 : vector<8x32xf32>
    %cst_256 = arith.constant 0.000000e+00 : f32
    %649 = vector.broadcast %cst_256 : f32 to vector<8x32xf32>
    %650 = arith.maximumf %648, %649 : vector<8x32xf32>
    %651 = arith.truncf %650 : vector<8x32xf32> to vector<8x32xbf16>
    %cst_257 = arith.constant dense<0.000000e+00> : vector<8x32xf32>
    %652 = tpu.matmul %651, %42, %cst_257 {dimension_numbers = #tpu.dot_dimension_numbers<[1], [0], [0], [1], [0, 0, 1, 1], [], []>} : vector<8x32xbf16>, vector<32x32xbf16>, vector<8x32xf32> -> vector<8x32xf32>
    %653 = arith.addf %652, %40 : vector<8x32xf32>
    %cst_258 = arith.constant 0.000000e+00 : f32
    %654 = vector.broadcast %cst_258 : f32 to vector<8x32xf32>
    %655 = arith.cmpf ogt, %653, %654 : vector<8x32xf32>
    %cst_259 = arith.constant 0.000000e+00 : f32
    %656 = vector.broadcast %cst_259 : f32 to vector<8x32xf32>
    %657 = arith.select %655, %37, %656 : vector<8x32xi1>, vector<8x32xf32>
    %cst_260 = arith.constant 0.000000e+00 : f32
    %658 = vector.broadcast %cst_260 : f32 to vector<8x32xf32>
    %659 = arith.cmpf ogt, %648, %658 : vector<8x32xf32>
    %660 = arith.truncf %657 : vector<8x32xf32> to vector<8x32xbf16>
    %cst_261 = arith.constant dense<0.000000e+00> : vector<8x32xf32>
    %661 = tpu.matmul %660, %43, %cst_261 {dimension_numbers = #tpu.dot_dimension_numbers<[1], [0], [0], [1], [0, 0, 1, 1], [], []>} : vector<8x32xbf16>, vector<32x32xbf16>, vector<8x32xf32> -> vector<8x32xf32>
    %cst_262 = arith.constant 0.000000e+00 : f32
    %662 = vector.broadcast %cst_262 : f32 to vector<8x32xf32>
    %663 = arith.select %659, %661, %662 : vector<8x32xi1>, vector<8x32xf32>
    %664 = arith.truncf %663 : vector<8x32xf32> to vector<8x32xbf16>
    %cst_263 = arith.constant dense<0.000000e+00> : vector<8x8xf32>
    %665 = tpu.matmul %664, %44, %cst_263 {dimension_numbers = #tpu.dot_dimension_numbers<[1], [0], [0], [1], [0, 0, 1, 1], [], []>} : vector<8x32xbf16>, vector<32x8xbf16>, vector<8x8xf32> -> vector<8x8xf32>
    %cst_264 = arith.constant 2.656250e-05 : f32
    %666 = vector.broadcast %cst_264 : f32 to vector<8x8xf32>
    %667 = arith.mulf %666, %641 : vector<8x8xf32>
    %668 = arith.addf %665, %667 : vector<8x8xf32>
    %669 = arith.mulf %668, %668 : vector<8x8xf32>
    %670 = vector.shape_cast %669 : vector<8x8xf32> to vector<1x8x8xf32>
    %cst_265 = arith.constant dense<0.000000e+00> : vector<1xf32>
    %671 = vector.multi_reduction <add>, %670, %cst_265 [1, 2] : vector<1x8x8xf32> to vector<1xf32>
    %672 = vector.shape_cast %671 : vector<1xf32> to vector<1x1x1xf32>
    %673 = vector.extract %672[0, 0, 0] : f32 from vector<1x1x1xf32>
    %674 = vector.broadcast %673 : f32 to vector<1x1xf32>
    %675 = vector.broadcast %645 : vector<1x1xf32> to vector<8x8xf32>
    %676 = arith.mulf %675, %668 : vector<8x8xf32>
    %677 = arith.subf %641, %676 : vector<8x8xf32>
    %cst_266 = arith.constant -1.000000e+01 : f32
    %cst_267 = arith.constant 1.000000e+01 : f32
    %678 = vector.broadcast %cst_266 : f32 to vector<8x8xf32>
    %679 = arith.maximumf %678, %677 : vector<8x8xf32>
    %680 = vector.broadcast %cst_267 : f32 to vector<8x8xf32>
    %681 = arith.minimumf %680, %679 : vector<8x8xf32>
    %cst_268 = arith.constant 9.99999997E-7 : f32
    %682 = vector.broadcast %cst_268 : f32 to vector<1x1xf32>
    %683 = arith.cmpf olt, %674, %682 : vector<1x1xf32>
    %cst_269 = arith.constant 0.000000e+00 : f32
    %684 = vector.broadcast %cst_269 : f32 to vector<1x1xf32>
    %685 = arith.select %683, %684, %645 : vector<1x1xi1>, vector<1x1xf32>
    %c16_i32 = arith.constant 16 : i32
    %686 = arith.truncf %681 : vector<8x8xf32> to vector<8x8xbf16>
    %cst_270 = arith.constant dense<0.000000e+00> : vector<8x32xf32>
    %687 = tpu.matmul %686, %41, %cst_270 {dimension_numbers = #tpu.dot_dimension_numbers<[1], [0], [0], [1], [0, 0, 1, 1], [], []>} : vector<8x8xbf16>, vector<8x32xbf16>, vector<8x32xf32> -> vector<8x32xf32>
    %688 = arith.addf %35, %687 : vector<8x32xf32>
    %cst_271 = arith.constant 0.000000e+00 : f32
    %689 = vector.broadcast %cst_271 : f32 to vector<8x32xf32>
    %690 = arith.maximumf %688, %689 : vector<8x32xf32>
    %691 = arith.truncf %690 : vector<8x32xf32> to vector<8x32xbf16>
    %cst_272 = arith.constant dense<0.000000e+00> : vector<8x32xf32>
    %692 = tpu.matmul %691, %42, %cst_272 {dimension_numbers = #tpu.dot_dimension_numbers<[1], [0], [0], [1], [0, 0, 1, 1], [], []>} : vector<8x32xbf16>, vector<32x32xbf16>, vector<8x32xf32> -> vector<8x32xf32>
    %693 = arith.addf %692, %40 : vector<8x32xf32>
    %cst_273 = arith.constant 0.000000e+00 : f32
    %694 = vector.broadcast %cst_273 : f32 to vector<8x32xf32>
    %695 = arith.cmpf ogt, %693, %694 : vector<8x32xf32>
    %cst_274 = arith.constant 0.000000e+00 : f32
    %696 = vector.broadcast %cst_274 : f32 to vector<8x32xf32>
    %697 = arith.select %695, %37, %696 : vector<8x32xi1>, vector<8x32xf32>
    %cst_275 = arith.constant 0.000000e+00 : f32
    %698 = vector.broadcast %cst_275 : f32 to vector<8x32xf32>
    %699 = arith.cmpf ogt, %688, %698 : vector<8x32xf32>
    %700 = arith.truncf %697 : vector<8x32xf32> to vector<8x32xbf16>
    %cst_276 = arith.constant dense<0.000000e+00> : vector<8x32xf32>
    %701 = tpu.matmul %700, %43, %cst_276 {dimension_numbers = #tpu.dot_dimension_numbers<[1], [0], [0], [1], [0, 0, 1, 1], [], []>} : vector<8x32xbf16>, vector<32x32xbf16>, vector<8x32xf32> -> vector<8x32xf32>
    %cst_277 = arith.constant 0.000000e+00 : f32
    %702 = vector.broadcast %cst_277 : f32 to vector<8x32xf32>
    %703 = arith.select %699, %701, %702 : vector<8x32xi1>, vector<8x32xf32>
    %704 = arith.truncf %703 : vector<8x32xf32> to vector<8x32xbf16>
    %cst_278 = arith.constant dense<0.000000e+00> : vector<8x8xf32>
    %705 = tpu.matmul %704, %44, %cst_278 {dimension_numbers = #tpu.dot_dimension_numbers<[1], [0], [0], [1], [0, 0, 1, 1], [], []>} : vector<8x32xbf16>, vector<32x8xbf16>, vector<8x8xf32> -> vector<8x8xf32>
    %cst_279 = arith.constant 2.656250e-05 : f32
    %706 = vector.broadcast %cst_279 : f32 to vector<8x8xf32>
    %707 = arith.mulf %706, %681 : vector<8x8xf32>
    %708 = arith.addf %705, %707 : vector<8x8xf32>
    %709 = arith.mulf %708, %708 : vector<8x8xf32>
    %710 = vector.shape_cast %709 : vector<8x8xf32> to vector<1x8x8xf32>
    %cst_280 = arith.constant dense<0.000000e+00> : vector<1xf32>
    %711 = vector.multi_reduction <add>, %710, %cst_280 [1, 2] : vector<1x8x8xf32> to vector<1xf32>
    %712 = vector.shape_cast %711 : vector<1xf32> to vector<1x1x1xf32>
    %713 = vector.extract %712[0, 0, 0] : f32 from vector<1x1x1xf32>
    %714 = vector.broadcast %713 : f32 to vector<1x1xf32>
    %715 = vector.broadcast %685 : vector<1x1xf32> to vector<8x8xf32>
    %716 = arith.mulf %715, %708 : vector<8x8xf32>
    %717 = arith.subf %681, %716 : vector<8x8xf32>
    %cst_281 = arith.constant -1.000000e+01 : f32
    %cst_282 = arith.constant 1.000000e+01 : f32
    %718 = vector.broadcast %cst_281 : f32 to vector<8x8xf32>
    %719 = arith.maximumf %718, %717 : vector<8x8xf32>
    %720 = vector.broadcast %cst_282 : f32 to vector<8x8xf32>
    %721 = arith.minimumf %720, %719 : vector<8x8xf32>
    %cst_283 = arith.constant 9.99999997E-7 : f32
    %722 = vector.broadcast %cst_283 : f32 to vector<1x1xf32>
    %723 = arith.cmpf olt, %714, %722 : vector<1x1xf32>
    %cst_284 = arith.constant 0.000000e+00 : f32
    %724 = vector.broadcast %cst_284 : f32 to vector<1x1xf32>
    %725 = arith.select %723, %724, %685 : vector<1x1xi1>, vector<1x1xf32>
    %c17_i32 = arith.constant 17 : i32
    %726 = arith.truncf %721 : vector<8x8xf32> to vector<8x8xbf16>
    %cst_285 = arith.constant dense<0.000000e+00> : vector<8x32xf32>
    %727 = tpu.matmul %726, %41, %cst_285 {dimension_numbers = #tpu.dot_dimension_numbers<[1], [0], [0], [1], [0, 0, 1, 1], [], []>} : vector<8x8xbf16>, vector<8x32xbf16>, vector<8x32xf32> -> vector<8x32xf32>
    %728 = arith.addf %35, %727 : vector<8x32xf32>
    %cst_286 = arith.constant 0.000000e+00 : f32
    %729 = vector.broadcast %cst_286 : f32 to vector<8x32xf32>
    %730 = arith.maximumf %728, %729 : vector<8x32xf32>
    %731 = arith.truncf %730 : vector<8x32xf32> to vector<8x32xbf16>
    %cst_287 = arith.constant dense<0.000000e+00> : vector<8x32xf32>
    %732 = tpu.matmul %731, %42, %cst_287 {dimension_numbers = #tpu.dot_dimension_numbers<[1], [0], [0], [1], [0, 0, 1, 1], [], []>} : vector<8x32xbf16>, vector<32x32xbf16>, vector<8x32xf32> -> vector<8x32xf32>
    %733 = arith.addf %732, %40 : vector<8x32xf32>
    %cst_288 = arith.constant 0.000000e+00 : f32
    %734 = vector.broadcast %cst_288 : f32 to vector<8x32xf32>
    %735 = arith.cmpf ogt, %733, %734 : vector<8x32xf32>
    %cst_289 = arith.constant 0.000000e+00 : f32
    %736 = vector.broadcast %cst_289 : f32 to vector<8x32xf32>
    %737 = arith.select %735, %37, %736 : vector<8x32xi1>, vector<8x32xf32>
    %cst_290 = arith.constant 0.000000e+00 : f32
    %738 = vector.broadcast %cst_290 : f32 to vector<8x32xf32>
    %739 = arith.cmpf ogt, %728, %738 : vector<8x32xf32>
    %740 = arith.truncf %737 : vector<8x32xf32> to vector<8x32xbf16>
    %cst_291 = arith.constant dense<0.000000e+00> : vector<8x32xf32>
    %741 = tpu.matmul %740, %43, %cst_291 {dimension_numbers = #tpu.dot_dimension_numbers<[1], [0], [0], [1], [0, 0, 1, 1], [], []>} : vector<8x32xbf16>, vector<32x32xbf16>, vector<8x32xf32> -> vector<8x32xf32>
    %cst_292 = arith.constant 0.000000e+00 : f32
    %742 = vector.broadcast %cst_292 : f32 to vector<8x32xf32>
    %743 = arith.select %739, %741, %742 : vector<8x32xi1>, vector<8x32xf32>
    %744 = arith.truncf %743 : vector<8x32xf32> to vector<8x32xbf16>
    %cst_293 = arith.constant dense<0.000000e+00> : vector<8x8xf32>
    %745 = tpu.matmul %744, %44, %cst_293 {dimension_numbers = #tpu.dot_dimension_numbers<[1], [0], [0], [1], [0, 0, 1, 1], [], []>} : vector<8x32xbf16>, vector<32x8xbf16>, vector<8x8xf32> -> vector<8x8xf32>
    %cst_294 = arith.constant 2.656250e-05 : f32
    %746 = vector.broadcast %cst_294 : f32 to vector<8x8xf32>
    %747 = arith.mulf %746, %721 : vector<8x8xf32>
    %748 = arith.addf %745, %747 : vector<8x8xf32>
    %749 = arith.mulf %748, %748 : vector<8x8xf32>
    %750 = vector.shape_cast %749 : vector<8x8xf32> to vector<1x8x8xf32>
    %cst_295 = arith.constant dense<0.000000e+00> : vector<1xf32>
    %751 = vector.multi_reduction <add>, %750, %cst_295 [1, 2] : vector<1x8x8xf32> to vector<1xf32>
    %752 = vector.shape_cast %751 : vector<1xf32> to vector<1x1x1xf32>
    %753 = vector.extract %752[0, 0, 0] : f32 from vector<1x1x1xf32>
    %754 = vector.broadcast %753 : f32 to vector<1x1xf32>
    %755 = vector.broadcast %725 : vector<1x1xf32> to vector<8x8xf32>
    %756 = arith.mulf %755, %748 : vector<8x8xf32>
    %757 = arith.subf %721, %756 : vector<8x8xf32>
    %cst_296 = arith.constant -1.000000e+01 : f32
    %cst_297 = arith.constant 1.000000e+01 : f32
    %758 = vector.broadcast %cst_296 : f32 to vector<8x8xf32>
    %759 = arith.maximumf %758, %757 : vector<8x8xf32>
    %760 = vector.broadcast %cst_297 : f32 to vector<8x8xf32>
    %761 = arith.minimumf %760, %759 : vector<8x8xf32>
    %cst_298 = arith.constant 9.99999997E-7 : f32
    %762 = vector.broadcast %cst_298 : f32 to vector<1x1xf32>
    %763 = arith.cmpf olt, %754, %762 : vector<1x1xf32>
    %cst_299 = arith.constant 0.000000e+00 : f32
    %764 = vector.broadcast %cst_299 : f32 to vector<1x1xf32>
    %765 = arith.select %763, %764, %725 : vector<1x1xi1>, vector<1x1xf32>
    %c18_i32 = arith.constant 18 : i32
    %766 = arith.truncf %761 : vector<8x8xf32> to vector<8x8xbf16>
    %cst_300 = arith.constant dense<0.000000e+00> : vector<8x32xf32>
    %767 = tpu.matmul %766, %41, %cst_300 {dimension_numbers = #tpu.dot_dimension_numbers<[1], [0], [0], [1], [0, 0, 1, 1], [], []>} : vector<8x8xbf16>, vector<8x32xbf16>, vector<8x32xf32> -> vector<8x32xf32>
    %768 = arith.addf %35, %767 : vector<8x32xf32>
    %cst_301 = arith.constant 0.000000e+00 : f32
    %769 = vector.broadcast %cst_301 : f32 to vector<8x32xf32>
    %770 = arith.maximumf %768, %769 : vector<8x32xf32>
    %771 = arith.truncf %770 : vector<8x32xf32> to vector<8x32xbf16>
    %cst_302 = arith.constant dense<0.000000e+00> : vector<8x32xf32>
    %772 = tpu.matmul %771, %42, %cst_302 {dimension_numbers = #tpu.dot_dimension_numbers<[1], [0], [0], [1], [0, 0, 1, 1], [], []>} : vector<8x32xbf16>, vector<32x32xbf16>, vector<8x32xf32> -> vector<8x32xf32>
    %773 = arith.addf %772, %40 : vector<8x32xf32>
    %cst_303 = arith.constant 0.000000e+00 : f32
    %774 = vector.broadcast %cst_303 : f32 to vector<8x32xf32>
    %775 = arith.cmpf ogt, %773, %774 : vector<8x32xf32>
    %cst_304 = arith.constant 0.000000e+00 : f32
    %776 = vector.broadcast %cst_304 : f32 to vector<8x32xf32>
    %777 = arith.select %775, %37, %776 : vector<8x32xi1>, vector<8x32xf32>
    %cst_305 = arith.constant 0.000000e+00 : f32
    %778 = vector.broadcast %cst_305 : f32 to vector<8x32xf32>
    %779 = arith.cmpf ogt, %768, %778 : vector<8x32xf32>
    %780 = arith.truncf %777 : vector<8x32xf32> to vector<8x32xbf16>
    %cst_306 = arith.constant dense<0.000000e+00> : vector<8x32xf32>
    %781 = tpu.matmul %780, %43, %cst_306 {dimension_numbers = #tpu.dot_dimension_numbers<[1], [0], [0], [1], [0, 0, 1, 1], [], []>} : vector<8x32xbf16>, vector<32x32xbf16>, vector<8x32xf32> -> vector<8x32xf32>
    %cst_307 = arith.constant 0.000000e+00 : f32
    %782 = vector.broadcast %cst_307 : f32 to vector<8x32xf32>
    %783 = arith.select %779, %781, %782 : vector<8x32xi1>, vector<8x32xf32>
    %784 = arith.truncf %783 : vector<8x32xf32> to vector<8x32xbf16>
    %cst_308 = arith.constant dense<0.000000e+00> : vector<8x8xf32>
    %785 = tpu.matmul %784, %44, %cst_308 {dimension_numbers = #tpu.dot_dimension_numbers<[1], [0], [0], [1], [0, 0, 1, 1], [], []>} : vector<8x32xbf16>, vector<32x8xbf16>, vector<8x8xf32> -> vector<8x8xf32>
    %cst_309 = arith.constant 2.656250e-05 : f32
    %786 = vector.broadcast %cst_309 : f32 to vector<8x8xf32>
    %787 = arith.mulf %786, %761 : vector<8x8xf32>
    %788 = arith.addf %785, %787 : vector<8x8xf32>
    %789 = arith.mulf %788, %788 : vector<8x8xf32>
    %790 = vector.shape_cast %789 : vector<8x8xf32> to vector<1x8x8xf32>
    %cst_310 = arith.constant dense<0.000000e+00> : vector<1xf32>
    %791 = vector.multi_reduction <add>, %790, %cst_310 [1, 2] : vector<1x8x8xf32> to vector<1xf32>
    %792 = vector.shape_cast %791 : vector<1xf32> to vector<1x1x1xf32>
    %793 = vector.extract %792[0, 0, 0] : f32 from vector<1x1x1xf32>
    %794 = vector.broadcast %793 : f32 to vector<1x1xf32>
    %795 = vector.broadcast %765 : vector<1x1xf32> to vector<8x8xf32>
    %796 = arith.mulf %795, %788 : vector<8x8xf32>
    %797 = arith.subf %761, %796 : vector<8x8xf32>
    %cst_311 = arith.constant -1.000000e+01 : f32
    %cst_312 = arith.constant 1.000000e+01 : f32
    %798 = vector.broadcast %cst_311 : f32 to vector<8x8xf32>
    %799 = arith.maximumf %798, %797 : vector<8x8xf32>
    %800 = vector.broadcast %cst_312 : f32 to vector<8x8xf32>
    %801 = arith.minimumf %800, %799 : vector<8x8xf32>
    %cst_313 = arith.constant 9.99999997E-7 : f32
    %802 = vector.broadcast %cst_313 : f32 to vector<1x1xf32>
    %803 = arith.cmpf olt, %794, %802 : vector<1x1xf32>
    %cst_314 = arith.constant 0.000000e+00 : f32
    %804 = vector.broadcast %cst_314 : f32 to vector<1x1xf32>
    %805 = arith.select %803, %804, %765 : vector<1x1xi1>, vector<1x1xf32>
    %c19_i32 = arith.constant 19 : i32
    %806 = arith.truncf %801 : vector<8x8xf32> to vector<8x8xbf16>
    %cst_315 = arith.constant dense<0.000000e+00> : vector<8x32xf32>
    %807 = tpu.matmul %806, %41, %cst_315 {dimension_numbers = #tpu.dot_dimension_numbers<[1], [0], [0], [1], [0, 0, 1, 1], [], []>} : vector<8x8xbf16>, vector<8x32xbf16>, vector<8x32xf32> -> vector<8x32xf32>
    %808 = arith.addf %35, %807 : vector<8x32xf32>
    %cst_316 = arith.constant 0.000000e+00 : f32
    %809 = vector.broadcast %cst_316 : f32 to vector<8x32xf32>
    %810 = arith.maximumf %808, %809 : vector<8x32xf32>
    %811 = arith.truncf %810 : vector<8x32xf32> to vector<8x32xbf16>
    %cst_317 = arith.constant dense<0.000000e+00> : vector<8x32xf32>
    %812 = tpu.matmul %811, %42, %cst_317 {dimension_numbers = #tpu.dot_dimension_numbers<[1], [0], [0], [1], [0, 0, 1, 1], [], []>} : vector<8x32xbf16>, vector<32x32xbf16>, vector<8x32xf32> -> vector<8x32xf32>
    %813 = arith.addf %812, %40 : vector<8x32xf32>
    %cst_318 = arith.constant 0.000000e+00 : f32
    %814 = vector.broadcast %cst_318 : f32 to vector<8x32xf32>
    %815 = arith.cmpf ogt, %813, %814 : vector<8x32xf32>
    %cst_319 = arith.constant 0.000000e+00 : f32
    %816 = vector.broadcast %cst_319 : f32 to vector<8x32xf32>
    %817 = arith.select %815, %37, %816 : vector<8x32xi1>, vector<8x32xf32>
    %cst_320 = arith.constant 0.000000e+00 : f32
    %818 = vector.broadcast %cst_320 : f32 to vector<8x32xf32>
    %819 = arith.cmpf ogt, %808, %818 : vector<8x32xf32>
    %820 = arith.truncf %817 : vector<8x32xf32> to vector<8x32xbf16>
    %cst_321 = arith.constant dense<0.000000e+00> : vector<8x32xf32>
    %821 = tpu.matmul %820, %43, %cst_321 {dimension_numbers = #tpu.dot_dimension_numbers<[1], [0], [0], [1], [0, 0, 1, 1], [], []>} : vector<8x32xbf16>, vector<32x32xbf16>, vector<8x32xf32> -> vector<8x32xf32>
    %cst_322 = arith.constant 0.000000e+00 : f32
    %822 = vector.broadcast %cst_322 : f32 to vector<8x32xf32>
    %823 = arith.select %819, %821, %822 : vector<8x32xi1>, vector<8x32xf32>
    %824 = arith.truncf %823 : vector<8x32xf32> to vector<8x32xbf16>
    %cst_323 = arith.constant dense<0.000000e+00> : vector<8x8xf32>
    %825 = tpu.matmul %824, %44, %cst_323 {dimension_numbers = #tpu.dot_dimension_numbers<[1], [0], [0], [1], [0, 0, 1, 1], [], []>} : vector<8x32xbf16>, vector<32x8xbf16>, vector<8x8xf32> -> vector<8x8xf32>
    %cst_324 = arith.constant 2.656250e-05 : f32
    %826 = vector.broadcast %cst_324 : f32 to vector<8x8xf32>
    %827 = arith.mulf %826, %801 : vector<8x8xf32>
    %828 = arith.addf %825, %827 : vector<8x8xf32>
    %829 = arith.mulf %828, %828 : vector<8x8xf32>
    %830 = vector.shape_cast %829 : vector<8x8xf32> to vector<1x8x8xf32>
    %cst_325 = arith.constant dense<0.000000e+00> : vector<1xf32>
    %831 = vector.multi_reduction <add>, %830, %cst_325 [1, 2] : vector<1x8x8xf32> to vector<1xf32>
    %832 = vector.shape_cast %831 : vector<1xf32> to vector<1x1x1xf32>
    %833 = vector.extract %832[0, 0, 0] : f32 from vector<1x1x1xf32>
    %834 = vector.broadcast %833 : f32 to vector<1x1xf32>
    %835 = vector.broadcast %805 : vector<1x1xf32> to vector<8x8xf32>
    %836 = arith.mulf %835, %828 : vector<8x8xf32>
    %837 = arith.subf %801, %836 : vector<8x8xf32>
    %cst_326 = arith.constant -1.000000e+01 : f32
    %cst_327 = arith.constant 1.000000e+01 : f32
    %838 = vector.broadcast %cst_326 : f32 to vector<8x8xf32>
    %839 = arith.maximumf %838, %837 : vector<8x8xf32>
    %840 = vector.broadcast %cst_327 : f32 to vector<8x8xf32>
    %841 = arith.minimumf %840, %839 : vector<8x8xf32>
    %cst_328 = arith.constant 9.99999997E-7 : f32
    %842 = vector.broadcast %cst_328 : f32 to vector<1x1xf32>
    %843 = arith.cmpf olt, %834, %842 : vector<1x1xf32>
    %cst_329 = arith.constant 0.000000e+00 : f32
    %844 = vector.broadcast %cst_329 : f32 to vector<1x1xf32>
    %845 = arith.select %843, %844, %805 : vector<1x1xi1>, vector<1x1xf32>
    %c0_330 = arith.constant 0 : index
    %c0_331 = arith.constant 0 : index
    %846 = vector.load %arg5[%c0_330, %c0_331] : memref<8x8xf32, #tpu.memory_space<vmem>>, vector<8x8xf32>
    tpu.vector_store %arg5[%c0_330, %c0_331], %841 {strides = array<i32>} : memref<8x8xf32, #tpu.memory_space<vmem>>, vector<8x8xf32>,
    return
  }
  func.func @transform_0(%arg0: i32) -> (i32, i32) {
    %c0_i32 = arith.constant 0 : i32
    %c0_i32_0 = arith.constant 0 : i32
    %c0_i32_1 = arith.constant 0 : i32
    return %c0_i32, %c0_i32_0 : i32, i32
  }
  func.func @transform_1(%arg0: i32) -> (i32, i32) {
    %c0_i32 = arith.constant 0 : i32
    %c0_i32_0 = arith.constant 0 : i32
    %c0_i32_1 = arith.constant 0 : i32
    return %c0_i32, %c0_i32_0 : i32, i32
  }
  func.func @transform_2(%arg0: i32) -> (i32, i32) {
    %c0_i32 = arith.constant 0 : i32
    %c0_i32_0 = arith.constant 0 : i32
    %c0_i32_1 = arith.constant 0 : i32
    return %c0_i32, %c0_i32_0 : i32, i32
  }
  func.func @transform_3(%arg0: i32) -> (i32, i32) {
    %c0_i32 = arith.constant 0 : i32
    %c0_i32_0 = arith.constant 0 : i32
    %c0_i32_1 = arith.constant 0 : i32
    return %c0_i32, %c0_i32_0 : i32, i32
  }
  func.func @transform_4(%arg0: i32) -> (i32, i32) {
    %c0_i32 = arith.constant 0 : i32
    %c0_i32_0 = arith.constant 0 : i32
    %c0_i32_1 = arith.constant 0 : i32
    return %c0_i32, %c0_i32_0 : i32, i32
  }
}

</mosaic_0001>

<bundles_post_ra>
// kernel: tpu_custom_call.1
= control target key start
LH: loop header
LB: loop body
LE: loop exit
PB: predicated region body
PF: predicated region fallthrough
CT: control target
= control target key end

     0   :  { %vm64_vm0 = vcmask 130048   ;;  %v2336_v3 = vmov 0   ;;  %s2811_s0 = inlined_call_operand.vmem [shape: f32[8,16], index: 0, kind: input, shape index: {}]   ;;  %s2812_s1 = inlined_call_operand.vmem [shape: s32[8,1], index: 1, kind: input, shape index: {}]   ;;  %s2813_s2 = inlined_call_operand.vmem [shape: f32[152,32], index: 2, kind: input, shape index: {}]   ;;  %s2814_s3 = inlined_call_operand.vmem [shape: bf16[112,32], index: 3, kind: input, shape index: {}]   ;;  %s2815_s4 = inlined_call_operand.hbm [shape: f32[8,8], index: 4, kind: output, shape index: {}]  }
   0x1   :  { %v20_v0 = vld [vmem:[%s2812_s1] sm:$0xff]  ;;  %v63_v1 = vld [vmem:[%s2813_s2 + $0x8] sm:$0xff]  ;;  %2297 = vset.pattern.permute.xlu0 %v2336_v3 }
   0x2   :  { %v62_v2 = vld [vmem:[%s2813_s2] sm:$0xff]  ;;  %vm21_vm1 = vcmp.gt.s32.totalorder %v20_v0, 0  ;;  %82 = vmatpush.msra.mxu1 %v63_v1 }
   0x3   :  { %v19_v4 = vld [vmem:[%s2811_s0] sm:$0xff]  ;;  %v22_v5 = vsel %vm21_vm1, %v20_v0, 0 }
   0x4   :  { %26 = vperm.xlu0 %2297, %v22_v5   ;;  %83 = vmatpush.msra.mxu1 %v62_v2 }
   0x5   :  { %9 = vsyncpa [#allocation3], 0  ;;  %2119 = vmatmul.msk.f32.vlgmr.msra.gmra.mxu1 %vm64_vm0, %v19_v4  ;;  %v31_v6 = vld [vmem:[%s2813_s2 + $0x10] sm:$0x3]  ;;  %vm38_vm2 = vcmask 1041408   ;;  %v23_v8 = vlaneseq  ;;  %vm34_vm3 = vcmask 15360  }
   0x6   :  { %v173_v7 = vld [vmem:[%s2813_s2 + $0x90] sm:$0x3]  ;;  %2117 = vmatpush.msk.msra.mxu0 %vm38_vm2, %v31_v6  ;;  %v2337_v11 = vmov 0.0   ;;  %v92_v13 = vld [vmem:[%s2813_s2 + $0x38] sm:$0xff]  ;;  %v90_v15 = vld [vmem:[%s2813_s2 + $0x28] sm:$0xff]  ;;  %vm95_vm5 = vcmask 261120  }
   0x7   :  { %2123 = vmatpush.msk.msrb.mxu1 %vm38_vm2, %v173_v7  ;;  %v24_v9 = vand.u32 127, %v23_v8  ;;  %111 = vmatpush.msra.mxu2 %v92_v13  ;;  %v91_v14 = vld [vmem:[%s2813_s2 + $0x30] sm:$0xff]  ;;  %v89_v16 = vld [vmem:[%s2813_s2 + $0x20] sm:$0xff]  ;;  %v2298_v18 = vld [vmem:[%s2813_s2 + $0x18] ss:$0 sm:$0xff]  ;;  %vm217_vm6 = vcmask 1043456  }
   0x8   :  { %v123_v17 = vld [vmem:[%s2813_s2 + $0x60] sm:$0xff]  ;;  %v122_v24 = vld [vmem:[%s2813_s2 + $0x58] sm:$0xff]  ;;  %v121_v25 = vld [vmem:[%s2813_s2 + $0x50] sm:$0xff]  ;;  %vm213_vm7 = vcmask 64512  }
   0x9   :  { %112 = vmatpush.msra.mxu2 %v91_v14  ;;  %141 = vmatpush.msra.mxu3 %v123_v17  ;;  %v120_v26 = vld [vmem:[%s2813_s2 + $0x48] sm:$0xff]  ;;  %v199_v27 = vld [vmem:[%s2814_s3] sm:$0xf]  ;;  %v150_v33 = vld [vmem:[%s2813_s2 + $0x78] sm:$0xff] }
   0xa   :  { %v2415_v28 = vsel %vm217_vm6, %v199_v27, 0  ;;  %v2299_v29 = vld [vmem:[%s2813_s2 + $0x40] ss:$0 sm:$0xff]  ;;  %v149_v34 = vld [vmem:[%s2813_s2 + $0x70] sm:$0xff]  ;;  %167 = vmatpush.msrb.mxu0 %v150_v33  ;;  %v2300_v35 = vld [vmem:[%s2813_s2 + $0x68] ss:$0 sm:$0xff] }
   0xb   :  { %113 = vmatpush.msra.mxu2 %v90_v15  ;;  %142 = vmatpush.msra.mxu3 %v122_v24  ;;  %v2438_v39 = vld [vmem:[%s2814_s3 + $0x10] sm:$0xff]  ;;  %v2444_v40 = vld [vmem:[%s2814_s3 + $0x8] sm:$0xff]  ;;  %v2451_v41 = vld [vmem:[%s2814_s3 + $0x20] sm:$0xff] }
   0xc   :  { %168 = vmatpush.msrb.mxu0 %v149_v34  ;;  %v2301_v42 = vld [vmem:[%s2813_s2 + $0x80] ss:$0 sm:$0xff]  ;;  %v2467_v50 = vld [vmem:[%s2814_s3 + $0x18] sm:$0xff]  ;;  %v2474_v51 = vld [vmem:[%s2814_s3 + $0x30] sm:$0xff] }
   0xd   :  { %114 = vmatpush.msra.mxu2 %v89_v16  ;;  %143 = vmatpush.msra.mxu3 %v121_v25  ;;  %v2481_v52 = vld [vmem:[%s2813_s2 + $0x88] ss:$0 sm:$0xff] }
   0xe   :  { %321 = vmatpush.bf16.msra.mxu1 %v2474_v51  ;;  %v2493_v59 = vld [vmem:[%s2814_s3 + $0x28] sm:$0xff] }
   0xf   :  { %144 = vmatpush.msra.mxu3 %v120_v26  ;;  %228 = vmatpush.bf16.msrb.mxu2 %v2415_v28 }
  0x11   :  { %258 = vmatpush.bf16.msrb.mxu3 %v2438_v39 }
  0x12   :  { %322 = vmatpush.bf16.msra.mxu1 %v2493_v59 }
  0x15   :  { %259 = vmatpush.bf16.msrb.mxu3 %v2444_v40 }
  0x76   :  { %v27_v10 = vpop.permute.xlu0 %26 }
  0x77   :  { %vm28_vm4 = vcmp.eq.s32.totalorder %v24_v9, %v27_v10 }
  0x78   :  { %v2116_v12 = vsel %vm28_vm4, 1.0, %v2337_v11 }
  0x79   :  { %2118 = vmatmul.msk.f32.vlgmr.msra.gmra.mxu0 %vm34_vm3, %v2116_v12  ;;  %2124 = vmatmul.msk.f32.vlgmr.msrb.gmra.mxu1 %vm34_vm3, %v2116_v12 }
  0x7a   :  { %290 = vmatpush.bf16.msra.mxu0 %v2451_v41  ;;  %414 = vmatpush.bf16.msrb.mxu1 %v2474_v51 }
  0x7e   :  { %291 = vmatpush.bf16.msra.mxu0 %v2467_v50  ;;  %415 = vmatpush.bf16.msrb.mxu1 %v2493_v59 }
  0x81   :  { %2122 = vmatmul.msk.f32.vlgmr.msrb.gmra.mxu0 %vm64_vm0, %v19_v4 }
  0x82   :  { %v85_v21 = vpop.f32.mrf.mxu1  ;;  %395 = vmatpush.bf16.msrb.mxu0 %v2451_v41 }
  0x86   :  { %396 = vmatpush.bf16.msrb.mxu0 %v2467_v50 }
  0xf6   :  { %v59_v19 = vpop.f32.mrf.mxu0  ;;  %v2484_v55 = vpop.f32.mrf.mxu1 }
  0xf7   :  { %v60_v20 = vadd.f32 %v2298_v18, %v59_v19 }
  0xf9   :  { %v86_v22 = vadd.f32 %v85_v21, %v60_v20 }
  0xfb   :  { %v88_v23 = vmax.f32 %v86_v22, 0.0 }
  0xfd   :  { %2120 = vmatmul.msk.f32.vlgmr.msra.gmra.mxu2 %vm95_vm5, %v88_v23 }
  0xfe   :  { %357 = vmatpush.bf16.msra.mxu2 %v2415_v28  ;;  %v170_v43 = vpop.f32.mrf.mxu0 }
  0xff   :  { %v2458_v44 = vadd.f32 %v2301_v42, %v170_v43 }
 0x180   :  { %v116_v30 = vpop.f32.mrf.mxu2 }
 0x181   :  { %v117_v31 = vadd.f32 %v2299_v29, %v116_v30 }
 0x183   :  { %v119_v32 = vmax.f32 %v117_v31, 0.0 }
 0x185   :  { %2121 = vmatmul.msk.f32.vlgmr.msra.gmra.mxu3 %vm95_vm5, %v119_v32 }
 0x186   :  { %375 = vmatpush.bf16.msra.mxu3 %v2438_v39 }
 0x18a   :  { %376 = vmatpush.bf16.msra.mxu3 %v2444_v40 }
 0x208   :  { %v146_v36 = vpop.f32.mrf.mxu3 }
 0x209   :  { %v147_v37 = vadd.f32 %v2300_v35, %v146_v36  ;;  %v2338_v36 = vmov 0.1  }
 0x20b   :  { %v212_v38 = vpack.c.bf16 %v147_v37, %v147_v37  ;;  %v299_v0 = vmul.f32 2.65625e-05, %v147_v37 }
 0x20d   :  { %2125 = vmatmul.msk.bf16.vlgmr.msrb.gmra.mxu2 %vm213_vm7, %v212_v38 }
 0x20e   :  { %450 = vmatpush.bf16.msrb.mxu2 %v2415_v28 }
 0x290   :  { %v230_v45 = vpop.f32.mrf.mxu2 }
 0x291   :  { %v234_v46 = vadd.f32 %v230_v45, %v2458_v44 }
 0x293   :  { %v235_v47 = vmax.f32 %v234_v46, 0.0  ;;  %vm267_vm9 = vcmp.gt.f32.partialorder %v234_v46, 0.0 }
 0x295   :  { %v236_v48 = vpack.c.bf16 %v235_v47, %v235_v47 }
 0x297   :  { %2134 = vmatmul.msk.bf16.vlgmr.msrb.gmra.mxu3 %vm95_vm5, %v236_v48 }
 0x298   :  { %v232_v49 = vpop.f32.mrf.mxu2  ;;  %468 = vmatpush.bf16.msrb.mxu3 %v2438_v39 }
 0x29c   :  { %469 = vmatpush.bf16.msrb.mxu3 %v2444_v40 }
 0x31a   :  { %v261_v53 = vpop.f32.mrf.mxu3 }
 0x31b   :  { %v262_v54 = vadd.f32 %v2481_v52, %v261_v53 }
 0x31d   :  { %vm265_vm8 = vcmp.gt.f32.partialorder %v262_v54, 0.0 }
 0x31e   :  { %v266_v56 = vsel %vm265_vm8, %v2484_v55, 0.0 }
 0x31f   :  { %v268_v57 = vpack.c.bf16 %v266_v56, %v266_v56 }
 0x321   :  { %2143 = vmatmul.msk.bf16.vlgmr.msra.gmra.mxu0 %vm95_vm5, %v268_v57 }
 0x322   :  { %v263_v58 = vpop.f32.mrf.mxu3  ;;  %488 = vmatpush.bf16.msra.mxu0 %v2451_v41 }
 0x326   :  { %489 = vmatpush.bf16.msra.mxu0 %v2467_v50 }
 0x39e   :  { %v293_v60 = vpop.f32.mrf.mxu0 }
 0x39f   :  { %v297_v61 = vsel %vm267_vm9, %v293_v60, 0.0 }
 0x3a0   :  { %v298_v62 = vpack.c.bf16 %v297_v61, %v297_v61 }
 0x3a2   :  { %2152 = vmatmul.msk.bf16.vlgmr.msra.gmra.mxu1 %vm95_vm5, %v298_v62 }
 0x3a3   :  { %507 = vmatpush.bf16.msra.mxu1 %v2474_v51 }
 0x3a6   :  { %v295_v63 = vpop.f32.mrf.mxu0 }
 0x3a7   :  { %508 = vmatpush.bf16.msra.mxu1 %v2493_v59 }
 0x41f   :  { %v324_v1 = vpop.f32.mrf.mxu1 }
 0x420   :  { %v325_v2 = vadd.f32 %v324_v1, %v299_v0 }
 0x422   :  { %v340_v3 = vmul.f32 0.1, %v325_v2  ;;  %v328_v4 = vmul.f32 %v325_v2, %v325_v2 }
 0x424   :  { %v341_v5 = vsub.f32 %v147_v37, %v340_v3  ;;  %v329_v6 = vsel %vm213_vm7, %v328_v4, 0.0 }
 0x425   :  { %330 = vadd.xlane.f32.xlu0 %v329_v6 }
 0x426   :  { %v2153_v7 = vclamps-f32 %v341_v5, 10.0 }
 0x427   :  { %v326_v8 = vpop.f32.mrf.mxu1 }
 0x428   :  { %v346_v9 = vpack.c.bf16 %v2153_v7, %v2153_v7  ;;  %v404_v33 = vmul.f32 2.65625e-05, %v2153_v7 }
 0x42a   :  { %2154 = vmatmul.msk.bf16.vlgmr.msra.gmra.mxu2 %vm213_vm7, %v346_v9 }
 0x42b   :  { %543 = vmatpush.bf16.msra.mxu2 %v2415_v28 }
 0x498   :  { %v331_v10 = vpop.xlane.xlu0 %330 }
 0x499   :  { %v332_v11 = vrot.slane %v331_v10, 4 }
 0x49b   :  { %v333_v12 = vadd.f32 %v332_v11, %v331_v10 }
 0x49d   :  { %v334_v13 = vrot.slane %v333_v12, 2 }
 0x49f   :  { %v335_v14 = vadd.f32 %v334_v13, %v333_v12 }
 0x4a1   :  { %v336_v15 = vrot.slane %v335_v14, 1 }
 0x4a3   :  { %v337_v16 = vadd.f32 %v336_v15, %v335_v14 }
 0x4a5   :  { %2255 = vpush %v337_v16 }
 0x4ad   :  { %v359_v17 = vpop.f32.mrf.mxu2 }
 0x4ae   :  { %v363_v18 = vadd.f32 %v359_v17, %v2458_v44 }
 0x4b0   :  { %v364_v19 = vmax.f32 %v363_v18, 0.0  ;;  %vm384_vm11 = vcmp.gt.f32.partialorder %v363_v18, 0.0 }
 0x4b2   :  { %v365_v20 = vpack.c.bf16 %v364_v19, %v364_v19 }
 0x4b4   :  { %2155 = vmatmul.msk.bf16.vlgmr.msra.gmra.mxu3 %vm95_vm5, %v365_v20 }
 0x4b5   :  { %v361_v21 = vpop.f32.mrf.mxu2  ;;  %561 = vmatpush.bf16.msra.mxu3 %v2438_v39 }
 0x4b9   :  { %562 = vmatpush.bf16.msra.mxu3 %v2444_v40 }
 0x4d6   :  { %s2256_s15 = spop %2255 }
 0x4d7   :  { %v339_v32 = vstv %s2256_s15 }
 0x4d8   :  { %vm344_vm12 = vcmp.lt.f32.partialorder %v339_v32, 1e-06 }
 0x4d9   :  { %v345_v37 = vsel %vm344_vm12, 0.0, %v2338_v36 }
 0x537   :  { %v378_v22 = vpop.f32.mrf.mxu3 }
 0x538   :  { %v379_v23 = vadd.f32 %v2481_v52, %v378_v22 }
 0x53a   :  { %vm382_vm10 = vcmp.gt.f32.partialorder %v379_v23, 0.0 }
 0x53b   :  { %v383_v24 = vsel %vm382_vm10, %v2484_v55, 0.0 }
 0x53c   :  { %v385_v25 = vpack.c.bf16 %v383_v24, %v383_v24 }
 0x53e   :  { %2156 = vmatmul.msk.bf16.vlgmr.msrb.gmra.mxu0 %vm95_vm5, %v385_v25 }
 0x53f   :  { %v380_v26 = vpop.f32.mrf.mxu3  ;;  %581 = vmatpush.bf16.msrb.mxu0 %v2451_v41 }
 0x543   :  { %582 = vmatpush.bf16.msrb.mxu0 %v2467_v50 }
 0x5bb   :  { %v398_v27 = vpop.f32.mrf.mxu0 }
 0x5bc   :  { %v402_v29 = vsel %vm384_vm11, %v398_v27, 0.0 }
 0x5bd   :  { %v403_v30 = vpack.c.bf16 %v402_v29, %v402_v29 }
 0x5bf   :  { %2157 = vmatmul.msk.bf16.vlgmr.msrb.gmra.mxu1 %vm95_vm5, %v403_v30 }
 0x5c0   :  { %600 = vmatpush.bf16.msrb.mxu1 %v2474_v51 }
 0x5c3   :  { %v400_v31 = vpop.f32.mrf.mxu0 }
 0x5c4   :  { %601 = vmatpush.bf16.msrb.mxu1 %v2493_v59 }
 0x63c   :  { %v417_v34 = vpop.f32.mrf.mxu1 }
 0x63d   :  { %v418_v35 = vadd.f32 %v417_v34, %v404_v33 }
 0x63f   :  { %v433_v38 = vmul.f32 %v418_v35, %v345_v37  ;;  %v421_v42 = vmul.f32 %v418_v35, %v418_v35 }
 0x641   :  { %v434_v43 = vsub.f32 %v2153_v7, %v433_v38  ;;  %v422_v45 = vsel %vm213_vm7, %v421_v42, 0.0 }
 0x642   :  { %423 = vadd.xlane.f32.xlu1 %v422_v45 }
 0x643   :  { %v2158_v46 = vclamps-f32 %v434_v43, 10.0 }
 0x644   :  { %v419_v47 = vpop.f32.mrf.mxu1 }
 0x645   :  { %v439_v48 = vpack.c.bf16 %v2158_v46, %v2158_v46  ;;  %v497_v12 = vmul.f32 2.65625e-05, %v2158_v46 }
 0x647   :  { %2159 = vmatmul.msk.bf16.vlgmr.msrb.gmra.mxu2 %vm213_vm7, %v439_v48 }
 0x648   :  { %636 = vmatpush.bf16.msrb.mxu2 %v2415_v28 }
 0x6b5   :  { %v424_v49 = vpop.xlane.xlu1 %423 }
 0x6b6   :  { %v425_v53 = vrot.slane %v424_v49, 4 }
 0x6b8   :  { %v426_v54 = vadd.f32 %v425_v53, %v424_v49 }
 0x6ba   :  { %v427_v56 = vrot.slane %v426_v54, 2 }
 0x6bc   :  { %v428_v57 = vadd.f32 %v427_v56, %v426_v54 }
 0x6be   :  { %v429_v58 = vrot.slane %v428_v57, 1 }
 0x6c0   :  { %v430_v60 = vadd.f32 %v429_v58, %v428_v57 }
 0x6c2   :  { %2257 = vpush %v430_v60 }
 0x6ca   :  { %v452_v61 = vpop.f32.mrf.mxu2 }
 0x6cb   :  { %v456_v62 = vadd.f32 %v452_v61, %v2458_v44 }
 0x6cd   :  { %v457_v63 = vmax.f32 %v456_v62, 0.0  ;;  %vm477_vm14 = vcmp.gt.f32.partialorder %v456_v62, 0.0 }
 0x6cf   :  { %v458_v0 = vpack.c.bf16 %v457_v63, %v457_v63 }
 0x6d1   :  { %2160 = vmatmul.msk.bf16.vlgmr.msrb.gmra.mxu3 %vm95_vm5, %v458_v0 }
 0x6d2   :  { %v454_v1 = vpop.f32.mrf.mxu2  ;;  %654 = vmatpush.bf16.msrb.mxu3 %v2438_v39 }
 0x6d6   :  { %655 = vmatpush.bf16.msrb.mxu3 %v2444_v40 }
 0x6f3   :  { %s2258_s16 = spop %2257 }
 0x6f4   :  { %v432_v11 = vstv %s2258_s16 }
 0x6f5   :  { %vm437_vm15 = vcmp.lt.f32.partialorder %v432_v11, 1e-06 }
 0x6f6   :  { %v438_v15 = vsel %vm437_vm15, 0.0, %v345_v37 }
 0x754   :  { %v471_v2 = vpop.f32.mrf.mxu3 }
 0x755   :  { %v472_v3 = vadd.f32 %v2481_v52, %v471_v2 }
 0x757   :  { %vm475_vm13 = vcmp.gt.f32.partialorder %v472_v3, 0.0 }
 0x758   :  { %v476_v4 = vsel %vm475_vm13, %v2484_v55, 0.0 }
 0x759   :  { %v478_v5 = vpack.c.bf16 %v476_v4, %v476_v4 }
 0x75b   :  { %2161 = vmatmul.msk.bf16.vlgmr.msra.gmra.mxu0 %vm95_vm5, %v478_v5 }
 0x75c   :  { %v473_v6 = vpop.f32.mrf.mxu3  ;;  %674 = vmatpush.bf16.msra.mxu0 %v2451_v41 }
 0x760   :  { %675 = vmatpush.bf16.msra.mxu0 %v2467_v50 }
 0x7d8   :  { %v491_v7 = vpop.f32.mrf.mxu0 }
 0x7d9   :  { %v495_v8 = vsel %vm477_vm14, %v491_v7, 0.0 }
 0x7da   :  { %v496_v9 = vpack.c.bf16 %v495_v8, %v495_v8 }
 0x7dc   :  { %2162 = vmatmul.msk.bf16.vlgmr.msra.gmra.mxu1 %vm95_vm5, %v496_v9 }
 0x7dd   :  { %693 = vmatpush.bf16.msra.mxu1 %v2474_v51 }
 0x7e0   :  { %v493_v10 = vpop.f32.mrf.mxu0 }
 0x7e1   :  { %694 = vmatpush.bf16.msra.mxu1 %v2493_v59 }
 0x859   :  { %v510_v13 = vpop.f32.mrf.mxu1 }
 0x85a   :  { %v511_v14 = vadd.f32 %v510_v13, %v497_v12 }
 0x85c   :  { %v526_v16 = vmul.f32 %v511_v14, %v438_v15  ;;  %v514_v17 = vmul.f32 %v511_v14, %v511_v14 }
 0x85e   :  { %v527_v18 = vsub.f32 %v2158_v46, %v526_v16  ;;  %v515_v19 = vsel %vm213_vm7, %v514_v17, 0.0 }
 0x85f   :  { %516 = vadd.xlane.f32.xlu1 %v515_v19 }
 0x860   :  { %v2163_v20 = vclamps-f32 %v527_v18, 10.0 }
 0x861   :  { %v512_v21 = vpop.f32.mrf.mxu1 }
 0x862   :  { %v532_v22 = vpack.c.bf16 %v2163_v20, %v2163_v20  ;;  %v590_v53 = vmul.f32 2.65625e-05, %v2163_v20 }
 0x864   :  { %2164 = vmatmul.msk.bf16.vlgmr.msra.gmra.mxu2 %vm213_vm7, %v532_v22 }
 0x865   :  { %729 = vmatpush.bf16.msra.mxu2 %v2415_v28 }
 0x8d2   :  { %v517_v23 = vpop.xlane.xlu1 %516 }
 0x8d3   :  { %v518_v24 = vrot.slane %v517_v23, 4 }
 0x8d5   :  { %v519_v25 = vadd.f32 %v518_v24, %v517_v23 }
 0x8d7   :  { %v520_v26 = vrot.slane %v519_v25, 2 }
 0x8d9   :  { %v521_v27 = vadd.f32 %v520_v26, %v519_v25 }
 0x8db   :  { %v522_v29 = vrot.slane %v521_v27, 1 }
 0x8dd   :  { %v523_v30 = vadd.f32 %v522_v29, %v521_v27 }
 0x8df   :  { %2259 = vpush %v523_v30 }
 0x8e7   :  { %v545_v31 = vpop.f32.mrf.mxu2 }
 0x8e8   :  { %v549_v32 = vadd.f32 %v545_v31, %v2458_v44 }
 0x8ea   :  { %v550_v33 = vmax.f32 %v549_v32, 0.0  ;;  %vm570_vm1 = vcmp.gt.f32.partialorder %v549_v32, 0.0 }
 0x8ec   :  { %v551_v34 = vpack.c.bf16 %v550_v33, %v550_v33 }
 0x8ee   :  { %2165 = vmatmul.msk.bf16.vlgmr.msra.gmra.mxu3 %vm95_vm5, %v551_v34 }
 0x8ef   :  { %v547_v35 = vpop.f32.mrf.mxu2  ;;  %747 = vmatpush.bf16.msra.mxu3 %v2438_v39 }
 0x8f3   :  { %748 = vmatpush.bf16.msra.mxu3 %v2444_v40 }
 0x910   :  { %s2260_s17 = spop %2259 }
 0x911   :  { %v525_v49 = vstv %s2260_s17 }
 0x912   :  { %vm530_vm2 = vcmp.lt.f32.partialorder %v525_v49, 1e-06 }
 0x913   :  { %v531_v57 = vsel %vm530_vm2, 0.0, %v438_v15 }
 0x971   :  { %v564_v36 = vpop.f32.mrf.mxu3 }
 0x972   :  { %v565_v37 = vadd.f32 %v2481_v52, %v564_v36 }
 0x974   :  { %vm568_vm0 = vcmp.gt.f32.partialorder %v565_v37, 0.0 }
 0x975   :  { %v569_v38 = vsel %vm568_vm0, %v2484_v55, 0.0 }
 0x976   :  { %v571_v42 = vpack.c.bf16 %v569_v38, %v569_v38 }
 0x978   :  { %2166 = vmatmul.msk.bf16.vlgmr.msrb.gmra.mxu0 %vm95_vm5, %v571_v42 }
 0x979   :  { %v566_v43 = vpop.f32.mrf.mxu3  ;;  %767 = vmatpush.bf16.msrb.mxu0 %v2451_v41 }
 0x97d   :  { %768 = vmatpush.bf16.msrb.mxu0 %v2467_v50 }
 0x9f5   :  { %v584_v45 = vpop.f32.mrf.mxu0 }
 0x9f6   :  { %v588_v46 = vsel %vm570_vm1, %v584_v45, 0.0 }
 0x9f7   :  { %v589_v47 = vpack.c.bf16 %v588_v46, %v588_v46 }
 0x9f9   :  { %2167 = vmatmul.msk.bf16.vlgmr.msrb.gmra.mxu1 %vm95_vm5, %v589_v47 }
 0x9fa   :  { %786 = vmatpush.bf16.msrb.mxu1 %v2474_v51 }
 0x9fd   :  { %v586_v48 = vpop.f32.mrf.mxu0 }
 0x9fe   :  { %787 = vmatpush.bf16.msrb.mxu1 %v2493_v59 }
 0xa76   :  { %v603_v54 = vpop.f32.mrf.mxu1 }
 0xa77   :  { %v604_v56 = vadd.f32 %v603_v54, %v590_v53 }
 0xa79   :  { %v619_v58 = vmul.f32 %v604_v56, %v531_v57  ;;  %v607_v60 = vmul.f32 %v604_v56, %v604_v56 }
 0xa7b   :  { %v620_v61 = vsub.f32 %v2163_v20, %v619_v58  ;;  %v608_v62 = vsel %vm213_vm7, %v607_v60, 0.0 }
 0xa7c   :  { %609 = vadd.xlane.f32.xlu2 %v608_v62 }
 0xa7d   :  { %v2168_v63 = vclamps-f32 %v620_v61, 10.0 }
 0xa7e   :  { %v605_v0 = vpop.f32.mrf.mxu1 }
 0xa7f   :  { %v625_v1 = vpack.c.bf16 %v2168_v63, %v2168_v63  ;;  %v683_v24 = vmul.f32 2.65625e-05, %v2168_v63 }
 0xa81   :  { %2169 = vmatmul.msk.bf16.vlgmr.msrb.gmra.mxu2 %vm213_vm7, %v625_v1 }
 0xa82   :  { %822 = vmatpush.bf16.msrb.mxu2 %v2415_v28 }
 0xaef   :  { %v610_v2 = vpop.xlane.xlu2 %609 }
 0xaf0   :  { %v611_v3 = vrot.slane %v610_v2, 4 }
 0xaf2   :  { %v612_v4 = vadd.f32 %v611_v3, %v610_v2 }
 0xaf4   :  { %v613_v5 = vrot.slane %v612_v4, 2 }
 0xaf6   :  { %v614_v6 = vadd.f32 %v613_v5, %v612_v4 }
 0xaf8   :  { %v615_v7 = vrot.slane %v614_v6, 1 }
 0xafa   :  { %v616_v8 = vadd.f32 %v615_v7, %v614_v6 }
 0xafc   :  { %2261 = vpush %v616_v8 }
 0xb04   :  { %v638_v9 = vpop.f32.mrf.mxu2 }
 0xb05   :  { %v642_v10 = vadd.f32 %v638_v9, %v2458_v44 }
 0xb07   :  { %v643_v11 = vmax.f32 %v642_v10, 0.0  ;;  %vm663_vm4 = vcmp.gt.f32.partialorder %v642_v10, 0.0 }
 0xb09   :  { %v644_v12 = vpack.c.bf16 %v643_v11, %v643_v11 }
 0xb0b   :  { %2170 = vmatmul.msk.bf16.vlgmr.msrb.gmra.mxu3 %vm95_vm5, %v644_v12 }
 0xb0c   :  { %v640_v13 = vpop.f32.mrf.mxu2  ;;  %840 = vmatpush.bf16.msrb.mxu3 %v2438_v39 }
 0xb10   :  { %841 = vmatpush.bf16.msrb.mxu3 %v2444_v40 }
 0xb2d   :  { %s2262_s18 = spop %2261 }
 0xb2e   :  { %v618_v23 = vstv %s2262_s18  ;;  %s2339_s18 = smov [#allocation2]  }
 0xb2f   :  { %vm623_vm6 = vcmp.lt.f32.partialorder %v618_v23, 1e-06 }
 0xb30   :  { %v624_v27 = vsel %vm623_vm6, 0.0, %v531_v57 }
 0xb8e   :  { %v657_v14 = vpop.f32.mrf.mxu3 }
 0xb8f   :  { %v658_v15 = vadd.f32 %v2481_v52, %v657_v14 }
 0xb91   :  { %vm661_vm3 = vcmp.gt.f32.partialorder %v658_v15, 0.0 }
 0xb92   :  { %v662_v16 = vsel %vm661_vm3, %v2484_v55, 0.0 }
 0xb93   :  { %v664_v17 = vpack.c.bf16 %v662_v16, %v662_v16 }
 0xb95   :  { %2171 = vmatmul.msk.bf16.vlgmr.msra.gmra.mxu0 %vm95_vm5, %v664_v17 }
 0xb96   :  { %v659_v18 = vpop.f32.mrf.mxu3  ;;  %860 = vmatpush.bf16.msra.mxu0 %v2451_v41 }
 0xb9a   :  { %861 = vmatpush.bf16.msra.mxu0 %v2467_v50 }
 0xc12   :  { %v677_v19 = vpop.f32.mrf.mxu0 }
 0xc13   :  { %v681_v20 = vsel %vm663_vm4, %v677_v19, 0.0 }
 0xc14   :  { %v682_v21 = vpack.c.bf16 %v681_v20, %v681_v20 }
 0xc16   :  { %2172 = vmatmul.msk.bf16.vlgmr.msra.gmra.mxu1 %vm95_vm5, %v682_v21 }
 0xc17   :  { %879 = vmatpush.bf16.msra.mxu1 %v2474_v51 }
 0xc1a   :  { %v679_v22 = vpop.f32.mrf.mxu0 }
 0xc1b   :  { %880 = vmatpush.bf16.msra.mxu1 %v2493_v59 }
 0xc93   :  { %v696_v25 = vpop.f32.mrf.mxu1 }
 0xc94   :  { %v697_v26 = vadd.f32 %v696_v25, %v683_v24 }
 0xc96   :  { %v712_v29 = vmul.f32 %v697_v26, %v624_v27  ;;  %v700_v30 = vmul.f32 %v697_v26, %v697_v26 }
 0xc98   :  { %v713_v31 = vsub.f32 %v2168_v63, %v712_v29  ;;  %v701_v32 = vsel %vm213_vm7, %v700_v30, 0.0 }
 0xc99   :  { %702 = vadd.xlane.f32.xlu2 %v701_v32 }
 0xc9a   :  { %v2173_v33 = vclamps-f32 %v713_v31, 10.0 }
 0xc9b   :  { %v698_v34 = vpop.f32.mrf.mxu1 }
 0xc9c   :  { %v718_v35 = vpack.c.bf16 %v2173_v33, %v2173_v33  ;;  %v776_v3 = vmul.f32 2.65625e-05, %v2173_v33 }
 0xc9e   :  { %2174 = vmatmul.msk.bf16.vlgmr.msra.gmra.mxu2 %vm213_vm7, %v718_v35 }
 0xc9f   :  { %915 = vmatpush.bf16.msra.mxu2 %v2415_v28 }
 0xd0c   :  { %v703_v36 = vpop.xlane.xlu2 %702 }
 0xd0d   :  { %v704_v37 = vrot.slane %v703_v36, 4 }
 0xd0f   :  { %v705_v38 = vadd.f32 %v704_v37, %v703_v36 }
 0xd11   :  { %v706_v42 = vrot.slane %v705_v38, 2 }
 0xd13   :  { %v707_v43 = vadd.f32 %v706_v42, %v705_v38 }
 0xd15   :  { %v708_v45 = vrot.slane %v707_v43, 1 }
 0xd17   :  { %v709_v46 = vadd.f32 %v708_v45, %v707_v43 }
 0xd19   :  { %2263 = vpush %v709_v46 }
 0xd21   :  { %v731_v47 = vpop.f32.mrf.mxu2 }
 0xd22   :  { %v735_v48 = vadd.f32 %v731_v47, %v2458_v44 }
 0xd24   :  { %v736_v49 = vmax.f32 %v735_v48, 0.0  ;;  %vm756_vm9 = vcmp.gt.f32.partialorder %v735_v48, 0.0 }
 0xd26   :  { %v737_v53 = vpack.c.bf16 %v736_v49, %v736_v49 }
 0xd28   :  { %2175 = vmatmul.msk.bf16.vlgmr.msra.gmra.mxu3 %vm95_vm5, %v737_v53 }
 0xd29   :  { %v733_v54 = vpop.f32.mrf.mxu2  ;;  %933 = vmatpush.bf16.msra.mxu3 %v2438_v39 }
 0xd2d   :  { %934 = vmatpush.bf16.msra.mxu3 %v2444_v40 }
 0xd4a   :  { %s2264_s19 = spop %2263 }
 0xd4b   :  { %v711_v2 = vstv %s2264_s19  ;;  %s2105_s19 = sshll.u32 %s2339_s18, 4  ;;  %s2106_s19 = int_to_ptr.vmem [resolvable:$true] %s2105_s19 }
 0xd4c   :  { %vm716_vm10 = vcmp.lt.f32.partialorder %v711_v2, 1e-06 }
 0xd4d   :  { %v717_v6 = vsel %vm716_vm10, 0.0, %v624_v27 }
 0xdab   :  { %v750_v56 = vpop.f32.mrf.mxu3 }
 0xdac   :  { %v751_v57 = vadd.f32 %v2481_v52, %v750_v56 }
 0xdae   :  { %vm754_vm8 = vcmp.gt.f32.partialorder %v751_v57, 0.0 }
 0xdaf   :  { %v755_v58 = vsel %vm754_vm8, %v2484_v55, 0.0 }
 0xdb0   :  { %v757_v60 = vpack.c.bf16 %v755_v58, %v755_v58 }
 0xdb2   :  { %2176 = vmatmul.msk.bf16.vlgmr.msrb.gmra.mxu0 %vm95_vm5, %v757_v60 }
 0xdb3   :  { %v752_v61 = vpop.f32.mrf.mxu3  ;;  %953 = vmatpush.bf16.msrb.mxu0 %v2451_v41 }
 0xdb7   :  { %954 = vmatpush.bf16.msrb.mxu0 %v2467_v50 }
 0xe2f   :  { %v770_v62 = vpop.f32.mrf.mxu0 }
 0xe30   :  { %v774_v63 = vsel %vm756_vm9, %v770_v62, 0.0 }
 0xe31   :  { %v775_v0 = vpack.c.bf16 %v774_v63, %v774_v63 }
 0xe33   :  { %2177 = vmatmul.msk.bf16.vlgmr.msrb.gmra.mxu1 %vm95_vm5, %v775_v0 }
 0xe34   :  { %972 = vmatpush.bf16.msrb.mxu1 %v2474_v51 }
 0xe37   :  { %v772_v1 = vpop.f32.mrf.mxu0 }
 0xe38   :  { %973 = vmatpush.bf16.msrb.mxu1 %v2493_v59 }
 0xeb0   :  { %v789_v4 = vpop.f32.mrf.mxu1 }
 0xeb1   :  { %v790_v5 = vadd.f32 %v789_v4, %v776_v3 }
 0xeb3   :  { %v805_v7 = vmul.f32 %v790_v5, %v717_v6  ;;  %v793_v8 = vmul.f32 %v790_v5, %v790_v5 }
 0xeb5   :  { %v806_v9 = vsub.f32 %v2173_v33, %v805_v7  ;;  %v794_v10 = vsel %vm213_vm7, %v793_v8, 0.0 }
 0xeb6   :  { %795 = vadd.xlane.f32.xlu1 %v794_v10 }
 0xeb7   :  { %v2178_v11 = vclamps-f32 %v806_v9, 10.0 }
 0xeb8   :  { %v791_v12 = vpop.f32.mrf.mxu1 }
 0xeb9   :  { %v811_v13 = vpack.c.bf16 %v2178_v11, %v2178_v11  ;;  %v869_v37 = vmul.f32 2.65625e-05, %v2178_v11 }
 0xebb   :  { %2179 = vmatmul.msk.bf16.vlgmr.msrb.gmra.mxu2 %vm213_vm7, %v811_v13 }
 0xebc   :  { %1008 = vmatpush.bf16.msrb.mxu2 %v2415_v28 }
 0xf29   :  { %v796_v14 = vpop.xlane.xlu1 %795 }
 0xf2a   :  { %v797_v15 = vrot.slane %v796_v14, 4 }
 0xf2c   :  { %v798_v16 = vadd.f32 %v797_v15, %v796_v14 }
 0xf2e   :  { %v799_v17 = vrot.slane %v798_v16, 2 }
 0xf30   :  { %v800_v18 = vadd.f32 %v799_v17, %v798_v16 }
 0xf32   :  { %v801_v19 = vrot.slane %v800_v18, 1 }
 0xf34   :  { %v802_v20 = vadd.f32 %v801_v19, %v800_v18 }
 0xf36   :  { %2265 = vpush %v802_v20 }
 0xf3e   :  { %v824_v21 = vpop.f32.mrf.mxu2 }
 0xf3f   :  { %v828_v22 = vadd.f32 %v824_v21, %v2458_v44 }
 0xf41   :  { %v829_v23 = vmax.f32 %v828_v22, 0.0  ;;  %vm849_vm12 = vcmp.gt.f32.partialorder %v828_v22, 0.0 }
 0xf43   :  { %v830_v24 = vpack.c.bf16 %v829_v23, %v829_v23 }
 0xf45   :  { %2180 = vmatmul.msk.bf16.vlgmr.msrb.gmra.mxu3 %vm95_vm5, %v830_v24 }
 0xf46   :  { %v826_v25 = vpop.f32.mrf.mxu2  ;;  %1026 = vmatpush.bf16.msrb.mxu3 %v2438_v39 }
 0xf4a   :  { %1027 = vmatpush.bf16.msrb.mxu3 %v2444_v40 }
 0xf67   :  { %s2266_s20 = spop %2265 }
 0xf68   :  { %v804_v36 = vstv %s2266_s20 }
 0xf69   :  { %vm809_vm13 = vcmp.lt.f32.partialorder %v804_v36, 1e-06 }
 0xf6a   :  { %v810_v43 = vsel %vm809_vm13, 0.0, %v717_v6 }
 0xfc8   :  { %v843_v26 = vpop.f32.mrf.mxu3 }
 0xfc9   :  { %v844_v27 = vadd.f32 %v2481_v52, %v843_v26 }
 0xfcb   :  { %vm847_vm11 = vcmp.gt.f32.partialorder %v844_v27, 0.0 }
 0xfcc   :  { %v848_v29 = vsel %vm847_vm11, %v2484_v55, 0.0 }
 0xfcd   :  { %v850_v30 = vpack.c.bf16 %v848_v29, %v848_v29 }
 0xfcf   :  { %2181 = vmatmul.msk.bf16.vlgmr.msra.gmra.mxu0 %vm95_vm5, %v850_v30 }
 0xfd0   :  { %v845_v31 = vpop.f32.mrf.mxu3  ;;  %1046 = vmatpush.bf16.msra.mxu0 %v2451_v41 }
 0xfd4   :  { %1047 = vmatpush.bf16.msra.mxu0 %v2467_v50 }
0x104c   :  { %v863_v32 = vpop.f32.mrf.mxu0 }
0x104d   :  { %v867_v33 = vsel %vm849_vm12, %v863_v32, 0.0 }
0x104e   :  { %v868_v34 = vpack.c.bf16 %v867_v33, %v867_v33 }
0x1050   :  { %2182 = vmatmul.msk.bf16.vlgmr.msra.gmra.mxu1 %vm95_vm5, %v868_v34 }
0x1051   :  { %1065 = vmatpush.bf16.msra.mxu1 %v2474_v51 }
0x1054   :  { %v865_v35 = vpop.f32.mrf.mxu0 }
0x1055   :  { %1066 = vmatpush.bf16.msra.mxu1 %v2493_v59 }
0x10cd   :  { %v882_v38 = vpop.f32.mrf.mxu1 }
0x10ce   :  { %v883_v42 = vadd.f32 %v882_v38, %v869_v37 }
0x10d0   :  { %v898_v45 = vmul.f32 %v883_v42, %v810_v43  ;;  %v886_v46 = vmul.f32 %v883_v42, %v883_v42 }
0x10d2   :  { %v899_v47 = vsub.f32 %v2178_v11, %v898_v45  ;;  %v887_v48 = vsel %vm213_vm7, %v886_v46, 0.0 }
0x10d3   :  { %888 = vadd.xlane.f32.xlu2 %v887_v48 }
0x10d4   :  { %v2183_v49 = vclamps-f32 %v899_v47, 10.0 }
0x10d5   :  { %v884_v53 = vpop.f32.mrf.mxu1 }
0x10d6   :  { %v904_v54 = vpack.c.bf16 %v2183_v49, %v2183_v49  ;;  %v962_v15 = vmul.f32 2.65625e-05, %v2183_v49 }
0x10d8   :  { %2184 = vmatmul.msk.bf16.vlgmr.msra.gmra.mxu2 %vm213_vm7, %v904_v54 }
0x10d9   :  { %1101 = vmatpush.bf16.msra.mxu2 %v2415_v28 }
0x1146   :  { %v889_v56 = vpop.xlane.xlu2 %888 }
0x1147   :  { %v890_v57 = vrot.slane %v889_v56, 4 }
0x1149   :  { %v891_v58 = vadd.f32 %v890_v57, %v889_v56 }
0x114b   :  { %v892_v60 = vrot.slane %v891_v58, 2 }
0x114d   :  { %v893_v61 = vadd.f32 %v892_v60, %v891_v58 }
0x114f   :  { %v894_v62 = vrot.slane %v893_v61, 1 }
0x1151   :  { %v895_v63 = vadd.f32 %v894_v62, %v893_v61 }
0x1153   :  { %2267 = vpush %v895_v63 }
0x115b   :  { %v917_v0 = vpop.f32.mrf.mxu2 }
0x115c   :  { %v921_v1 = vadd.f32 %v917_v0, %v2458_v44 }
0x115e   :  { %v922_v2 = vmax.f32 %v921_v1, 0.0  ;;  %vm942_vm15 = vcmp.gt.f32.partialorder %v921_v1, 0.0 }
0x1160   :  { %v923_v3 = vpack.c.bf16 %v922_v2, %v922_v2 }
0x1162   :  { %2185 = vmatmul.msk.bf16.vlgmr.msra.gmra.mxu3 %vm95_vm5, %v923_v3 }
0x1163   :  { %v919_v4 = vpop.f32.mrf.mxu2  ;;  %1119 = vmatpush.bf16.msra.mxu3 %v2438_v39 }
0x1167   :  { %1120 = vmatpush.bf16.msra.mxu3 %v2444_v40 }
0x1184   :  { %s2268_s21 = spop %2267 }
0x1185   :  { %v897_v14 = vstv %s2268_s21 }
0x1186   :  { %vm902_vm0 = vcmp.lt.f32.partialorder %v897_v14, 1e-06 }
0x1187   :  { %v903_v18 = vsel %vm902_vm0, 0.0, %v810_v43 }
0x11e5   :  { %v936_v5 = vpop.f32.mrf.mxu3 }
0x11e6   :  { %v937_v6 = vadd.f32 %v2481_v52, %v936_v5 }
0x11e8   :  { %vm940_vm14 = vcmp.gt.f32.partialorder %v937_v6, 0.0 }
0x11e9   :  { %v941_v7 = vsel %vm940_vm14, %v2484_v55, 0.0 }
0x11ea   :  { %v943_v8 = vpack.c.bf16 %v941_v7, %v941_v7 }
0x11ec   :  { %2186 = vmatmul.msk.bf16.vlgmr.msrb.gmra.mxu0 %vm95_vm5, %v943_v8 }
0x11ed   :  { %v938_v9 = vpop.f32.mrf.mxu3  ;;  %1139 = vmatpush.bf16.msrb.mxu0 %v2451_v41 }
0x11f1   :  { %1140 = vmatpush.bf16.msrb.mxu0 %v2467_v50 }
0x1269   :  { %v956_v10 = vpop.f32.mrf.mxu0 }
0x126a   :  { %v960_v11 = vsel %vm942_vm15, %v956_v10, 0.0 }
0x126b   :  { %v961_v12 = vpack.c.bf16 %v960_v11, %v960_v11 }
0x126d   :  { %2187 = vmatmul.msk.bf16.vlgmr.msrb.gmra.mxu1 %vm95_vm5, %v961_v12 }
0x126e   :  { %1158 = vmatpush.bf16.msrb.mxu1 %v2474_v51 }
0x1271   :  { %v958_v13 = vpop.f32.mrf.mxu0 }
0x1272   :  { %1159 = vmatpush.bf16.msrb.mxu1 %v2493_v59 }
0x12ea   :  { %v975_v16 = vpop.f32.mrf.mxu1 }
0x12eb   :  { %v976_v17 = vadd.f32 %v975_v16, %v962_v15 }
0x12ed   :  { %v991_v19 = vmul.f32 %v976_v17, %v903_v18  ;;  %v979_v20 = vmul.f32 %v976_v17, %v976_v17 }
0x12ef   :  { %v992_v21 = vsub.f32 %v2183_v49, %v991_v19  ;;  %v980_v22 = vsel %vm213_vm7, %v979_v20, 0.0 }
0x12f0   :  { %981 = vadd.xlane.f32.xlu1 %v980_v22 }
0x12f1   :  { %v2188_v23 = vclamps-f32 %v992_v21, 10.0 }
0x12f2   :  { %v977_v24 = vpop.f32.mrf.mxu1 }
0x12f3   :  { %v997_v25 = vpack.c.bf16 %v2188_v23, %v2188_v23  ;;  %v1055_v57 = vmul.f32 2.65625e-05, %v2188_v23 }
0x12f5   :  { %2189 = vmatmul.msk.bf16.vlgmr.msrb.gmra.mxu2 %vm213_vm7, %v997_v25 }
0x12f6   :  { %1194 = vmatpush.bf16.msrb.mxu2 %v2415_v28 }
0x1363   :  { %v982_v26 = vpop.xlane.xlu1 %981 }
0x1364   :  { %v983_v27 = vrot.slane %v982_v26, 4 }
0x1366   :  { %v984_v29 = vadd.f32 %v983_v27, %v982_v26 }
0x1368   :  { %v985_v30 = vrot.slane %v984_v29, 2 }
0x136a   :  { %v986_v31 = vadd.f32 %v985_v30, %v984_v29 }
0x136c   :  { %v987_v32 = vrot.slane %v986_v31, 1 }
0x136e   :  { %v988_v33 = vadd.f32 %v987_v32, %v986_v31 }
0x1370   :  { %2269 = vpush %v988_v33 }
0x1378   :  { %v1010_v34 = vpop.f32.mrf.mxu2 }
0x1379   :  { %v1014_v35 = vadd.f32 %v1010_v34, %v2458_v44 }
0x137b   :  { %v1015_v36 = vmax.f32 %v1014_v35, 0.0  ;;  %vm1035_vm2 = vcmp.gt.f32.partialorder %v1014_v35, 0.0 }
0x137d   :  { %v1016_v37 = vpack.c.bf16 %v1015_v36, %v1015_v36 }
0x137f   :  { %2190 = vmatmul.msk.bf16.vlgmr.msrb.gmra.mxu3 %vm95_vm5, %v1016_v37 }
0x1380   :  { %v1012_v38 = vpop.f32.mrf.mxu2  ;;  %1212 = vmatpush.bf16.msrb.mxu3 %v2438_v39 }
0x1384   :  { %1213 = vmatpush.bf16.msrb.mxu3 %v2444_v40 }
0x13a1   :  { %s2270_s22 = spop %2269 }
0x13a2   :  { %v990_v56 = vstv %s2270_s22  ;;  %s2107_s22 = sshll.u32 %s2815_s4, 4  ;;  %s2108_s22 = int_to_ptr.hbm [resolvable:$true] %s2107_s22 }
0x13a3   :  { %vm995_vm3 = vcmp.lt.f32.partialorder %v990_v56, 1e-06 }
0x13a4   :  { %v996_v61 = vsel %vm995_vm3, 0.0, %v903_v18 }
0x1402   :  { %v1029_v42 = vpop.f32.mrf.mxu3 }
0x1403   :  { %v1030_v43 = vadd.f32 %v2481_v52, %v1029_v42 }
0x1405   :  { %vm1033_vm1 = vcmp.gt.f32.partialorder %v1030_v43, 0.0 }
0x1406   :  { %v1034_v45 = vsel %vm1033_vm1, %v2484_v55, 0.0 }
0x1407   :  { %v1036_v46 = vpack.c.bf16 %v1034_v45, %v1034_v45 }
0x1409   :  { %2191 = vmatmul.msk.bf16.vlgmr.msra.gmra.mxu0 %vm95_vm5, %v1036_v46 }
0x140a   :  { %v1031_v47 = vpop.f32.mrf.mxu3  ;;  %1232 = vmatpush.bf16.msra.mxu0 %v2451_v41 }
0x140e   :  { %1233 = vmatpush.bf16.msra.mxu0 %v2467_v50 }
0x1486   :  { %v1049_v48 = vpop.f32.mrf.mxu0 }
0x1487   :  { %v1053_v49 = vsel %vm1035_vm2, %v1049_v48, 0.0 }
0x1488   :  { %v1054_v53 = vpack.c.bf16 %v1053_v49, %v1053_v49 }
0x148a   :  { %2192 = vmatmul.msk.bf16.vlgmr.msra.gmra.mxu1 %vm95_vm5, %v1054_v53  ;;  %v2644_v53 = vld [vmem:[%s2814_s3 + $0x10] sm:$0xff] }
0x148b   :  { %1251 = vmatpush.bf16.msra.mxu1 %v2474_v51 }
0x148e   :  { %v1051_v54 = vpop.f32.mrf.mxu0 }
0x148f   :  { %1252 = vmatpush.bf16.msra.mxu1 %v2493_v59  ;;  %v2650_v54 = vld [vmem:[%s2814_s3 + $0x8] sm:$0xff] }
0x1507   :  { %v1068_v58 = vpop.f32.mrf.mxu1 }
0x1508   :  { %v1069_v60 = vadd.f32 %v1068_v58, %v1055_v57 }
0x150a   :  { %v1084_v62 = vmul.f32 %v1069_v60, %v996_v61  ;;  %v1072_v63 = vmul.f32 %v1069_v60, %v1069_v60 }
0x150c   :  { %v1085_v0 = vsub.f32 %v2188_v23, %v1084_v62  ;;  %v1073_v1 = vsel %vm213_vm7, %v1072_v63, 0.0  ;;  %v2659_v62 = vld [vmem:[%s2814_s3 + $0x20] sm:$0xff]  ;;  %v2665_v63 = vld [vmem:[%s2814_s3 + $0x18] sm:$0xff] }
0x150d   :  { %1074 = vadd.xlane.f32.xlu2 %v1073_v1 }
0x150e   :  { %v2193_v2 = vclamps-f32 %v1085_v0, 10.0 }
0x150f   :  { %v1070_v3 = vpop.f32.mrf.mxu1 }
0x1510   :  { %v1090_v4 = vpack.c.bf16 %v2193_v2, %v2193_v2  ;;  %v1148_v25 = vmul.f32 2.65625e-05, %v2193_v2 }
0x1512   :  { %2194 = vmatmul.msk.bf16.vlgmr.msra.gmra.mxu2 %vm213_vm7, %v1090_v4 }
0x1513   :  { %1287 = vmatpush.bf16.msra.mxu2 %v2415_v28 }
0x1580   :  { %v1075_v5 = vpop.xlane.xlu2 %1074 }
0x1581   :  { %v1076_v6 = vrot.slane %v1075_v5, 4 }
0x1583   :  { %v1077_v7 = vadd.f32 %v1076_v6, %v1075_v5 }
0x1585   :  { %v1078_v8 = vrot.slane %v1077_v7, 2 }
0x1587   :  { %v1079_v9 = vadd.f32 %v1078_v8, %v1077_v7 }
0x1589   :  { %v1080_v10 = vrot.slane %v1079_v9, 1 }
0x158b   :  { %v1081_v11 = vadd.f32 %v1080_v10, %v1079_v9 }
0x158d   :  { %2271 = vpush %v1081_v11 }
0x1595   :  { %v1103_v12 = vpop.f32.mrf.mxu2 }
0x1596   :  { %v1107_v13 = vadd.f32 %v1103_v12, %v2458_v44 }
0x1598   :  { %v1108_v14 = vmax.f32 %v1107_v13, 0.0  ;;  %vm1128_vm6 = vcmp.gt.f32.partialorder %v1107_v13, 0.0 }
0x159a   :  { %v1109_v15 = vpack.c.bf16 %v1108_v14, %v1108_v14 }
0x159c   :  { %2195 = vmatmul.msk.bf16.vlgmr.msra.gmra.mxu3 %vm95_vm5, %v1109_v15 }
0x159d   :  { %v1105_v16 = vpop.f32.mrf.mxu2  ;;  %1305 = vmatpush.bf16.msra.mxu3 %v2438_v39 }
0x15a1   :  { %1306 = vmatpush.bf16.msra.mxu3 %v2444_v40 }
0x15be   :  { %s2272_s1 = spop %2271 }
0x15bf   :  { %v1083_v24 = vstv %s2272_s1 }
0x15c0   :  { %vm1088_vm8 = vcmp.lt.f32.partialorder %v1083_v24, 1e-06 }
0x161f   :  { %v1122_v17 = vpop.f32.mrf.mxu3 }
0x1620   :  { %v1123_v18 = vadd.f32 %v2481_v52, %v1122_v17 }
0x1622   :  { %vm1126_vm4 = vcmp.gt.f32.partialorder %v1123_v18, 0.0 }
0x1623   :  { %v1127_v19 = vsel %vm1126_vm4, %v2484_v55, 0.0 }
0x1624   :  { %v1129_v20 = vpack.c.bf16 %v1127_v19, %v1127_v19 }
0x1626   :  { %2196 = vmatmul.msk.bf16.vlgmr.msrb.gmra.mxu0 %vm95_vm5, %v1129_v20 }
0x1627   :  { %v1124_v21 = vpop.f32.mrf.mxu3  ;;  %1325 = vmatpush.bf16.msrb.mxu0 %v2451_v41  ;;  %v1089_v41 = vsel %vm1088_vm8, 0.0, %v996_v61 }
0x162b   :  { %1326 = vmatpush.bf16.msrb.mxu0 %v2467_v50 }
0x16a3   :  { %v1142_v22 = vpop.f32.mrf.mxu0 }
0x16a4   :  { %v1146_v23 = vsel %vm1128_vm6, %v1142_v22, 0.0 }
0x16a5   :  { %v1147_v39 = vpack.c.bf16 %v1146_v23, %v1146_v23 }
0x16a7   :  { %2197 = vmatmul.msk.bf16.vlgmr.msrb.gmra.mxu1 %vm95_vm5, %v1147_v39 }
0x16a8   :  { %1344 = vmatpush.bf16.msrb.mxu1 %v2474_v51 }
0x16ab   :  { %v1144_v40 = vpop.f32.mrf.mxu0 }
0x16ac   :  { %1345 = vmatpush.bf16.msrb.mxu1 %v2493_v59 }
0x1724   :  { %v1161_v26 = vpop.f32.mrf.mxu1 }
0x1725   :  { %v1162_v27 = vadd.f32 %v1161_v26, %v1148_v25  ;;  %v2686_v26 = vld [vmem:[%s2813_s2 + $0x88] ss:$0 sm:$0xff] }
0x1727   :  { %v1177_v29 = vmul.f32 %v1162_v27, %v1089_v41  ;;  %v1165_v50 = vmul.f32 %v1162_v27, %v1162_v27 }
0x1729   :  { %v1178_v30 = vsub.f32 %v2193_v2, %v1177_v29  ;;  %v1166_v31 = vsel %vm213_vm7, %v1165_v50, 0.0  ;;  %v2672_v2 = vld [vmem:[%s2814_s3 + $0x30] sm:$0xff] }
0x172a   :  { %1167 = vadd.xlane.f32.xlu1 %v1166_v31 }
0x172b   :  { %v2198_v32 = vclamps-f32 %v1178_v30, 10.0 }
0x172c   :  { %v1163_v33 = vpop.f32.mrf.mxu1 }
0x172d   :  { %v1183_v34 = vpack.c.bf16 %v2198_v32, %v2198_v32  ;;  %v1241_v5 = vmul.f32 2.65625e-05, %v2198_v32 }
0x172f   :  { %2199 = vmatmul.msk.bf16.vlgmr.msrb.gmra.mxu2 %vm213_vm7, %v1183_v34  ;;  %v2698_v34 = vld [vmem:[%s2814_s3 + $0x28] sm:$0xff] }
0x1730   :  { %1380 = vmatpush.bf16.msrb.mxu2 %v2415_v28 }
0x179d   :  { %v1168_v51 = vpop.xlane.xlu1 %1167 }
0x179e   :  { %v1169_v35 = vrot.slane %v1168_v51, 4 }
0x17a0   :  { %v1170_v36 = vadd.f32 %v1169_v35, %v1168_v51 }
0x17a2   :  { %v1171_v37 = vrot.slane %v1170_v36, 2 }
0x17a4   :  { %v1172_v38 = vadd.f32 %v1171_v37, %v1170_v36 }
0x17a6   :  { %v1173_v42 = vrot.slane %v1172_v38, 1 }
0x17a8   :  { %v1174_v43 = vadd.f32 %v1173_v42, %v1172_v38 }
0x17aa   :  { %2273 = vpush %v1174_v43 }
0x17b2   :  { %v1196_v45 = vpop.f32.mrf.mxu2 }
0x17b3   :  { %v1200_v46 = vadd.f32 %v1196_v45, %v2458_v44 }
0x17b5   :  { %v1201_v47 = vmax.f32 %v1200_v46, 0.0  ;;  %vm1221_vm10 = vcmp.gt.f32.partialorder %v1200_v46, 0.0 }
0x17b7   :  { %v1202_v48 = vpack.c.bf16 %v1201_v47, %v1201_v47 }
0x17b9   :  { %2200 = vmatmul.msk.bf16.vlgmr.msrb.gmra.mxu3 %vm95_vm5, %v1202_v48 }
0x17ba   :  { %v1198_v49 = vpop.f32.mrf.mxu2  ;;  %1398 = vmatpush.bf16.msrb.mxu3 %v2644_v53 }
0x17be   :  { %1399 = vmatpush.bf16.msrb.mxu3 %v2650_v54 }
0x17db   :  { %s2274_s6 = spop %2273 }
0x17dc   :  { %v1176_v4 = vstv %s2274_s6 }
0x17dd   :  { %vm1181_vm11 = vcmp.lt.f32.partialorder %v1176_v4, 1e-06 }
0x17de   :  { %v1182_v8 = vsel %vm1181_vm11, 0.0, %v1089_v41 }
0x183c   :  { %v1215_v56 = vpop.f32.mrf.mxu3 }
0x183d   :  { %v1216_v57 = vadd.f32 %v2481_v52, %v1215_v56 }
0x183f   :  { %vm1219_vm9 = vcmp.gt.f32.partialorder %v1216_v57, 0.0 }
0x1840   :  { %v1220_v58 = vsel %vm1219_vm9, %v2484_v55, 0.0 }
0x1841   :  { %v1222_v60 = vpack.c.bf16 %v1220_v58, %v1220_v58 }
0x1843   :  { %2201 = vmatmul.msk.bf16.vlgmr.msra.gmra.mxu0 %vm95_vm5, %v1222_v60 }
0x1844   :  { %v1217_v61 = vpop.f32.mrf.mxu3  ;;  %1418 = vmatpush.bf16.msra.mxu0 %v2659_v62 }
0x1848   :  { %1419 = vmatpush.bf16.msra.mxu0 %v2665_v63 }
0x18c0   :  { %v1235_v52 = vpop.f32.mrf.mxu0 }
0x18c1   :  { %v1239_v0 = vsel %vm1221_vm10, %v1235_v52, 0.0 }
0x18c2   :  { %v1240_v1 = vpack.c.bf16 %v1239_v0, %v1239_v0 }
0x18c4   :  { %2202 = vmatmul.msk.bf16.vlgmr.msra.gmra.mxu1 %vm95_vm5, %v1240_v1 }
0x18c5   :  { %1437 = vmatpush.bf16.msra.mxu1 %v2672_v2 }
0x18c8   :  { %v1237_v3 = vpop.f32.mrf.mxu0 }
0x18c9   :  { %1438 = vmatpush.bf16.msra.mxu1 %v2493_v59 }
0x1941   :  { %v1254_v6 = vpop.f32.mrf.mxu1 }
0x1942   :  { %v1255_v7 = vadd.f32 %v1254_v6, %v1241_v5 }
0x1944   :  { %v1270_v9 = vmul.f32 %v1255_v7, %v1182_v8  ;;  %v1258_v10 = vmul.f32 %v1255_v7, %v1255_v7 }
0x1946   :  { %v1271_v11 = vsub.f32 %v2198_v32, %v1270_v9  ;;  %v1259_v12 = vsel %vm213_vm7, %v1258_v10, 0.0 }
0x1947   :  { %1260 = vadd.xlane.f32.xlu2 %v1259_v12 }
0x1948   :  { %v2203_v13 = vclamps-f32 %v1271_v11, 10.0 }
0x1949   :  { %v1256_v14 = vpop.f32.mrf.mxu1 }
0x194a   :  { %v1276_v15 = vpack.c.bf16 %v2203_v13, %v2203_v13  ;;  %v1334_v35 = vmul.f32 2.65625e-05, %v2203_v13 }
0x194c   :  { %2204 = vmatmul.msk.bf16.vlgmr.msra.gmra.mxu2 %vm213_vm7, %v1276_v15 }
0x194d   :  { %1473 = vmatpush.bf16.msra.mxu2 %v2415_v28 }
0x19ba   :  { %v1261_v59 = vpop.xlane.xlu2 %1260 }
0x19bb   :  { %v1262_v16 = vrot.slane %v1261_v59, 4 }
0x19bd   :  { %v1263_v17 = vadd.f32 %v1262_v16, %v1261_v59 }
0x19bf   :  { %v1264_v18 = vrot.slane %v1263_v17, 2 }
0x19c1   :  { %v1265_v19 = vadd.f32 %v1264_v18, %v1263_v17 }
0x19c3   :  { %v1266_v20 = vrot.slane %v1265_v19, 1 }
0x19c5   :  { %v1267_v21 = vadd.f32 %v1266_v20, %v1265_v19 }
0x19c7   :  { %2275 = vpush %v1267_v21 }
0x19cf   :  { %v1289_v22 = vpop.f32.mrf.mxu2 }
0x19d0   :  { %v1293_v23 = vadd.f32 %v1289_v22, %v2458_v44 }
0x19d2   :  { %v1294_v39 = vmax.f32 %v1293_v23, 0.0  ;;  %vm1314_vm13 = vcmp.gt.f32.partialorder %v1293_v23, 0.0 }
0x19d4   :  { %v1295_v40 = vpack.c.bf16 %v1294_v39, %v1294_v39 }
0x19d6   :  { %2205 = vmatmul.msk.bf16.vlgmr.msra.gmra.mxu3 %vm95_vm5, %v1295_v40 }
0x19d7   :  { %v1291_v24 = vpop.f32.mrf.mxu2  ;;  %1491 = vmatpush.bf16.msra.mxu3 %v2644_v53 }
0x19db   :  { %1492 = vmatpush.bf16.msra.mxu3 %v2650_v54 }
0x19f8   :  { %s2276_s10 = spop %2275 }
0x19f9   :  { %v1269_v51 = vstv %s2276_s10 }
0x19fa   :  { %vm1274_vm14 = vcmp.lt.f32.partialorder %v1269_v51, 1e-06 }
0x19fb   :  { %v1275_v38 = vsel %vm1274_vm14, 0.0, %v1182_v8 }
0x1a59   :  { %v1308_v25 = vpop.f32.mrf.mxu3 }
0x1a5a   :  { %v1309_v27 = vadd.f32 %v2686_v26, %v1308_v25 }
0x1a5c   :  { %vm1312_vm12 = vcmp.gt.f32.partialorder %v1309_v27, 0.0 }
0x1a5d   :  { %v1313_v41 = vsel %vm1312_vm12, %v2484_v55, 0.0 }
0x1a5e   :  { %v1315_v29 = vpack.c.bf16 %v1313_v41, %v1313_v41 }
0x1a60   :  { %2206 = vmatmul.msk.bf16.vlgmr.msrb.gmra.mxu0 %vm95_vm5, %v1315_v29 }
0x1a61   :  { %v1310_v50 = vpop.f32.mrf.mxu3  ;;  %1511 = vmatpush.bf16.msrb.mxu0 %v2659_v62 }
0x1a65   :  { %1512 = vmatpush.bf16.msrb.mxu0 %v2665_v63 }
0x1add   :  { %v1328_v30 = vpop.f32.mrf.mxu0 }
0x1ade   :  { %v1332_v31 = vsel %vm1314_vm13, %v1328_v30, 0.0 }
0x1adf   :  { %v1333_v32 = vpack.c.bf16 %v1332_v31, %v1332_v31 }
0x1ae1   :  { %2207 = vmatmul.msk.bf16.vlgmr.msrb.gmra.mxu1 %vm95_vm5, %v1333_v32 }
0x1ae2   :  { %1530 = vmatpush.bf16.msrb.mxu1 %v2672_v2 }
0x1ae5   :  { %v1330_v33 = vpop.f32.mrf.mxu0 }
0x1ae6   :  { %1531 = vmatpush.bf16.msrb.mxu1 %v2698_v34 }
0x1b5e   :  { %v1347_v36 = vpop.f32.mrf.mxu1 }
0x1b5f   :  { %v1348_v37 = vadd.f32 %v1347_v36, %v1334_v35 }
0x1b61   :  { %v1363_v42 = vmul.f32 %v1348_v37, %v1275_v38  ;;  %v1351_v43 = vmul.f32 %v1348_v37, %v1348_v37 }
0x1b63   :  { %v1364_v45 = vsub.f32 %v2203_v13, %v1363_v42  ;;  %v1352_v46 = vsel %vm213_vm7, %v1351_v43, 0.0 }
0x1b64   :  { %1353 = vadd.xlane.f32.xlu1 %v1352_v46 }
0x1b65   :  { %v2208_v47 = vclamps-f32 %v1364_v45, 10.0 }
0x1b66   :  { %v1349_v48 = vpop.f32.mrf.mxu1 }
0x1b67   :  { %v1369_v49 = vpack.c.bf16 %v2208_v47, %v2208_v47  ;;  %v1427_v16 = vmul.f32 2.65625e-05, %v2208_v47 }
0x1b69   :  { %2209 = vmatmul.msk.bf16.vlgmr.msrb.gmra.mxu2 %vm213_vm7, %v1369_v49 }
0x1b6a   :  { %1566 = vmatpush.bf16.msrb.mxu2 %v2415_v28 }
0x1bd7   :  { %v1354_v56 = vpop.xlane.xlu1 %1353 }
0x1bd8   :  { %v1355_v57 = vrot.slane %v1354_v56, 4 }
0x1bda   :  { %v1356_v58 = vadd.f32 %v1355_v57, %v1354_v56 }
0x1bdc   :  { %v1357_v60 = vrot.slane %v1356_v58, 2 }
0x1bde   :  { %v1358_v61 = vadd.f32 %v1357_v60, %v1356_v58 }
0x1be0   :  { %v1359_v52 = vrot.slane %v1358_v61, 1 }
0x1be2   :  { %v1360_v0 = vadd.f32 %v1359_v52, %v1358_v61 }
0x1be4   :  { %2277 = vpush %v1360_v0 }
0x1bec   :  { %v1382_v1 = vpop.f32.mrf.mxu2 }
0x1bed   :  { %v1386_v3 = vadd.f32 %v1382_v1, %v2458_v44 }
0x1bef   :  { %v1387_v4 = vmax.f32 %v1386_v3, 0.0  ;;  %vm1407_vm0 = vcmp.gt.f32.partialorder %v1386_v3, 0.0 }
0x1bf1   :  { %v1388_v5 = vpack.c.bf16 %v1387_v4, %v1387_v4 }
0x1bf3   :  { %2210 = vmatmul.msk.bf16.vlgmr.msrb.gmra.mxu3 %vm95_vm5, %v1388_v5 }
0x1bf4   :  { %v1384_v6 = vpop.f32.mrf.mxu2  ;;  %1584 = vmatpush.bf16.msrb.mxu3 %v2644_v53 }
0x1bf8   :  { %1585 = vmatpush.bf16.msrb.mxu3 %v2650_v54 }
0x1c15   :  { %s2278_s3 = spop %2277 }
0x1c16   :  { %v1362_v59 = vstv %s2278_s3 }
0x1c17   :  { %vm1367_vm1 = vcmp.lt.f32.partialorder %v1362_v59, 1e-06 }
0x1c18   :  { %v1368_v19 = vsel %vm1367_vm1, 0.0, %v1275_v38 }
0x1c76   :  { %v1401_v7 = vpop.f32.mrf.mxu3 }
0x1c77   :  { %v1402_v8 = vadd.f32 %v2686_v26, %v1401_v7 }
0x1c79   :  { %vm1405_vm15 = vcmp.gt.f32.partialorder %v1402_v8, 0.0 }
0x1c7a   :  { %v1406_v9 = vsel %vm1405_vm15, %v2484_v55, 0.0 }
0x1c7b   :  { %v1408_v10 = vpack.c.bf16 %v1406_v9, %v1406_v9 }
0x1c7d   :  { %2211 = vmatmul.msk.bf16.vlgmr.msra.gmra.mxu0 %vm95_vm5, %v1408_v10 }
0x1c7e   :  { %v1403_v11 = vpop.f32.mrf.mxu3  ;;  %1604 = vmatpush.bf16.msra.mxu0 %v2659_v62 }
0x1c82   :  { %1605 = vmatpush.bf16.msra.mxu0 %v2665_v63 }
0x1cfa   :  { %v1421_v12 = vpop.f32.mrf.mxu0 }
0x1cfb   :  { %v1425_v13 = vsel %vm1407_vm0, %v1421_v12, 0.0 }
0x1cfc   :  { %v1426_v14 = vpack.c.bf16 %v1425_v13, %v1425_v13 }
0x1cfe   :  { %2212 = vmatmul.msk.bf16.vlgmr.msra.gmra.mxu1 %vm95_vm5, %v1426_v14 }
0x1cff   :  { %1623 = vmatpush.bf16.msra.mxu1 %v2672_v2 }
0x1d02   :  { %v1423_v15 = vpop.f32.mrf.mxu0 }
0x1d03   :  { %1624 = vmatpush.bf16.msra.mxu1 %v2698_v34 }
0x1d7b   :  { %v1440_v17 = vpop.f32.mrf.mxu1 }
0x1d7c   :  { %v1441_v18 = vadd.f32 %v1440_v17, %v1427_v16 }
0x1d7e   :  { %v1456_v20 = vmul.f32 %v1441_v18, %v1368_v19  ;;  %v1444_v21 = vmul.f32 %v1441_v18, %v1441_v18 }
0x1d80   :  { %v1457_v22 = vsub.f32 %v2208_v47, %v1456_v20  ;;  %v1445_v23 = vsel %vm213_vm7, %v1444_v21, 0.0 }
0x1d81   :  { %1446 = vadd.xlane.f32.xlu2 %v1445_v23 }
0x1d82   :  { %v2213_v39 = vclamps-f32 %v1457_v22, 10.0 }
0x1d83   :  { %v1442_v40 = vpop.f32.mrf.mxu1 }
0x1d84   :  { %v1462_v24 = vpack.c.bf16 %v2213_v39, %v2213_v39  ;;  %v1520_v57 = vmul.f32 2.65625e-05, %v2213_v39 }
0x1d86   :  { %2214 = vmatmul.msk.bf16.vlgmr.msra.gmra.mxu2 %vm213_vm7, %v1462_v24 }
0x1d87   :  { %1659 = vmatpush.bf16.msra.mxu2 %v2415_v28 }
0x1df4   :  { %v1447_v25 = vpop.xlane.xlu2 %1446 }
0x1df5   :  { %v1448_v27 = vrot.slane %v1447_v25, 4 }
0x1df7   :  { %v1449_v41 = vadd.f32 %v1448_v27, %v1447_v25 }
0x1df9   :  { %v1450_v29 = vrot.slane %v1449_v41, 2 }
0x1dfb   :  { %v1451_v50 = vadd.f32 %v1450_v29, %v1449_v41 }
0x1dfd   :  { %v1452_v30 = vrot.slane %v1451_v50, 1 }
0x1dff   :  { %v1453_v31 = vadd.f32 %v1452_v30, %v1451_v50 }
0x1e01   :  { %2279 = vpush %v1453_v31 }
0x1e09   :  { %v1475_v32 = vpop.f32.mrf.mxu2 }
0x1e0a   :  { %v1479_v33 = vadd.f32 %v1475_v32, %v2458_v44 }
0x1e0c   :  { %v1480_v51 = vmax.f32 %v1479_v33, 0.0  ;;  %vm1500_vm3 = vcmp.gt.f32.partialorder %v1479_v33, 0.0 }
0x1e0e   :  { %v1481_v35 = vpack.c.bf16 %v1480_v51, %v1480_v51 }
0x1e10   :  { %2215 = vmatmul.msk.bf16.vlgmr.msra.gmra.mxu3 %vm95_vm5, %v1481_v35 }
0x1e11   :  { %v1477_v36 = vpop.f32.mrf.mxu2  ;;  %1677 = vmatpush.bf16.msra.mxu3 %v2644_v53 }
0x1e15   :  { %1678 = vmatpush.bf16.msra.mxu3 %v2650_v54 }
0x1e32   :  { %s2280_s11 = spop %2279 }
0x1e33   :  { %v1455_v56 = vstv %s2280_s11 }
0x1e34   :  { %vm1460_vm4 = vcmp.lt.f32.partialorder %v1455_v56, 1e-06 }
0x1e35   :  { %v1461_v61 = vsel %vm1460_vm4, 0.0, %v1368_v19 }
0x1e93   :  { %v1494_v37 = vpop.f32.mrf.mxu3 }
0x1e94   :  { %v1495_v38 = vadd.f32 %v2686_v26, %v1494_v37 }
0x1e96   :  { %vm1498_vm2 = vcmp.gt.f32.partialorder %v1495_v38, 0.0 }
0x1e97   :  { %v1499_v42 = vsel %vm1498_vm2, %v2484_v55, 0.0 }
0x1e98   :  { %v1501_v43 = vpack.c.bf16 %v1499_v42, %v1499_v42 }
0x1e9a   :  { %2216 = vmatmul.msk.bf16.vlgmr.msrb.gmra.mxu0 %vm95_vm5, %v1501_v43 }
0x1e9b   :  { %v1496_v45 = vpop.f32.mrf.mxu3  ;;  %1697 = vmatpush.bf16.msrb.mxu0 %v2659_v62 }
0x1e9f   :  { %1698 = vmatpush.bf16.msrb.mxu0 %v2665_v63 }
0x1f17   :  { %v1514_v46 = vpop.f32.mrf.mxu0 }
0x1f18   :  { %v1518_v47 = vsel %vm1500_vm3, %v1514_v46, 0.0 }
0x1f19   :  { %v1519_v48 = vpack.c.bf16 %v1518_v47, %v1518_v47 }
0x1f1b   :  { %2217 = vmatmul.msk.bf16.vlgmr.msrb.gmra.mxu1 %vm95_vm5, %v1519_v48 }
0x1f1c   :  { %1716 = vmatpush.bf16.msrb.mxu1 %v2672_v2 }
0x1f1f   :  { %v1516_v49 = vpop.f32.mrf.mxu0 }
0x1f20   :  { %1717 = vmatpush.bf16.msrb.mxu1 %v2698_v34 }
0x1f98   :  { %v1533_v58 = vpop.f32.mrf.mxu1 }
0x1f99   :  { %v1534_v60 = vadd.f32 %v1533_v58, %v1520_v57 }
0x1f9b   :  { %v1549_v52 = vmul.f32 %v1534_v60, %v1461_v61  ;;  %v1537_v0 = vmul.f32 %v1534_v60, %v1534_v60 }
0x1f9d   :  { %v1550_v1 = vsub.f32 %v2213_v39, %v1549_v52  ;;  %v1538_v3 = vsel %vm213_vm7, %v1537_v0, 0.0 }
0x1f9e   :  { %1539 = vadd.xlane.f32.xlu1 %v1538_v3 }
0x1f9f   :  { %v2218_v4 = vclamps-f32 %v1550_v1, 10.0 }
0x1fa0   :  { %v1535_v5 = vpop.f32.mrf.mxu1 }
0x1fa1   :  { %v1555_v6 = vpack.c.bf16 %v2218_v4, %v2218_v4  ;;  %v1613_v27 = vmul.f32 2.65625e-05, %v2218_v4 }
0x1fa3   :  { %2219 = vmatmul.msk.bf16.vlgmr.msrb.gmra.mxu2 %vm213_vm7, %v1555_v6 }
0x1fa4   :  { %1752 = vmatpush.bf16.msrb.mxu2 %v2415_v28 }
0x2011   :  { %v1540_v7 = vpop.xlane.xlu1 %1539 }
0x2012   :  { %v1541_v8 = vrot.slane %v1540_v7, 4 }
0x2014   :  { %v1542_v9 = vadd.f32 %v1541_v8, %v1540_v7 }
0x2016   :  { %v1543_v10 = vrot.slane %v1542_v9, 2 }
0x2018   :  { %v1544_v11 = vadd.f32 %v1543_v10, %v1542_v9 }
0x201a   :  { %v1545_v12 = vrot.slane %v1544_v11, 1 }
0x201c   :  { %v1546_v13 = vadd.f32 %v1545_v12, %v1544_v11 }
0x201e   :  { %2281 = vpush %v1546_v13 }
0x2026   :  { %v1568_v14 = vpop.f32.mrf.mxu2 }
0x2027   :  { %v1572_v15 = vadd.f32 %v1568_v14, %v2458_v44 }
0x2029   :  { %v1573_v59 = vmax.f32 %v1572_v15, 0.0  ;;  %vm1593_vm8 = vcmp.gt.f32.partialorder %v1572_v15, 0.0 }
0x202b   :  { %v1574_v16 = vpack.c.bf16 %v1573_v59, %v1573_v59 }
0x202d   :  { %2220 = vmatmul.msk.bf16.vlgmr.msrb.gmra.mxu3 %vm95_vm5, %v1574_v16 }
0x202e   :  { %v1570_v17 = vpop.f32.mrf.mxu2  ;;  %1770 = vmatpush.bf16.msrb.mxu3 %v2644_v53 }
0x2032   :  { %1771 = vmatpush.bf16.msrb.mxu3 %v2650_v54 }
0x204f   :  { %s2282_s12 = spop %2281 }
0x2050   :  { %v1548_v25 = vstv %s2282_s12 }
0x2051   :  { %vm1553_vm9 = vcmp.lt.f32.partialorder %v1548_v25, 1e-06 }
0x2052   :  { %v1554_v50 = vsel %vm1553_vm9, 0.0, %v1461_v61 }
0x20b0   :  { %v1587_v18 = vpop.f32.mrf.mxu3 }
0x20b1   :  { %v1588_v19 = vadd.f32 %v2686_v26, %v1587_v18 }
0x20b3   :  { %vm1591_vm6 = vcmp.gt.f32.partialorder %v1588_v19, 0.0 }
0x20b4   :  { %v1592_v20 = vsel %vm1591_vm6, %v2484_v55, 0.0 }
0x20b5   :  { %v1594_v21 = vpack.c.bf16 %v1592_v20, %v1592_v20 }
0x20b7   :  { %2221 = vmatmul.msk.bf16.vlgmr.msra.gmra.mxu0 %vm95_vm5, %v1594_v21 }
0x20b8   :  { %v1589_v22 = vpop.f32.mrf.mxu3  ;;  %1790 = vmatpush.bf16.msra.mxu0 %v2659_v62 }
0x20bc   :  { %1791 = vmatpush.bf16.msra.mxu0 %v2665_v63 }
0x2134   :  { %v1607_v23 = vpop.f32.mrf.mxu0 }
0x2135   :  { %v1611_v39 = vsel %vm1593_vm8, %v1607_v23, 0.0 }
0x2136   :  { %v1612_v40 = vpack.c.bf16 %v1611_v39, %v1611_v39 }
0x2138   :  { %2222 = vmatmul.msk.bf16.vlgmr.msra.gmra.mxu1 %vm95_vm5, %v1612_v40 }
0x2139   :  { %1809 = vmatpush.bf16.msra.mxu1 %v2672_v2 }
0x213c   :  { %v1609_v24 = vpop.f32.mrf.mxu0 }
0x213d   :  { %1810 = vmatpush.bf16.msra.mxu1 %v2698_v34 }
0x21b5   :  { %v1626_v41 = vpop.f32.mrf.mxu1 }
0x21b6   :  { %v1627_v29 = vadd.f32 %v1626_v41, %v1613_v27 }
0x21b8   :  { %v1642_v30 = vmul.f32 %v1627_v29, %v1554_v50  ;;  %v1630_v31 = vmul.f32 %v1627_v29, %v1627_v29 }
0x21ba   :  { %v1643_v32 = vsub.f32 %v2218_v4, %v1642_v30  ;;  %v1631_v33 = vsel %vm213_vm7, %v1630_v31, 0.0 }
0x21bb   :  { %1632 = vadd.xlane.f32.xlu2 %v1631_v33 }
0x21bc   :  { %v2223_v51 = vclamps-f32 %v1643_v32, 10.0 }
0x21bd   :  { %v1628_v35 = vpop.f32.mrf.mxu1 }
0x21be   :  { %v1648_v36 = vpack.c.bf16 %v2223_v51, %v2223_v51  ;;  %v1706_v8 = vmul.f32 2.65625e-05, %v2223_v51 }
0x21c0   :  { %2224 = vmatmul.msk.bf16.vlgmr.msra.gmra.mxu2 %vm213_vm7, %v1648_v36 }
0x21c1   :  { %1845 = vmatpush.bf16.msra.mxu2 %v2415_v28 }
0x222e   :  { %v1633_v37 = vpop.xlane.xlu2 %1632 }
0x222f   :  { %v1634_v38 = vrot.slane %v1633_v37, 4 }
0x2231   :  { %v1635_v42 = vadd.f32 %v1634_v38, %v1633_v37 }
0x2233   :  { %v1636_v43 = vrot.slane %v1635_v42, 2 }
0x2235   :  { %v1637_v45 = vadd.f32 %v1636_v43, %v1635_v42 }
0x2237   :  { %v1638_v46 = vrot.slane %v1637_v45, 1 }
0x2239   :  { %v1639_v47 = vadd.f32 %v1638_v46, %v1637_v45 }
0x223b   :  { %2283 = vpush %v1639_v47 }
0x2243   :  { %v1661_v48 = vpop.f32.mrf.mxu2 }
0x2244   :  { %v1665_v49 = vadd.f32 %v1661_v48, %v2458_v44 }
0x2246   :  { %v1666_v56 = vmax.f32 %v1665_v49, 0.0  ;;  %vm1686_vm11 = vcmp.gt.f32.partialorder %v1665_v49, 0.0 }
0x2248   :  { %v1667_v57 = vpack.c.bf16 %v1666_v56, %v1666_v56 }
0x224a   :  { %2225 = vmatmul.msk.bf16.vlgmr.msra.gmra.mxu3 %vm95_vm5, %v1667_v57 }
0x224b   :  { %v1663_v58 = vpop.f32.mrf.mxu2  ;;  %1863 = vmatpush.bf16.msra.mxu3 %v2644_v53 }
0x224f   :  { %1864 = vmatpush.bf16.msra.mxu3 %v2650_v54 }
0x226c   :  { %s2284_s13 = spop %2283 }
0x226d   :  { %v1641_v7 = vstv %s2284_s13 }
0x226e   :  { %vm1646_vm12 = vcmp.lt.f32.partialorder %v1641_v7, 1e-06 }
0x226f   :  { %v1647_v11 = vsel %vm1646_vm12, 0.0, %v1554_v50 }
0x22cd   :  { %v1680_v60 = vpop.f32.mrf.mxu3 }
0x22ce   :  { %v1681_v61 = vadd.f32 %v2686_v26, %v1680_v60 }
0x22d0   :  { %vm1684_vm10 = vcmp.gt.f32.partialorder %v1681_v61, 0.0 }
0x22d1   :  { %v1685_v52 = vsel %vm1684_vm10, %v2484_v55, 0.0 }
0x22d2   :  { %v1687_v0 = vpack.c.bf16 %v1685_v52, %v1685_v52 }
0x22d4   :  { %2226 = vmatmul.msk.bf16.vlgmr.msrb.gmra.mxu0 %vm95_vm5, %v1687_v0 }
0x22d5   :  { %v1682_v1 = vpop.f32.mrf.mxu3  ;;  %1883 = vmatpush.bf16.msrb.mxu0 %v2659_v62 }
0x22d9   :  { %1884 = vmatpush.bf16.msrb.mxu0 %v2665_v63 }
0x2351   :  { %v1700_v3 = vpop.f32.mrf.mxu0 }
0x2352   :  { %v1704_v4 = vsel %vm1686_vm11, %v1700_v3, 0.0 }
0x2353   :  { %v1705_v5 = vpack.c.bf16 %v1704_v4, %v1704_v4 }
0x2355   :  { %2227 = vmatmul.msk.bf16.vlgmr.msrb.gmra.mxu1 %vm95_vm5, %v1705_v5 }
0x2356   :  { %1902 = vmatpush.bf16.msrb.mxu1 %v2672_v2 }
0x2359   :  { %v1702_v6 = vpop.f32.mrf.mxu0 }
0x235a   :  { %1903 = vmatpush.bf16.msrb.mxu1 %v2698_v34 }
0x23d2   :  { %v1719_v9 = vpop.f32.mrf.mxu1 }
0x23d3   :  { %v1720_v10 = vadd.f32 %v1719_v9, %v1706_v8 }
0x23d5   :  { %v1735_v12 = vmul.f32 %v1720_v10, %v1647_v11  ;;  %v1723_v13 = vmul.f32 %v1720_v10, %v1720_v10 }
0x23d7   :  { %v1736_v14 = vsub.f32 %v2223_v51, %v1735_v12  ;;  %v1724_v15 = vsel %vm213_vm7, %v1723_v13, 0.0 }
0x23d8   :  { %1725 = vadd.xlane.f32.xlu0 %v1724_v15 }
0x23d9   :  { %v2228_v59 = vclamps-f32 %v1736_v14, 10.0 }
0x23da   :  { %v1721_v16 = vpop.f32.mrf.mxu1 }
0x23db   :  { %v1741_v17 = vpack.c.bf16 %v2228_v59, %v2228_v59  ;;  %v1799_v38 = vmul.f32 2.65625e-05, %v2228_v59 }
0x23dd   :  { %2229 = vmatmul.msk.bf16.vlgmr.msrb.gmra.mxu2 %vm213_vm7, %v1741_v17 }
0x23de   :  { %1938 = vmatpush.bf16.msrb.mxu2 %v2415_v28 }
0x244b   :  { %v1726_v18 = vpop.xlane.xlu0 %1725 }
0x244c   :  { %v1727_v19 = vrot.slane %v1726_v18, 4 }
0x244e   :  { %v1728_v20 = vadd.f32 %v1727_v19, %v1726_v18 }
0x2450   :  { %v1729_v21 = vrot.slane %v1728_v20, 2 }
0x2452   :  { %v1730_v22 = vadd.f32 %v1729_v21, %v1728_v20 }
0x2454   :  { %v1731_v23 = vrot.slane %v1730_v22, 1 }
0x2456   :  { %v1732_v39 = vadd.f32 %v1731_v23, %v1730_v22 }
0x2458   :  { %2285 = vpush %v1732_v39 }
0x2460   :  { %v1754_v40 = vpop.f32.mrf.mxu2 }
0x2461   :  { %v1758_v24 = vadd.f32 %v1754_v40, %v2458_v44 }
0x2463   :  { %v1759_v25 = vmax.f32 %v1758_v24, 0.0  ;;  %vm1779_vm14 = vcmp.gt.f32.partialorder %v1758_v24, 0.0 }
0x2465   :  { %v1760_v27 = vpack.c.bf16 %v1759_v25, %v1759_v25 }
0x2467   :  { %2230 = vmatmul.msk.bf16.vlgmr.msrb.gmra.mxu3 %vm95_vm5, %v1760_v27 }
0x2468   :  { %v1756_v41 = vpop.f32.mrf.mxu2  ;;  %1956 = vmatpush.bf16.msrb.mxu3 %v2644_v53 }
0x246c   :  { %1957 = vmatpush.bf16.msrb.mxu3 %v2650_v54 }
0x2489   :  { %s2286_s14 = spop %2285 }
0x248a   :  { %v1734_v37 = vstv %s2286_s14 }
0x248b   :  { %vm1739_vm15 = vcmp.lt.f32.partialorder %v1734_v37, 1e-06 }
0x248c   :  { %v1740_v45 = vsel %vm1739_vm15, 0.0, %v1647_v11 }
0x24ea   :  { %v1773_v29 = vpop.f32.mrf.mxu3 }
0x24eb   :  { %v1774_v50 = vadd.f32 %v2686_v26, %v1773_v29 }
0x24ed   :  { %vm1777_vm13 = vcmp.gt.f32.partialorder %v1774_v50, 0.0 }
0x24ee   :  { %v1778_v30 = vsel %vm1777_vm13, %v2484_v55, 0.0 }
0x24ef   :  { %v1780_v31 = vpack.c.bf16 %v1778_v30, %v1778_v30 }
0x24f1   :  { %2231 = vmatmul.msk.bf16.vlgmr.msra.gmra.mxu0 %vm95_vm5, %v1780_v31 }
0x24f2   :  { %v1775_v32 = vpop.f32.mrf.mxu3  ;;  %1976 = vmatpush.bf16.msra.mxu0 %v2659_v62 }
0x24f6   :  { %1977 = vmatpush.bf16.msra.mxu0 %v2665_v63 }
0x256e   :  { %v1793_v33 = vpop.f32.mrf.mxu0 }
0x256f   :  { %v1797_v51 = vsel %vm1779_vm14, %v1793_v33, 0.0 }
0x2570   :  { %v1798_v35 = vpack.c.bf16 %v1797_v51, %v1797_v51 }
0x2572   :  { %2232 = vmatmul.msk.bf16.vlgmr.msra.gmra.mxu1 %vm95_vm5, %v1798_v35 }
0x2573   :  { %1995 = vmatpush.bf16.msra.mxu1 %v2672_v2 }
0x2576   :  { %v1795_v36 = vpop.f32.mrf.mxu0 }
0x2577   :  { %1996 = vmatpush.bf16.msra.mxu1 %v2698_v34 }
0x25ef   :  { %v1812_v42 = vpop.f32.mrf.mxu1 }
0x25f0   :  { %v1813_v43 = vadd.f32 %v1812_v42, %v1799_v38 }
0x25f2   :  { %v1828_v46 = vmul.f32 %v1813_v43, %v1740_v45  ;;  %v1816_v47 = vmul.f32 %v1813_v43, %v1813_v43 }
0x25f4   :  { %v1829_v48 = vsub.f32 %v2228_v59, %v1828_v46  ;;  %v1817_v49 = vsel %vm213_vm7, %v1816_v47, 0.0 }
0x25f5   :  { %1818 = vadd.xlane.f32.xlu1 %v1817_v49 }
0x25f6   :  { %v2233_v56 = vclamps-f32 %v1829_v48, 10.0 }
0x25f7   :  { %v1814_v57 = vpop.f32.mrf.mxu1 }
0x25f8   :  { %v1834_v58 = vpack.c.bf16 %v2233_v56, %v2233_v56  ;;  %v1892_v16 = vmul.f32 2.65625e-05, %v2233_v56 }
0x25fa   :  { %2234 = vmatmul.msk.bf16.vlgmr.msra.gmra.mxu2 %vm213_vm7, %v1834_v58 }
0x25fb   :  { %2031 = vmatpush.bf16.msra.mxu2 %v2415_v28 }
0x2668   :  { %v1819_v60 = vpop.xlane.xlu1 %1818 }
0x2669   :  { %v1820_v61 = vrot.slane %v1819_v60, 4 }
0x266b   :  { %v1821_v52 = vadd.f32 %v1820_v61, %v1819_v60 }
0x266d   :  { %v1822_v0 = vrot.slane %v1821_v52, 2 }
0x266f   :  { %v1823_v1 = vadd.f32 %v1822_v0, %v1821_v52 }
0x2671   :  { %v1824_v3 = vrot.slane %v1823_v1, 1 }
0x2673   :  { %v1825_v4 = vadd.f32 %v1824_v3, %v1823_v1 }
0x2675   :  { %2287 = vpush %v1825_v4 }
0x267d   :  { %v1847_v5 = vpop.f32.mrf.mxu2 }
0x267e   :  { %v1851_v6 = vadd.f32 %v1847_v5, %v2458_v44 }
0x2680   :  { %v1852_v7 = vmax.f32 %v1851_v6, 0.0  ;;  %vm1872_vm1 = vcmp.gt.f32.partialorder %v1851_v6, 0.0 }
0x2682   :  { %v1853_v8 = vpack.c.bf16 %v1852_v7, %v1852_v7 }
0x2684   :  { %2235 = vmatmul.msk.bf16.vlgmr.msra.gmra.mxu3 %vm95_vm5, %v1853_v8 }
0x2685   :  { %v1849_v9 = vpop.f32.mrf.mxu2  ;;  %2049 = vmatpush.bf16.msra.mxu3 %v2644_v53 }
0x2689   :  { %2050 = vmatpush.bf16.msra.mxu3 %v2650_v54 }
0x26a6   :  { %s2288_s15 = spop %2287 }
0x26a7   :  { %v1827_v59 = vstv %s2288_s15 }
0x26a8   :  { %vm1832_vm2 = vcmp.lt.f32.partialorder %v1827_v59, 1e-06 }
0x2707   :  { %v1866_v28 = vpop.f32.mrf.mxu3 }
0x2708   :  { %v1867_v10 = vadd.f32 %v2686_v26, %v1866_v28 }
0x270a   :  { %vm1870_vm0 = vcmp.gt.f32.partialorder %v1867_v10, 0.0 }
0x270b   :  { %v1871_v11 = vsel %vm1870_vm0, %v2484_v55, 0.0 }
0x270c   :  { %v1873_v12 = vpack.c.bf16 %v1871_v11, %v1871_v11 }
0x270e   :  { %2236 = vmatmul.msk.bf16.vlgmr.msrb.gmra.mxu0 %vm95_vm5, %v1873_v12 }
0x270f   :  { %v1868_v13 = vpop.f32.mrf.mxu3  ;;  %2069 = vmatpush.bf16.msrb.mxu0 %v2659_v62  ;;  %v1833_v62 = vsel %vm1832_vm2, 0.0, %v1740_v45 }
0x2713   :  { %2070 = vmatpush.bf16.msrb.mxu0 %v2665_v63 }
0x278b   :  { %v1886_v14 = vpop.f32.mrf.mxu0 }
0x278c   :  { %v1890_v15 = vsel %vm1872_vm1, %v1886_v14, 0.0 }
0x278d   :  { %v1891_v53 = vpack.c.bf16 %v1890_v15, %v1890_v15 }
0x278f   :  { %2237 = vmatmul.msk.bf16.vlgmr.msrb.gmra.mxu1 %vm95_vm5, %v1891_v53 }
0x2790   :  { %2088 = vmatpush.bf16.msrb.mxu1 %v2672_v2 }
0x2793   :  { %v1888_v54 = vpop.f32.mrf.mxu0 }
0x2794   :  { %2089 = vmatpush.bf16.msrb.mxu1 %v2698_v34 }
0x280c   :  { %v1905_v17 = vpop.f32.mrf.mxu1 }
0x280d   :  { %v1906_v18 = vadd.f32 %v1905_v17, %v1892_v16 }
0x280f   :  { %v1921_v19 = vmul.f32 %v1906_v18, %v1833_v62  ;;  %v1909_v63 = vmul.f32 %v1906_v18, %v1906_v18 }
0x2811   :  { %v1922_v20 = vsub.f32 %v2233_v56, %v1921_v19  ;;  %v1910_v21 = vsel %vm213_vm7, %v1909_v63, 0.0 }
0x2812   :  { %1911 = vadd.xlane.f32.xlu2 %v1910_v21 }
0x2813   :  { %v2238_v22 = vclamps-f32 %v1922_v20, 10.0 }
0x2814   :  { %v1907_v23 = vpop.f32.mrf.mxu1 }
0x2815   :  { %v1927_v39 = vpack.c.bf16 %v2238_v22, %v2238_v22  ;;  %v1985_v47 = vmul.f32 2.65625e-05, %v2238_v22 }
0x2817   :  { %2239 = vmatmul.msk.bf16.vlgmr.msrb.gmra.mxu2 %vm213_vm7, %v1927_v39 }
0x2885   :  { %v1912_v2 = vpop.xlane.xlu2 %1911 }
0x2886   :  { %v1913_v34 = vrot.slane %v1912_v2, 4 }
0x2888   :  { %v1914_v40 = vadd.f32 %v1913_v34, %v1912_v2 }
0x288a   :  { %v1915_v24 = vrot.slane %v1914_v40, 2 }
0x288c   :  { %v1916_v25 = vadd.f32 %v1915_v24, %v1914_v40 }
0x288e   :  { %v1917_v27 = vrot.slane %v1916_v25, 1 }
0x2890   :  { %v1918_v41 = vadd.f32 %v1917_v27, %v1916_v25 }
0x2892   :  { %2289 = vpush %v1918_v41 }
0x289a   :  { %v1940_v29 = vpop.f32.mrf.mxu2 }
0x289b   :  { %v1944_v50 = vadd.f32 %v1940_v29, %v2458_v44 }
0x289d   :  { %v1945_v30 = vmax.f32 %v1944_v50, 0.0  ;;  %vm1965_vm4 = vcmp.gt.f32.partialorder %v1944_v50, 0.0 }
0x289f   :  { %v1946_v31 = vpack.c.bf16 %v1945_v30, %v1945_v30 }
0x28a1   :  { %2240 = vmatmul.msk.bf16.vlgmr.msrb.gmra.mxu3 %vm95_vm5, %v1946_v31 }
0x28a2   :  { %v1942_v32 = vpop.f32.mrf.mxu2 }
0x28c3   :  { %s2290_s16 = spop %2289 }
0x28c4   :  { %v1920_v46 = vstv %s2290_s16 }
0x28c5   :  { %vm1925_vm6 = vcmp.lt.f32.partialorder %v1920_v46, 1e-06 }
0x28c6   :  { %v1926_v56 = vsel %vm1925_vm6, 0.0, %v1833_v62 }
0x2924   :  { %v1959_v33 = vpop.f32.mrf.mxu3 }
0x2925   :  { %v1960_v51 = vadd.f32 %v2686_v26, %v1959_v33 }
0x2927   :  { %vm1963_vm3 = vcmp.gt.f32.partialorder %v1960_v51, 0.0 }
0x2928   :  { %v1964_v35 = vsel %vm1963_vm3, %v2484_v55, 0.0 }
0x2929   :  { %v1966_v36 = vpack.c.bf16 %v1964_v35, %v1964_v35 }
0x292b   :  { %2241 = vmatmul.msk.bf16.vlgmr.msra.gmra.mxu0 %vm95_vm5, %v1966_v36 }
0x292c   :  { %v1961_v37 = vpop.f32.mrf.mxu3 }
0x29a8   :  { %v1979_v38 = vpop.f32.mrf.mxu0 }
0x29a9   :  { %v1983_v42 = vsel %vm1965_vm4, %v1979_v38, 0.0 }
0x29aa   :  { %v1984_v43 = vpack.c.bf16 %v1983_v42, %v1983_v42 }
0x29ac   :  { %2242 = vmatmul.msk.bf16.vlgmr.msra.gmra.mxu1 %vm95_vm5, %v1984_v43 }
0x29b0   :  { %v1981_v45 = vpop.f32.mrf.mxu0 }
0x2a29   :  { %v1998_v48 = vpop.f32.mrf.mxu1 }
0x2a2a   :  { %v1999_v49 = vadd.f32 %v1998_v48, %v1985_v47 }
0x2a2c   :  { %v2014_v57 = vmul.f32 %v1999_v49, %v1926_v56  ;;  %v2002_v58 = vmul.f32 %v1999_v49, %v1999_v49 }
0x2a2e   :  { %v2015_v60 = vsub.f32 %v2238_v22, %v2014_v57  ;;  %v2003_v61 = vsel %vm213_vm7, %v2002_v58, 0.0 }
0x2a2f   :  { %2004 = vadd.xlane.f32.xlu0 %v2003_v61 }
0x2a30   :  { %v2243_v52 = vclamps-f32 %v2015_v60, 10.0 }
0x2a31   :  { %v2000_v0 = vpop.f32.mrf.mxu1 }
0x2a32   :  { %v2020_v1 = vpack.c.bf16 %v2243_v52, %v2243_v52  ;;  %v2078_v19 = vmul.f32 2.65625e-05, %v2243_v52 }
0x2a34   :  { %2244 = vmatmul.msk.bf16.vlgmr.msra.gmra.mxu2 %vm213_vm7, %v2020_v1 }
0x2aa2   :  { %v2005_v3 = vpop.xlane.xlu0 %2004 }
0x2aa3   :  { %v2006_v4 = vrot.slane %v2005_v3, 4 }
0x2aa5   :  { %v2007_v5 = vadd.f32 %v2006_v4, %v2005_v3 }
0x2aa7   :  { %v2008_v6 = vrot.slane %v2007_v5, 2 }
0x2aa9   :  { %v2009_v7 = vadd.f32 %v2008_v6, %v2007_v5 }
0x2aab   :  { %v2010_v8 = vrot.slane %v2009_v7, 1 }
0x2aad   :  { %v2011_v9 = vadd.f32 %v2010_v8, %v2009_v7 }
0x2aaf   :  { %2291 = vpush %v2011_v9 }
0x2ab7   :  { %v2033_v28 = vpop.f32.mrf.mxu2 }
0x2ab8   :  { %v2037_v10 = vadd.f32 %v2033_v28, %v2458_v44 }
0x2aba   :  { %v2038_v11 = vmax.f32 %v2037_v10, 0.0  ;;  %vm2058_vm9 = vcmp.gt.f32.partialorder %v2037_v10, 0.0 }
0x2abc   :  { %v2039_v12 = vpack.c.bf16 %v2038_v11, %v2038_v11 }
0x2abe   :  { %2245 = vmatmul.msk.bf16.vlgmr.msra.gmra.mxu3 %vm95_vm5, %v2039_v12 }
0x2abf   :  { %v2035_v13 = vpop.f32.mrf.mxu2 }
0x2ae0   :  { %s2292_s17 = spop %2291 }
0x2ae1   :  { %v2013_v62 = vstv %s2292_s17 }
0x2ae2   :  { %vm2018_vm10 = vcmp.lt.f32.partialorder %v2013_v62, 1e-06 }
0x2ae3   :  { %v2019_v20 = vsel %vm2018_vm10, 0.0, %v1926_v56 }
0x2b41   :  { %v2052_v14 = vpop.f32.mrf.mxu3 }
0x2b42   :  { %v2053_v15 = vadd.f32 %v2686_v26, %v2052_v14 }
0x2b44   :  { %vm2056_vm8 = vcmp.gt.f32.partialorder %v2053_v15, 0.0 }
0x2b45   :  { %v2057_v53 = vsel %vm2056_vm8, %v2484_v55, 0.0 }
0x2b46   :  { %v2059_v54 = vpack.c.bf16 %v2057_v53, %v2057_v53 }
0x2b48   :  { %2246 = vmatmul.msk.bf16.vlgmr.msrb.gmra.mxu0 %vm95_vm5, %v2059_v54 }
0x2b49   :  { %v2054_v59 = vpop.f32.mrf.mxu3 }
0x2bc5   :  { %v2072_v16 = vpop.f32.mrf.mxu0 }
0x2bc6   :  { %v2076_v17 = vsel %vm2058_vm9, %v2072_v16, 0.0 }
0x2bc7   :  { %v2077_v18 = vpack.c.bf16 %v2076_v17, %v2076_v17 }
0x2bc9   :  { %2247 = vmatmul.msk.bf16.vlgmr.msrb.gmra.mxu1 %vm95_vm5, %v2077_v18 }
0x2bcd   :  { %v2074_v44 = vpop.f32.mrf.mxu0 }
0x2c46   :  { %v2091_v63 = vpop.f32.mrf.mxu1 }
0x2c47   :  { %v2092_v26 = vadd.f32 %v2091_v63, %v2078_v19 }
0x2c49   :  { %v2095_v21 = vmul.f32 %v2092_v26, %v2019_v20 }
0x2c4b   :  { %v2096_v55 = vsub.f32 %v2243_v52, %v2095_v21 }
0x2c4d   :  { %v2248_v22 = vclamps-f32 %v2096_v55, 10.0 }
0x2c4e   :  { %v2093_v23 = vpop.f32.mrf.mxu1 }
0x2c4f   :  { %2099 = vst.msk [vmem:[#allocation2] sm:$0xff] %vm213_vm7, %v2248_v22 }
0x2c50   :  { %2110 = dma.vmem_to_hbm [thread:$0]  %s2106_s19, 128, %s2108_s22, [#allocation3]  }
0x2c51   :  { %2334 = dma.done.wait [#allocation3], 128  }
0x2c52   :  { %2335 = vsyncadd [#allocation3], 4294967168 }
0x2c53   :  { %2115 = vsyncpa [#allocation3], 1 }

</bundles_post_ra>
